<compile_context>
chip_gen: v7x
topology: tpu7x:2x2x1
jax: 0.10.0
libtpu: 0.0.40
codegen_flags: <defaults>
</compile_context>

<pallas_src>
import math

import jax
import jax.numpy as jnp
import numpy as np
from jax.experimental import pallas as pl
from jax.experimental.pallas import tpu as pltpu

# ----------------------------- hyper-parameters ------------------------------
SPECTRA_LEN    = 16   # spectra_length            (S)
BOTTLENECK_LEN = 7    # bottleneck_length         (L)
BOTTLENECK_DIM = 12   # bottleneck_dim            (Db)
MODEL_DIM      = 32   # model_dim                 (D)
NUM_HEADS      = 4
FF_DIM         = 32
NUM_LAYERS     = 4
BATCH          = 2
HEAD_DIM       = MODEL_DIM // NUM_HEADS
CTX_LEN        = BOTTLENECK_LEN + 1          # bottleneck rows + phase row
LN_EPS         = 1e-5
ATTN_SCALE     = 1.0 / math.sqrt(HEAD_DIM)

assert MODEL_DIM % NUM_HEADS == 0
assert FF_DIM == MODEL_DIM   # slab packing below assumes square per-layer weights

# bias-slab row layout ---------------------------------------------------------
_B_WL1, _B_WL2, _B_PH1, _B_PH2, _B_CX1, _B_CX2, _B_WOUT, _B_BOUT = range(8)
_B_LAYER0 = 8
# per-layer offsets inside an 8-row block:
_BQ, _BO, _BF1, _BF2, _LN1G, _LN1B, _LN2G, _LN2B = range(8)
# embedding-weight-slab block order (each block is MODEL_DIM rows):
_E_WL1, _E_WL2, _E_PH1, _E_PH2, _E_CX1, _E_CX2 = range(6)


# ------------------------------- Pallas kernel --------------------------------
def _decoder_kernel(
    wl_ref,       # (B*S,  D)      sinusoidal wavelength features (flattened)
    ph_ref,       # (B,    D)      sinusoidal phase features
    bott_ref,     # (B*Lc, D)      zero-padded bottleneck rows (phase slot = 0)
    init_ref,     # (B*S,  D)      init_flux_embd tiled over batch
    mask_ref,     # (B*S,  B*Lc)   additive cross-batch mask (0 / -1e30)
    w_embd_ref,   # (6*D,  D)      wl/ph/cx MLP weights
    w_layer_ref,  # (NL*4*D, D)    per layer: [wq*scale ; wo ; wf1 ; wf2]
    w_kv_ref,     # (D, NL*2*D)    per layer: [wk | wv]
    b_kv_ref,     # (1, NL*2*D)
    bias_ref,     # (8 + 8*NL, D)  biases / LN params / w_out^T / b_out
    out_ref,      # (1, B*S)
    ctx_buf,      # VMEM (B*Lc, D)
    kv_buf,       # VMEM (B*Lc, NL*2*D)
    q_buf,        # VMEM (B*S, D)
):
    f32 = jnp.float32
    D, hd, Lc = MODEL_DIM, HEAD_DIM, CTX_LEN
    Bn = ph_ref.shape[0]

    def bias(row):
        return bias_ref[pl.ds(row, 1), :]                    # (1, D)

    def embd_w(idx):
        return w_embd_ref[pl.ds(idx * D, D), :]              # (D, D)

    def dot(a, b):
        return jnp.dot(a, b, preferred_element_type=f32)

    def mlp2(x, w1_idx, b1_row, w2_idx, b2_row):
        h1 = jnp.maximum(dot(x, embd_w(w1_idx)) + bias(b1_row), 0.0)
        return dot(h1, embd_w(w2_idx)) + bias(b2_row)

    def layernorm(t, g_row, b_row):
        mu = jnp.mean(t, axis=-1, keepdims=True)
        d = t - mu
        var = jnp.mean(d * d, axis=-1, keepdims=True)
        return d * jax.lax.rsqrt(var + LN_EPS) * bias(g_row) + bias(b_row)

    # ---- embeddings (token-parallel over the flattened batch) ----
    x = init_ref[...] + mlp2(wl_ref[...], _E_WL1, _B_WL1, _E_WL2, _B_WL2)   # (B*S, D)
    ph_e = mlp2(ph_ref[...], _E_PH1, _B_PH1, _E_PH2, _B_PH2)                # (B,   D)

    # ---- context rows: contextfc(bottleneck) rows 0..L-1, phase embd row L ----
    ctx_buf[...] = mlp2(bott_ref[...], _E_CX1, _B_CX1, _E_CX2, _B_CX2)      # (B*Lc, D)
    for b in range(Bn):
        ctx_buf[pl.ds((b + 1) * Lc - 1, 1), :] = ph_e[b:b + 1, :]
    ctx = ctx_buf[...]

    # ---- K/V for all layers & heads in one fused matmul ----
    kv_buf[...] = dot(ctx, w_kv_ref[...]) + b_kv_ref[...]                   # (B*Lc, NL*2*D)

    mask_bias = mask_ref[...]                                               # (B*S, B*Lc)

    # ---- transformer blocks (cross-attention only, post-LN) ----
    h = x
    for l in range(NUM_LAYERS):
        lw = l * 4 * D                       # layer-weight slab row base
        lb = _B_LAYER0 + l * 8               # bias slab row base
        kv0 = l * 2 * D                      # kv slab lane base

        # Q projection (attention scale already folded into wq / bq)
        q_buf[...] = dot(h, w_layer_ref[pl.ds(lw, D), :]) + bias(lb + _BQ)

        attn = bias(lb + _BO)                # output bias, broadcasts over rows
        for i in range(NUM_HEADS):
            qh = q_buf[:, pl.ds(i * hd, hd)]                          # (B*S,  hd)
            kh = kv_buf[:, pl.ds(kv0 + i * hd, hd)]                   # (B*Lc, hd)
            vh = kv_buf[:, pl.ds(kv0 + D + i * hd, hd)]               # (B*Lc, hd)

            s = jax.lax.dot_general(qh, kh, (((1,), (1,)), ((), ())),
                                    preferred_element_type=f32)       # (B*S, B*Lc)
            s = s + mask_bias
            s = s - jnp.max(s, axis=-1, keepdims=True)
            p = jnp.exp(s)
            p = p * pl.reciprocal(jnp.sum(p, axis=-1, keepdims=True), approx=True)

            wo_h = w_layer_ref[pl.ds(lw + D + i * hd, hd), :]         # (hd, D)
            attn = attn + dot(dot(p, vh), wo_h)                       # (B*S, D)

        h = layernorm(h + attn, lb + _LN1G, lb + _LN1B)

        ff = dot(
            jnp.maximum(dot(h, w_layer_ref[pl.ds(lw + 2 * D, D), :]) + bias(lb + _BF1), 0.0),
            w_layer_ref[pl.ds(lw + 3 * D, D), :]) + bias(lb + _BF2)
        h = layernorm(h + ff, lb + _LN2G, lb + _LN2B)

    # ---- flux head: lane-dense (1, B*S) output ----
    xh = x + h
    w_out_row = bias(_B_WOUT)                                         # (1, D) = w_out^T
    flux = jax.lax.dot_general(w_out_row, xh, (((1,), (1,)), ((), ())),
                               preferred_element_type=f32)            # (1, B*S)
    out_ref[...] = flux + bias_ref[pl.ds(_B_BOUT, 1), pl.ds(0, 1)]


# ------------------------------ JAX-side glue ---------------------------------
def _sinusoidal(x, dim):
    """x: [...]; returns sin/cos positional features [..., dim]."""
    half = dim // 2
    freqs = jnp.exp(-jnp.log(jnp.float32(10000.0))
                    * jnp.arange(half, dtype=jnp.float32) / half)
    args = x[..., None].astype(jnp.float32) * freqs
    return jnp.concatenate([jnp.sin(args), jnp.cos(args)], axis=-1)


def pack_params(p):
    """Pack the per-module parameter dict into a few contiguous slabs (host-side)."""
    D = MODEL_DIM
    f32 = jnp.float32

    cx_w1_pad = jnp.zeros((D, D), f32).at[:BOTTLENECK_DIM].set(p["cx_w1"])
    w_embd = jnp.concatenate(
        [p["wl_w1"], p["wl_w2"], p["ph_w1"], p["ph_w2"], cx_w1_pad, p["cx_w2"]],
        axis=0)                                                        # (6*D, D)

    w_layer = jnp.concatenate(
        [m for l in range(NUM_LAYERS)
         for m in (p["wq"][l] * ATTN_SCALE, p["wo"][l], p["wf1"][l], p["wf2"][l])],
        axis=0)                                                        # (NL*4*D, D)

    w_kv = jnp.concatenate(
        [m for l in range(NUM_LAYERS) for m in (p["wk"][l], p["wv"][l])],
        axis=1)                                                        # (D, NL*2*D)
    b_kv = jnp.concatenate(
        [m for l in range(NUM_LAYERS) for m in (p["bk"][l], p["bv"][l])],
        axis=1)                                                        # (1, NL*2*D)

    bias_rows = [p["wl_b1"], p["wl_b2"], p["ph_b1"], p["ph_b2"],
                 p["cx_b1"], p["cx_b2"],
                 p["w_out"].T,                                         # (1, D)
                 jnp.broadcast_to(p["b_out"], (1, D))]
    for l in range(NUM_LAYERS):
        bias_rows += [p["bq"][l] * ATTN_SCALE, p["bo"][l], p["bf1"][l], p["bf2"][l],
                      p["ln1_g"][l], p["ln1_b"][l], p["ln2_g"][l], p["ln2_b"][l]]
    bias_slab = jnp.concatenate(bias_rows, axis=0)                     # (8+8*NL, D)

    return {"init_flux": p["init_flux_embd"], "w_embd": w_embd,
            "w_layer": w_layer, "w_kv": w_kv, "b_kv": b_kv, "bias": bias_slab}


@jax.jit
def spectra_transformer_decoder(wavelength, phase, bottleneck, packed):
    """wavelength: (B, S); phase: (B,); bottleneck: (B, L, Db) -> flux (B, S)."""
    B, S = wavelength.shape
    BS = B * S
    BLc = B * CTX_LEN
    f32 = jnp.float32

    wl_feat = _sinusoidal(wavelength, MODEL_DIM).reshape(BS, MODEL_DIM)
    ph_feat = _sinusoidal(phase[:, None], MODEL_DIM).reshape(B, MODEL_DIM)

    bott_pad = jnp.zeros((B, CTX_LEN, MODEL_DIM), f32)
    bott_pad = bott_pad.at[:, :BOTTLENECK_LEN, :BOTTLENECK_DIM].set(bottleneck)
    bott_pad = bott_pad.reshape(BLc, MODEL_DIM)

    init_tiled = jnp.tile(packed["init_flux"], (B, 1))                 # (BS, D)

    row_b = jnp.repeat(jnp.arange(B), S)                               # (BS,)
    col_b = jnp.repeat(jnp.arange(B), CTX_LEN)                         # (BLc,)
    mask = jnp.where(row_b[:, None] == col_b[None, :], 0.0, -1e30).astype(f32)

    inputs = (wl_feat, ph_feat, bott_pad, init_tiled, mask,
              packed["w_embd"], packed["w_layer"], packed["w_kv"],
              packed["b_kv"], packed["bias"])

    def full_spec(a):
        nd = a.ndim
        return pl.BlockSpec(a.shape, lambda i, _nd=nd: (0,) * _nd)

    out = pl.pallas_call(
        _decoder_kernel,
        out_shape=jax.ShapeDtypeStruct((1, BS), jnp.float32),
        grid=(1,),
        in_specs=[full_spec(a) for a in inputs],
        out_specs=pl.BlockSpec((1, BS), lambda i: (0, 0)),
        scratch_shapes=[
            pltpu.VMEM((BLc, MODEL_DIM), jnp.float32),                 # ctx
            pltpu.VMEM((BLc, NUM_LAYERS * 2 * MODEL_DIM), jnp.float32),# fused K/V
            pltpu.VMEM((BS, MODEL_DIM), jnp.float32),                  # Q
        ],
        compiler_params=pltpu.CompilerParams(dimension_semantics=("arbitrary",)),
    )(*inputs)
    return out.reshape(B, S)


# ------------------------- deterministic parameter init -----------------------
def init_params(key):
    counter = [0]

    def nk():
        counter[0] += 1
        return jax.random.fold_in(key, counter[0])

    def dense(din, dout):
        return jax.random.normal(nk(), (din, dout), jnp.float32) / jnp.sqrt(din)

    def ldense(din, dout):
        return jnp.stack([dense(din, dout) for _ in range(NUM_LAYERS)])

    p = {}
    p["init_flux_embd"] = 0.1 * jax.random.normal(
        nk(), (SPECTRA_LEN, MODEL_DIM), jnp.float32)

    for nm, din in (("wl", MODEL_DIM), ("ph", MODEL_DIM), ("cx", BOTTLENECK_DIM)):
        p[f"{nm}_w1"] = dense(din, MODEL_DIM)
        p[f"{nm}_b1"] = jnp.zeros((1, MODEL_DIM), jnp.float32)
        p[f"{nm}_w2"] = dense(MODEL_DIM, MODEL_DIM)
        p[f"{nm}_b2"] = jnp.zeros((1, MODEL_DIM), jnp.float32)

    for nm in ("wq", "wk", "wv", "wo"):
        p[nm] = ldense(MODEL_DIM, MODEL_DIM)
    for nm in ("bq", "bk", "bv", "bo"):
        p[nm] = jnp.zeros((NUM_LAYERS, 1, MODEL_DIM), jnp.float32)

    p["ln1_g"] = jnp.ones((NUM_LAYERS, 1, MODEL_DIM), jnp.float32)
    p["ln1_b"] = jnp.zeros((NUM_LAYERS, 1, MODEL_DIM), jnp.float32)
    p["ln2_g"] = jnp.ones((NUM_LAYERS, 1, MODEL_DIM), jnp.float32)
    p["ln2_b"] = jnp.zeros((NUM_LAYERS, 1, MODEL_DIM), jnp.float32)

    p["wf1"] = ldense(MODEL_DIM, FF_DIM)
    p["bf1"] = jnp.zeros((NUM_LAYERS, 1, FF_DIM), jnp.float32)
    p["wf2"] = ldense(FF_DIM, MODEL_DIM)
    p["bf2"] = jnp.zeros((NUM_LAYERS, 1, MODEL_DIM), jnp.float32)

    p["w_out"] = dense(MODEL_DIM, 1)
    p["b_out"] = jnp.zeros((1, 1), jnp.float32)
    return p


# ----------------------------- pure-JAX reference ------------------------------
def reference_forward(wavelength, phase, bottleneck, p):
    wl_feat = _sinusoidal(wavelength, MODEL_DIM)
    ph_feat = _sinusoidal(phase[:, None], MODEL_DIM)

    def mlp2(x, w1, b1, w2, b2):
        return jnp.maximum(x @ w1 + b1, 0.0) @ w2 + b2

    wl_e = mlp2(wl_feat, p["wl_w1"], p["wl_b1"], p["wl_w2"], p["wl_b2"])
    ph_e = mlp2(ph_feat, p["ph_w1"], p["ph_b1"], p["ph_w2"], p["ph_b2"])
    x = p["init_flux_embd"][None] + wl_e
    ctx = mlp2(bottleneck, p["cx_w1"], p["cx_b1"], p["cx_w2"], p["cx_b2"])
    ctx = jnp.concatenate([ctx, ph_e], axis=1)

    def layernorm(t, g, b):
        mu = jnp.mean(t, -1, keepdims=True)
        var = jnp.mean((t - mu) ** 2, -1, keepdims=True)
        return (t - mu) * jax.lax.rsqrt(var + LN_EPS) * g + b

    B, S, D = x.shape
    Lc = ctx.shape[1]
    h = x
    for l in range(NUM_LAYERS):
        q = (h @ p["wq"][l] + p["bq"][l]).reshape(B, S, NUM_HEADS, HEAD_DIM)
        k = (ctx @ p["wk"][l] + p["bk"][l]).reshape(B, Lc, NUM_HEADS, HEAD_DIM)
        v = (ctx @ p["wv"][l] + p["bv"][l]).reshape(B, Lc, NUM_HEADS, HEAD_DIM)
        s = jnp.einsum("bshd,blhd->bhsl", q, k) * ATTN_SCALE
        s = s - jnp.max(s, -1, keepdims=True)
        a = jnp.exp(s)
        a = a / jnp.sum(a, -1, keepdims=True)
        attn = jnp.einsum("bhsl,blhd->bshd", a, v).reshape(B, S, D)
        attn = attn @ p["wo"][l] + p["bo"][l]
        h = layernorm(h + attn, p["ln1_g"][l], p["ln1_b"][l])
        ff = jnp.maximum(h @ p["wf1"][l] + p["bf1"][l], 0.0) @ p["wf2"][l] + p["bf2"][l]
        h = layernorm(h + ff, p["ln2_g"][l], p["ln2_b"][l])

    out = (x + h) @ p["w_out"] + p["b_out"]
    return out[..., 0]


# ----------------------------------- main --------------------------------------
if __name__ == "__main__":
    key = jax.random.PRNGKey(0)
    params = init_params(jax.random.fold_in(key, 123))
    packed = pack_params(params)

    k1, k2, k3 = jax.random.split(key, 3)
    wavelength = jax.random.uniform(
        k1, (BATCH, SPECTRA_LEN), jnp.float32, minval=0.0, maxval=10.0)
    phase = jax.random.uniform(k2, (BATCH,), jnp.float32, minval=-1.0, maxval=1.0)
    bottleneck = jax.random.normal(
        k3, (BATCH, BOTTLENECK_LEN, BOTTLENECK_DIM), jnp.float32)

    flux = spectra_transformer_decoder(wavelength, phase, bottleneck, packed)
    flux = jax.block_until_ready(flux)
    assert flux.shape == (BATCH, SPECTRA_LEN)

    # Reference at full f32 matmul precision; the kernel now runs at default MXU
    # precision (bf16 operands, f32 accumulate) and uses an approx reciprocal in
    # the softmax, so the tolerance is relaxed accordingly (per the perf review).
    with jax.default_matmul_precision("float32"):
        ref = reference_forward(wavelength, phase, bottleneck, params)
    np.testing.assert_allclose(np.asarray(flux), np.asarray(ref),
                               rtol=2e-2, atol=2e-2)
    print("KERNEL_OK")
</pallas_src>

<mosaic_0001>
module attributes {stable_mosaic.version = 11 : i64} {
  func.func @_decoder_kernel(%arg0: i32, %arg1: memref<32x32xf32, #tpu.memory_space<vmem>>, %arg2: memref<2x32xf32, #tpu.memory_space<vmem>>, %arg3: memref<16x32xf32, #tpu.memory_space<vmem>>, %arg4: memref<32x32xf32, #tpu.memory_space<vmem>>, %arg5: memref<32x16xf32, #tpu.memory_space<vmem>>, %arg6: memref<192x32xf32, #tpu.memory_space<vmem>>, %arg7: memref<512x32xf32, #tpu.memory_space<vmem>>, %arg8: memref<32x256xf32, #tpu.memory_space<vmem>>, %arg9: memref<1x256xf32, #tpu.memory_space<vmem>>, %arg10: memref<40x32xf32, #tpu.memory_space<vmem>>, %arg11: memref<1x32xf32, #tpu.memory_space<vmem>>, %arg12: memref<16x32xf32, #tpu.memory_space<vmem>>, %arg13: memref<16x256xf32, #tpu.memory_space<vmem>>, %arg14: memref<32x32xf32, #tpu.memory_space<vmem>>) attributes {dimension_semantics = [#tpu.dimension_semantics<arbitrary>], iteration_bounds = array<i64: 1>, scalar_prefetch = 0 : i64, scratch_operands = 3 : i64, tpu.core_type = #tpu.core_type<tc>, window_params = [{pipeline_mode = #tpu.pipeline_mode<synchronous>, transform_indices = @transform_0, window_bounds = array<i64: 32, 32>}, {pipeline_mode = #tpu.pipeline_mode<synchronous>, transform_indices = @transform_1, window_bounds = array<i64: 2, 32>}, {pipeline_mode = #tpu.pipeline_mode<synchronous>, transform_indices = @transform_2, window_bounds = array<i64: 16, 32>}, {pipeline_mode = #tpu.pipeline_mode<synchronous>, transform_indices = @transform_3, window_bounds = array<i64: 32, 32>}, {pipeline_mode = #tpu.pipeline_mode<synchronous>, transform_indices = @transform_4, window_bounds = array<i64: 32, 16>}, {pipeline_mode = #tpu.pipeline_mode<synchronous>, transform_indices = @transform_5, window_bounds = array<i64: 192, 32>}, {pipeline_mode = #tpu.pipeline_mode<synchronous>, transform_indices = @transform_6, window_bounds = array<i64: 512, 32>}, {pipeline_mode = #tpu.pipeline_mode<synchronous>, transform_indices = @transform_7, window_bounds = array<i64: 32, 256>}, {pipeline_mode = #tpu.pipeline_mode<synchronous>, transform_indices = @transform_8, window_bounds = array<i64: 1, 256>}, {pipeline_mode = #tpu.pipeline_mode<synchronous>, transform_indices = @transform_9, window_bounds = array<i64: 40, 32>}, {pipeline_mode = #tpu.pipeline_mode<synchronous>, transform_indices = @transform_10, window_bounds = array<i64: 1, 32>}]} {
    %c0 = arith.constant 0 : index
    %c0_0 = arith.constant 0 : index
    %0 = vector.load %arg4[%c0, %c0_0] : memref<32x32xf32, #tpu.memory_space<vmem>>, vector<32x32xf32>
    %c0_1 = arith.constant 0 : index
    %c0_2 = arith.constant 0 : index
    %1 = vector.load %arg1[%c0_1, %c0_2] : memref<32x32xf32, #tpu.memory_space<vmem>>, vector<32x32xf32>
    %c0_3 = arith.constant 0 : index
    %c0_4 = arith.constant 0 : index
    %2 = vector.load %arg6[%c0_3, %c0_4] : memref<192x32xf32, #tpu.memory_space<vmem>>, vector<32x32xf32>
    %cst = arith.constant dense<0.000000e+00> : vector<32x32xf32>
    %3 = tpu.matmul %1, %2, %cst {dimension_numbers = #tpu.dot_dimension_numbers<[1], [0], [0], [1], [0, 0, 1, 1], [], []>} : vector<32x32xf32>, vector<32x32xf32>, vector<32x32xf32> -> vector<32x32xf32>
    %c0_5 = arith.constant 0 : index
    %c0_6 = arith.constant 0 : index
    %4 = vector.load %arg10[%c0_5, %c0_6] : memref<40x32xf32, #tpu.memory_space<vmem>>, vector<1x32xf32>
    %5 = vector.broadcast %4 : vector<1x32xf32> to vector<32x32xf32>
    %6 = arith.addf %3, %5 : vector<32x32xf32>
    %cst_7 = arith.constant 0.000000e+00 : f32
    %7 = vector.broadcast %cst_7 : f32 to vector<32x32xf32>
    %8 = arith.maximumf %6, %7 : vector<32x32xf32>
    %c32 = arith.constant 32 : index
    %c0_8 = arith.constant 0 : index
    %9 = vector.load %arg6[%c32, %c0_8] : memref<192x32xf32, #tpu.memory_space<vmem>>, vector<32x32xf32>
    %cst_9 = arith.constant dense<0.000000e+00> : vector<32x32xf32>
    %10 = tpu.matmul %8, %9, %cst_9 {dimension_numbers = #tpu.dot_dimension_numbers<[1], [0], [0], [1], [0, 0, 1, 1], [], []>} : vector<32x32xf32>, vector<32x32xf32>, vector<32x32xf32> -> vector<32x32xf32>
    %c1 = arith.constant 1 : index
    %c0_10 = arith.constant 0 : index
    %11 = vector.load %arg10[%c1, %c0_10] : memref<40x32xf32, #tpu.memory_space<vmem>>, vector<1x32xf32>
    %12 = vector.broadcast %11 : vector<1x32xf32> to vector<32x32xf32>
    %13 = arith.addf %10, %12 : vector<32x32xf32>
    %14 = arith.addf %0, %13 : vector<32x32xf32>
    %c0_11 = arith.constant 0 : index
    %c0_12 = arith.constant 0 : index
    %15 = vector.load %arg2[%c0_11, %c0_12] : memref<2x32xf32, #tpu.memory_space<vmem>>, vector<2x32xf32>
    %c64 = arith.constant 64 : index
    %c0_13 = arith.constant 0 : index
    %16 = vector.load %arg6[%c64, %c0_13] : memref<192x32xf32, #tpu.memory_space<vmem>>, vector<32x32xf32>
    %cst_14 = arith.constant dense<0.000000e+00> : vector<2x32xf32>
    %17 = tpu.matmul %15, %16, %cst_14 {dimension_numbers = #tpu.dot_dimension_numbers<[1], [0], [0], [1], [0, 0, 1, 1], [], []>} : vector<2x32xf32>, vector<32x32xf32>, vector<2x32xf32> -> vector<2x32xf32>
    %c2 = arith.constant 2 : index
    %c0_15 = arith.constant 0 : index
    %18 = vector.load %arg10[%c2, %c0_15] : memref<40x32xf32, #tpu.memory_space<vmem>>, vector<1x32xf32>
    %19 = vector.broadcast %18 : vector<1x32xf32> to vector<2x32xf32>
    %20 = arith.addf %17, %19 : vector<2x32xf32>
    %cst_16 = arith.constant 0.000000e+00 : f32
    %21 = vector.broadcast %cst_16 : f32 to vector<2x32xf32>
    %22 = arith.maximumf %20, %21 : vector<2x32xf32>
    %c96 = arith.constant 96 : index
    %c0_17 = arith.constant 0 : index
    %23 = vector.load %arg6[%c96, %c0_17] : memref<192x32xf32, #tpu.memory_space<vmem>>, vector<32x32xf32>
    %cst_18 = arith.constant dense<0.000000e+00> : vector<2x32xf32>
    %24 = tpu.matmul %22, %23, %cst_18 {dimension_numbers = #tpu.dot_dimension_numbers<[1], [0], [0], [1], [0, 0, 1, 1], [], []>} : vector<2x32xf32>, vector<32x32xf32>, vector<2x32xf32> -> vector<2x32xf32>
    %c3 = arith.constant 3 : index
    %c0_19 = arith.constant 0 : index
    %25 = vector.load %arg10[%c3, %c0_19] : memref<40x32xf32, #tpu.memory_space<vmem>>, vector<1x32xf32>
    %26 = vector.broadcast %25 : vector<1x32xf32> to vector<2x32xf32>
    %27 = arith.addf %24, %26 : vector<2x32xf32>
    %c0_20 = arith.constant 0 : index
    %c0_21 = arith.constant 0 : index
    %28 = vector.load %arg3[%c0_20, %c0_21] : memref<16x32xf32, #tpu.memory_space<vmem>>, vector<16x32xf32>
    %c128 = arith.constant 128 : index
    %c0_22 = arith.constant 0 : index
    %29 = vector.load %arg6[%c128, %c0_22] : memref<192x32xf32, #tpu.memory_space<vmem>>, vector<32x32xf32>
    %cst_23 = arith.constant dense<0.000000e+00> : vector<16x32xf32>
    %30 = tpu.matmul %28, %29, %cst_23 {dimension_numbers = #tpu.dot_dimension_numbers<[1], [0], [0], [1], [0, 0, 1, 1], [], []>} : vector<16x32xf32>, vector<32x32xf32>, vector<16x32xf32> -> vector<16x32xf32>
    %c4 = arith.constant 4 : index
    %c0_24 = arith.constant 0 : index
    %31 = vector.load %arg10[%c4, %c0_24] : memref<40x32xf32, #tpu.memory_space<vmem>>, vector<1x32xf32>
    %32 = vector.broadcast %31 : vector<1x32xf32> to vector<16x32xf32>
    %33 = arith.addf %30, %32 : vector<16x32xf32>
    %cst_25 = arith.constant 0.000000e+00 : f32
    %34 = vector.broadcast %cst_25 : f32 to vector<16x32xf32>
    %35 = arith.maximumf %33, %34 : vector<16x32xf32>
    %c160 = arith.constant 160 : index
    %c0_26 = arith.constant 0 : index
    %36 = vector.load %arg6[%c160, %c0_26] : memref<192x32xf32, #tpu.memory_space<vmem>>, vector<32x32xf32>
    %cst_27 = arith.constant dense<0.000000e+00> : vector<16x32xf32>
    %37 = tpu.matmul %35, %36, %cst_27 {dimension_numbers = #tpu.dot_dimension_numbers<[1], [0], [0], [1], [0, 0, 1, 1], [], []>} : vector<16x32xf32>, vector<32x32xf32>, vector<16x32xf32> -> vector<16x32xf32>
    %c5 = arith.constant 5 : index
    %c0_28 = arith.constant 0 : index
    %38 = vector.load %arg10[%c5, %c0_28] : memref<40x32xf32, #tpu.memory_space<vmem>>, vector<1x32xf32>
    %39 = vector.broadcast %38 : vector<1x32xf32> to vector<16x32xf32>
    %40 = arith.addf %37, %39 : vector<16x32xf32>
    %c0_29 = arith.constant 0 : index
    %c0_30 = arith.constant 0 : index
    %41 = vector.load %arg12[%c0_29, %c0_30] : memref<16x32xf32, #tpu.memory_space<vmem>>, vector<16x32xf32>
    tpu.vector_store %arg12[%c0_29, %c0_30], %40 {strides = array<i32>} : memref<16x32xf32, #tpu.memory_space<vmem>>, vector<16x32xf32>,
    %42 = vector.extract_strided_slice %27 {offsets = [0, 0], sizes = [1, 32], strides = [1, 1]} : vector<2x32xf32> to vector<1x32xf32>
    %c7 = arith.constant 7 : index
    %c0_31 = arith.constant 0 : index
    %43 = vector.load %arg12[%c7, %c0_31] : memref<16x32xf32, #tpu.memory_space<vmem>>, vector<1x32xf32>
    tpu.vector_store %arg12[%c7, %c0_31], %42 {strides = array<i32>} : memref<16x32xf32, #tpu.memory_space<vmem>>, vector<1x32xf32>,
    %44 = vector.extract_strided_slice %27 {offsets = [1, 0], sizes = [1, 32], strides = [1, 1]} : vector<2x32xf32> to vector<1x32xf32>
    %c15 = arith.constant 15 : index
    %c0_32 = arith.constant 0 : index
    %45 = vector.load %arg12[%c15, %c0_32] : memref<16x32xf32, #tpu.memory_space<vmem>>, vector<1x32xf32>
    tpu.vector_store %arg12[%c15, %c0_32], %44 {strides = array<i32>} : memref<16x32xf32, #tpu.memory_space<vmem>>, vector<1x32xf32>,
    %c0_33 = arith.constant 0 : index
    %c0_34 = arith.constant 0 : index
    %46 = vector.load %arg12[%c0_33, %c0_34] : memref<16x32xf32, #tpu.memory_space<vmem>>, vector<16x32xf32>
    %c0_35 = arith.constant 0 : index
    %c0_36 = arith.constant 0 : index
    %47 = vector.load %arg8[%c0_35, %c0_36] : memref<32x256xf32, #tpu.memory_space<vmem>>, vector<32x256xf32>
    %cst_37 = arith.constant dense<0.000000e+00> : vector<16x256xf32>
    %48 = tpu.matmul %46, %47, %cst_37 {dimension_numbers = #tpu.dot_dimension_numbers<[1], [0], [0], [1], [0, 0, 1, 1], [], []>} : vector<16x32xf32>, vector<32x256xf32>, vector<16x256xf32> -> vector<16x256xf32>
    %c0_38 = arith.constant 0 : index
    %c0_39 = arith.constant 0 : index
    %49 = vector.load %arg9[%c0_38, %c0_39] : memref<1x256xf32, #tpu.memory_space<vmem>>, vector<1x256xf32>
    %50 = vector.broadcast %49 : vector<1x256xf32> to vector<16x256xf32>
    %51 = arith.addf %48, %50 : vector<16x256xf32>
    %c0_40 = arith.constant 0 : index
    %c0_41 = arith.constant 0 : index
    %52 = vector.load %arg13[%c0_40, %c0_41] : memref<16x256xf32, #tpu.memory_space<vmem>>, vector<16x256xf32>
    tpu.vector_store %arg13[%c0_40, %c0_41], %51 {strides = array<i32>} : memref<16x256xf32, #tpu.memory_space<vmem>>, vector<16x256xf32>,
    %c0_42 = arith.constant 0 : index
    %c0_43 = arith.constant 0 : index
    %53 = vector.load %arg5[%c0_42, %c0_43] : memref<32x16xf32, #tpu.memory_space<vmem>>, vector<32x16xf32>
    %c0_44 = arith.constant 0 : index
    %c0_45 = arith.constant 0 : index
    %54 = vector.load %arg7[%c0_44, %c0_45] : memref<512x32xf32, #tpu.memory_space<vmem>>, vector<32x32xf32>
    %cst_46 = arith.constant dense<0.000000e+00> : vector<32x32xf32>
    %55 = tpu.matmul %14, %54, %cst_46 {dimension_numbers = #tpu.dot_dimension_numbers<[1], [0], [0], [1], [0, 0, 1, 1], [], []>} : vector<32x32xf32>, vector<32x32xf32>, vector<32x32xf32> -> vector<32x32xf32>
    %c8 = arith.constant 8 : index
    %c0_47 = arith.constant 0 : index
    %56 = vector.load %arg10[%c8, %c0_47] : memref<40x32xf32, #tpu.memory_space<vmem>>, vector<1x32xf32>
    %57 = vector.broadcast %56 : vector<1x32xf32> to vector<32x32xf32>
    %58 = arith.addf %55, %57 : vector<32x32xf32>
    %c0_48 = arith.constant 0 : index
    %c0_49 = arith.constant 0 : index
    %59 = vector.load %arg14[%c0_48, %c0_49] : memref<32x32xf32, #tpu.memory_space<vmem>>, vector<32x32xf32>
    tpu.vector_store %arg14[%c0_48, %c0_49], %58 {strides = array<i32>} : memref<32x32xf32, #tpu.memory_space<vmem>>, vector<32x32xf32>,
    %c9 = arith.constant 9 : index
    %c0_50 = arith.constant 0 : index
    %60 = vector.load %arg10[%c9, %c0_50] : memref<40x32xf32, #tpu.memory_space<vmem>>, vector<1x32xf32>
    %c0_51 = arith.constant 0 : index
    %c0_52 = arith.constant 0 : index
    %61 = vector.load %arg14[%c0_51, %c0_52] : memref<32x32xf32, #tpu.memory_space<vmem>>, vector<32x8xf32>
    %c0_53 = arith.constant 0 : index
    %c0_54 = arith.constant 0 : index
    %62 = vector.load %arg13[%c0_53, %c0_54] : memref<16x256xf32, #tpu.memory_space<vmem>>, vector<16x8xf32>
    %c0_55 = arith.constant 0 : index
    %c32_56 = arith.constant 32 : index
    %63 = vector.load %arg13[%c0_55, %c32_56] : memref<16x256xf32, #tpu.memory_space<vmem>>, vector<16x8xf32>
    %cst_57 = arith.constant dense<0.000000e+00> : vector<32x16xf32>
    %64 = tpu.matmul %61, %62, %cst_57 {dimension_numbers = #tpu.dot_dimension_numbers<[1], [1], [0], [0], [0, 0, 1, 0], [], []>} : vector<32x8xf32>, vector<16x8xf32>, vector<32x16xf32> -> vector<32x16xf32>
    %65 = arith.addf %64, %53 : vector<32x16xf32>
    %cst_58 = arith.constant dense<0xFF800000> : vector<32xf32>
    %66 = vector.multi_reduction <maximumf>, %65, %cst_58 [1] : vector<32x16xf32> to vector<32xf32>
    %67 = vector.shape_cast %66 : vector<32xf32> to vector<32x1xf32>
    %68 = vector.broadcast %67 : vector<32x1xf32> to vector<32x16xf32>
    %69 = arith.subf %65, %68 : vector<32x16xf32>
    %70 = math.exp %69 : vector<32x16xf32>
    %cst_59 = arith.constant dense<0.000000e+00> : vector<32xf32>
    %71 = vector.multi_reduction <add>, %70, %cst_59 [1] : vector<32x16xf32> to vector<32xf32>
    %72 = vector.shape_cast %71 : vector<32xf32> to vector<32x1xf32>
    %73 = tpu.reciprocal %72 {approx = true} : vector<32x1xf32> -> vector<32x1xf32>
    %74 = vector.broadcast %73 : vector<32x1xf32> to vector<32x16xf32>
    %75 = arith.mulf %70, %74 : vector<32x16xf32>
    %c32_60 = arith.constant 32 : index
    %c0_61 = arith.constant 0 : index
    %76 = vector.load %arg7[%c32_60, %c0_61] : memref<512x32xf32, #tpu.memory_space<vmem>>, vector<8x32xf32>
    %cst_62 = arith.constant dense<0.000000e+00> : vector<32x8xf32>
    %77 = tpu.matmul %75, %63, %cst_62 {dimension_numbers = #tpu.dot_dimension_numbers<[1], [0], [0], [1], [0, 0, 1, 1], [], []>} : vector<32x16xf32>, vector<16x8xf32>, vector<32x8xf32> -> vector<32x8xf32>
    %cst_63 = arith.constant dense<0.000000e+00> : vector<32x32xf32>
    %78 = tpu.matmul %77, %76, %cst_63 {dimension_numbers = #tpu.dot_dimension_numbers<[1], [0], [0], [1], [0, 0, 1, 1], [], []>} : vector<32x8xf32>, vector<8x32xf32>, vector<32x32xf32> -> vector<32x32xf32>
    %79 = vector.broadcast %60 : vector<1x32xf32> to vector<32x32xf32>
    %80 = arith.addf %79, %78 : vector<32x32xf32>
    %c0_64 = arith.constant 0 : index
    %c8_65 = arith.constant 8 : index
    %81 = vector.load %arg14[%c0_64, %c8_65] : memref<32x32xf32, #tpu.memory_space<vmem>>, vector<32x8xf32>
    %c0_66 = arith.constant 0 : index
    %c8_67 = arith.constant 8 : index
    %82 = vector.load %arg13[%c0_66, %c8_67] : memref<16x256xf32, #tpu.memory_space<vmem>>, vector<16x8xf32>
    %c0_68 = arith.constant 0 : index
    %c40 = arith.constant 40 : index
    %83 = vector.load %arg13[%c0_68, %c40] : memref<16x256xf32, #tpu.memory_space<vmem>>, vector<16x8xf32>
    %cst_69 = arith.constant dense<0.000000e+00> : vector<32x16xf32>
    %84 = tpu.matmul %81, %82, %cst_69 {dimension_numbers = #tpu.dot_dimension_numbers<[1], [1], [0], [0], [0, 0, 1, 0], [], []>} : vector<32x8xf32>, vector<16x8xf32>, vector<32x16xf32> -> vector<32x16xf32>
    %85 = arith.addf %84, %53 : vector<32x16xf32>
    %cst_70 = arith.constant dense<0xFF800000> : vector<32xf32>
    %86 = vector.multi_reduction <maximumf>, %85, %cst_70 [1] : vector<32x16xf32> to vector<32xf32>
    %87 = vector.shape_cast %86 : vector<32xf32> to vector<32x1xf32>
    %88 = vector.broadcast %87 : vector<32x1xf32> to vector<32x16xf32>
    %89 = arith.subf %85, %88 : vector<32x16xf32>
    %90 = math.exp %89 : vector<32x16xf32>
    %cst_71 = arith.constant dense<0.000000e+00> : vector<32xf32>
    %91 = vector.multi_reduction <add>, %90, %cst_71 [1] : vector<32x16xf32> to vector<32xf32>
    %92 = vector.shape_cast %91 : vector<32xf32> to vector<32x1xf32>
    %93 = tpu.reciprocal %92 {approx = true} : vector<32x1xf32> -> vector<32x1xf32>
    %94 = vector.broadcast %93 : vector<32x1xf32> to vector<32x16xf32>
    %95 = arith.mulf %90, %94 : vector<32x16xf32>
    %c40_72 = arith.constant 40 : index
    %c0_73 = arith.constant 0 : index
    %96 = vector.load %arg7[%c40_72, %c0_73] : memref<512x32xf32, #tpu.memory_space<vmem>>, vector<8x32xf32>
    %cst_74 = arith.constant dense<0.000000e+00> : vector<32x8xf32>
    %97 = tpu.matmul %95, %83, %cst_74 {dimension_numbers = #tpu.dot_dimension_numbers<[1], [0], [0], [1], [0, 0, 1, 1], [], []>} : vector<32x16xf32>, vector<16x8xf32>, vector<32x8xf32> -> vector<32x8xf32>
    %cst_75 = arith.constant dense<0.000000e+00> : vector<32x32xf32>
    %98 = tpu.matmul %97, %96, %cst_75 {dimension_numbers = #tpu.dot_dimension_numbers<[1], [0], [0], [1], [0, 0, 1, 1], [], []>} : vector<32x8xf32>, vector<8x32xf32>, vector<32x32xf32> -> vector<32x32xf32>
    %99 = arith.addf %80, %98 : vector<32x32xf32>
    %c0_76 = arith.constant 0 : index
    %c16 = arith.constant 16 : index
    %100 = vector.load %arg14[%c0_76, %c16] : memref<32x32xf32, #tpu.memory_space<vmem>>, vector<32x8xf32>
    %c0_77 = arith.constant 0 : index
    %c16_78 = arith.constant 16 : index
    %101 = vector.load %arg13[%c0_77, %c16_78] : memref<16x256xf32, #tpu.memory_space<vmem>>, vector<16x8xf32>
    %c0_79 = arith.constant 0 : index
    %c48 = arith.constant 48 : index
    %102 = vector.load %arg13[%c0_79, %c48] : memref<16x256xf32, #tpu.memory_space<vmem>>, vector<16x8xf32>
    %cst_80 = arith.constant dense<0.000000e+00> : vector<32x16xf32>
    %103 = tpu.matmul %100, %101, %cst_80 {dimension_numbers = #tpu.dot_dimension_numbers<[1], [1], [0], [0], [0, 0, 1, 0], [], []>} : vector<32x8xf32>, vector<16x8xf32>, vector<32x16xf32> -> vector<32x16xf32>
    %104 = arith.addf %103, %53 : vector<32x16xf32>
    %cst_81 = arith.constant dense<0xFF800000> : vector<32xf32>
    %105 = vector.multi_reduction <maximumf>, %104, %cst_81 [1] : vector<32x16xf32> to vector<32xf32>
    %106 = vector.shape_cast %105 : vector<32xf32> to vector<32x1xf32>
    %107 = vector.broadcast %106 : vector<32x1xf32> to vector<32x16xf32>
    %108 = arith.subf %104, %107 : vector<32x16xf32>
    %109 = math.exp %108 : vector<32x16xf32>
    %cst_82 = arith.constant dense<0.000000e+00> : vector<32xf32>
    %110 = vector.multi_reduction <add>, %109, %cst_82 [1] : vector<32x16xf32> to vector<32xf32>
    %111 = vector.shape_cast %110 : vector<32xf32> to vector<32x1xf32>
    %112 = tpu.reciprocal %111 {approx = true} : vector<32x1xf32> -> vector<32x1xf32>
    %113 = vector.broadcast %112 : vector<32x1xf32> to vector<32x16xf32>
    %114 = arith.mulf %109, %113 : vector<32x16xf32>
    %c48_83 = arith.constant 48 : index
    %c0_84 = arith.constant 0 : index
    %115 = vector.load %arg7[%c48_83, %c0_84] : memref<512x32xf32, #tpu.memory_space<vmem>>, vector<8x32xf32>
    %cst_85 = arith.constant dense<0.000000e+00> : vector<32x8xf32>
    %116 = tpu.matmul %114, %102, %cst_85 {dimension_numbers = #tpu.dot_dimension_numbers<[1], [0], [0], [1], [0, 0, 1, 1], [], []>} : vector<32x16xf32>, vector<16x8xf32>, vector<32x8xf32> -> vector<32x8xf32>
    %cst_86 = arith.constant dense<0.000000e+00> : vector<32x32xf32>
    %117 = tpu.matmul %116, %115, %cst_86 {dimension_numbers = #tpu.dot_dimension_numbers<[1], [0], [0], [1], [0, 0, 1, 1], [], []>} : vector<32x8xf32>, vector<8x32xf32>, vector<32x32xf32> -> vector<32x32xf32>
    %118 = arith.addf %99, %117 : vector<32x32xf32>
    %c0_87 = arith.constant 0 : index
    %c24 = arith.constant 24 : index
    %119 = vector.load %arg14[%c0_87, %c24] : memref<32x32xf32, #tpu.memory_space<vmem>>, vector<32x8xf32>
    %c0_88 = arith.constant 0 : index
    %c24_89 = arith.constant 24 : index
    %120 = vector.load %arg13[%c0_88, %c24_89] : memref<16x256xf32, #tpu.memory_space<vmem>>, vector<16x8xf32>
    %c0_90 = arith.constant 0 : index
    %c56 = arith.constant 56 : index
    %121 = vector.load %arg13[%c0_90, %c56] : memref<16x256xf32, #tpu.memory_space<vmem>>, vector<16x8xf32>
    %cst_91 = arith.constant dense<0.000000e+00> : vector<32x16xf32>
    %122 = tpu.matmul %119, %120, %cst_91 {dimension_numbers = #tpu.dot_dimension_numbers<[1], [1], [0], [0], [0, 0, 1, 0], [], []>} : vector<32x8xf32>, vector<16x8xf32>, vector<32x16xf32> -> vector<32x16xf32>
    %123 = arith.addf %122, %53 : vector<32x16xf32>
    %cst_92 = arith.constant dense<0xFF800000> : vector<32xf32>
    %124 = vector.multi_reduction <maximumf>, %123, %cst_92 [1] : vector<32x16xf32> to vector<32xf32>
    %125 = vector.shape_cast %124 : vector<32xf32> to vector<32x1xf32>
    %126 = vector.broadcast %125 : vector<32x1xf32> to vector<32x16xf32>
    %127 = arith.subf %123, %126 : vector<32x16xf32>
    %128 = math.exp %127 : vector<32x16xf32>
    %cst_93 = arith.constant dense<0.000000e+00> : vector<32xf32>
    %129 = vector.multi_reduction <add>, %128, %cst_93 [1] : vector<32x16xf32> to vector<32xf32>
    %130 = vector.shape_cast %129 : vector<32xf32> to vector<32x1xf32>
    %131 = tpu.reciprocal %130 {approx = true} : vector<32x1xf32> -> vector<32x1xf32>
    %132 = vector.broadcast %131 : vector<32x1xf32> to vector<32x16xf32>
    %133 = arith.mulf %128, %132 : vector<32x16xf32>
    %c56_94 = arith.constant 56 : index
    %c0_95 = arith.constant 0 : index
    %134 = vector.load %arg7[%c56_94, %c0_95] : memref<512x32xf32, #tpu.memory_space<vmem>>, vector<8x32xf32>
    %cst_96 = arith.constant dense<0.000000e+00> : vector<32x8xf32>
    %135 = tpu.matmul %133, %121, %cst_96 {dimension_numbers = #tpu.dot_dimension_numbers<[1], [0], [0], [1], [0, 0, 1, 1], [], []>} : vector<32x16xf32>, vector<16x8xf32>, vector<32x8xf32> -> vector<32x8xf32>
    %cst_97 = arith.constant dense<0.000000e+00> : vector<32x32xf32>
    %136 = tpu.matmul %135, %134, %cst_97 {dimension_numbers = #tpu.dot_dimension_numbers<[1], [0], [0], [1], [0, 0, 1, 1], [], []>} : vector<32x8xf32>, vector<8x32xf32>, vector<32x32xf32> -> vector<32x32xf32>
    %137 = arith.addf %118, %136 : vector<32x32xf32>
    %138 = arith.addf %14, %137 : vector<32x32xf32>
    %cst_98 = arith.constant dense<0.000000e+00> : vector<32xf32>
    %139 = vector.multi_reduction <add>, %138, %cst_98 [1] : vector<32x32xf32> to vector<32xf32>
    %140 = vector.shape_cast %139 : vector<32xf32> to vector<32x1xf32>
    %cst_99 = arith.constant 3.200000e+01 : f32
    %141 = vector.broadcast %cst_99 : f32 to vector<32x1xf32>
    %142 = arith.divf %140, %141 : vector<32x1xf32>
    %143 = vector.broadcast %142 : vector<32x1xf32> to vector<32x32xf32>
    %144 = arith.subf %138, %143 : vector<32x32xf32>
    %145 = arith.mulf %144, %144 : vector<32x32xf32>
    %cst_100 = arith.constant dense<0.000000e+00> : vector<32xf32>
    %146 = vector.multi_reduction <add>, %145, %cst_100 [1] : vector<32x32xf32> to vector<32xf32>
    %147 = vector.shape_cast %146 : vector<32xf32> to vector<32x1xf32>
    %cst_101 = arith.constant 3.200000e+01 : f32
    %148 = vector.broadcast %cst_101 : f32 to vector<32x1xf32>
    %149 = arith.divf %147, %148 : vector<32x1xf32>
    %cst_102 = arith.constant 9.99999974E-6 : f32
    %150 = vector.broadcast %cst_102 : f32 to vector<32x1xf32>
    %151 = arith.addf %149, %150 : vector<32x1xf32>
    %152 = math.rsqrt %151 : vector<32x1xf32>
    %153 = vector.broadcast %152 : vector<32x1xf32> to vector<32x32xf32>
    %154 = arith.mulf %144, %153 : vector<32x32xf32>
    %c12 = arith.constant 12 : index
    %c0_103 = arith.constant 0 : index
    %155 = vector.load %arg10[%c12, %c0_103] : memref<40x32xf32, #tpu.memory_space<vmem>>, vector<1x32xf32>
    %156 = vector.broadcast %155 : vector<1x32xf32> to vector<32x32xf32>
    %157 = arith.mulf %154, %156 : vector<32x32xf32>
    %c13 = arith.constant 13 : index
    %c0_104 = arith.constant 0 : index
    %158 = vector.load %arg10[%c13, %c0_104] : memref<40x32xf32, #tpu.memory_space<vmem>>, vector<1x32xf32>
    %159 = vector.broadcast %158 : vector<1x32xf32> to vector<32x32xf32>
    %160 = arith.addf %157, %159 : vector<32x32xf32>
    %c64_105 = arith.constant 64 : index
    %c0_106 = arith.constant 0 : index
    %161 = vector.load %arg7[%c64_105, %c0_106] : memref<512x32xf32, #tpu.memory_space<vmem>>, vector<32x32xf32>
    %cst_107 = arith.constant dense<0.000000e+00> : vector<32x32xf32>
    %162 = tpu.matmul %160, %161, %cst_107 {dimension_numbers = #tpu.dot_dimension_numbers<[1], [0], [0], [1], [0, 0, 1, 1], [], []>} : vector<32x32xf32>, vector<32x32xf32>, vector<32x32xf32> -> vector<32x32xf32>
    %c10 = arith.constant 10 : index
    %c0_108 = arith.constant 0 : index
    %163 = vector.load %arg10[%c10, %c0_108] : memref<40x32xf32, #tpu.memory_space<vmem>>, vector<1x32xf32>
    %164 = vector.broadcast %163 : vector<1x32xf32> to vector<32x32xf32>
    %165 = arith.addf %162, %164 : vector<32x32xf32>
    %cst_109 = arith.constant 0.000000e+00 : f32
    %166 = vector.broadcast %cst_109 : f32 to vector<32x32xf32>
    %167 = arith.maximumf %165, %166 : vector<32x32xf32>
    %c96_110 = arith.constant 96 : index
    %c0_111 = arith.constant 0 : index
    %168 = vector.load %arg7[%c96_110, %c0_111] : memref<512x32xf32, #tpu.memory_space<vmem>>, vector<32x32xf32>
    %cst_112 = arith.constant dense<0.000000e+00> : vector<32x32xf32>
    %169 = tpu.matmul %167, %168, %cst_112 {dimension_numbers = #tpu.dot_dimension_numbers<[1], [0], [0], [1], [0, 0, 1, 1], [], []>} : vector<32x32xf32>, vector<32x32xf32>, vector<32x32xf32> -> vector<32x32xf32>
    %c11 = arith.constant 11 : index
    %c0_113 = arith.constant 0 : index
    %170 = vector.load %arg10[%c11, %c0_113] : memref<40x32xf32, #tpu.memory_space<vmem>>, vector<1x32xf32>
    %171 = vector.broadcast %170 : vector<1x32xf32> to vector<32x32xf32>
    %172 = arith.addf %169, %171 : vector<32x32xf32>
    %173 = arith.addf %160, %172 : vector<32x32xf32>
    %cst_114 = arith.constant dense<0.000000e+00> : vector<32xf32>
    %174 = vector.multi_reduction <add>, %173, %cst_114 [1] : vector<32x32xf32> to vector<32xf32>
    %175 = vector.shape_cast %174 : vector<32xf32> to vector<32x1xf32>
    %cst_115 = arith.constant 3.200000e+01 : f32
    %176 = vector.broadcast %cst_115 : f32 to vector<32x1xf32>
    %177 = arith.divf %175, %176 : vector<32x1xf32>
    %178 = vector.broadcast %177 : vector<32x1xf32> to vector<32x32xf32>
    %179 = arith.subf %173, %178 : vector<32x32xf32>
    %180 = arith.mulf %179, %179 : vector<32x32xf32>
    %cst_116 = arith.constant dense<0.000000e+00> : vector<32xf32>
    %181 = vector.multi_reduction <add>, %180, %cst_116 [1] : vector<32x32xf32> to vector<32xf32>
    %182 = vector.shape_cast %181 : vector<32xf32> to vector<32x1xf32>
    %cst_117 = arith.constant 3.200000e+01 : f32
    %183 = vector.broadcast %cst_117 : f32 to vector<32x1xf32>
    %184 = arith.divf %182, %183 : vector<32x1xf32>
    %cst_118 = arith.constant 9.99999974E-6 : f32
    %185 = vector.broadcast %cst_118 : f32 to vector<32x1xf32>
    %186 = arith.addf %184, %185 : vector<32x1xf32>
    %187 = math.rsqrt %186 : vector<32x1xf32>
    %188 = vector.broadcast %187 : vector<32x1xf32> to vector<32x32xf32>
    %189 = arith.mulf %179, %188 : vector<32x32xf32>
    %c14 = arith.constant 14 : index
    %c0_119 = arith.constant 0 : index
    %190 = vector.load %arg10[%c14, %c0_119] : memref<40x32xf32, #tpu.memory_space<vmem>>, vector<1x32xf32>
    %191 = vector.broadcast %190 : vector<1x32xf32> to vector<32x32xf32>
    %192 = arith.mulf %189, %191 : vector<32x32xf32>
    %c15_120 = arith.constant 15 : index
    %c0_121 = arith.constant 0 : index
    %193 = vector.load %arg10[%c15_120, %c0_121] : memref<40x32xf32, #tpu.memory_space<vmem>>, vector<1x32xf32>
    %194 = vector.broadcast %193 : vector<1x32xf32> to vector<32x32xf32>
    %195 = arith.addf %192, %194 : vector<32x32xf32>
    %c128_122 = arith.constant 128 : index
    %c0_123 = arith.constant 0 : index
    %196 = vector.load %arg7[%c128_122, %c0_123] : memref<512x32xf32, #tpu.memory_space<vmem>>, vector<32x32xf32>
    %cst_124 = arith.constant dense<0.000000e+00> : vector<32x32xf32>
    %197 = tpu.matmul %195, %196, %cst_124 {dimension_numbers = #tpu.dot_dimension_numbers<[1], [0], [0], [1], [0, 0, 1, 1], [], []>} : vector<32x32xf32>, vector<32x32xf32>, vector<32x32xf32> -> vector<32x32xf32>
    %c16_125 = arith.constant 16 : index
    %c0_126 = arith.constant 0 : index
    %198 = vector.load %arg10[%c16_125, %c0_126] : memref<40x32xf32, #tpu.memory_space<vmem>>, vector<1x32xf32>
    %199 = vector.broadcast %198 : vector<1x32xf32> to vector<32x32xf32>
    %200 = arith.addf %197, %199 : vector<32x32xf32>
    %c0_127 = arith.constant 0 : index
    %c0_128 = arith.constant 0 : index
    %201 = vector.load %arg14[%c0_127, %c0_128] : memref<32x32xf32, #tpu.memory_space<vmem>>, vector<32x32xf32>
    tpu.vector_store %arg14[%c0_127, %c0_128], %200 {strides = array<i32>} : memref<32x32xf32, #tpu.memory_space<vmem>>, vector<32x32xf32>,
    %c17 = arith.constant 17 : index
    %c0_129 = arith.constant 0 : index
    %202 = vector.load %arg10[%c17, %c0_129] : memref<40x32xf32, #tpu.memory_space<vmem>>, vector<1x32xf32>
    %c0_130 = arith.constant 0 : index
    %c0_131 = arith.constant 0 : index
    %203 = vector.load %arg14[%c0_130, %c0_131] : memref<32x32xf32, #tpu.memory_space<vmem>>, vector<32x8xf32>
    %c0_132 = arith.constant 0 : index
    %c64_133 = arith.constant 64 : index
    %204 = vector.load %arg13[%c0_132, %c64_133] : memref<16x256xf32, #tpu.memory_space<vmem>>, vector<16x8xf32>
    %c0_134 = arith.constant 0 : index
    %c96_135 = arith.constant 96 : index
    %205 = vector.load %arg13[%c0_134, %c96_135] : memref<16x256xf32, #tpu.memory_space<vmem>>, vector<16x8xf32>
    %cst_136 = arith.constant dense<0.000000e+00> : vector<32x16xf32>
    %206 = tpu.matmul %203, %204, %cst_136 {dimension_numbers = #tpu.dot_dimension_numbers<[1], [1], [0], [0], [0, 0, 1, 0], [], []>} : vector<32x8xf32>, vector<16x8xf32>, vector<32x16xf32> -> vector<32x16xf32>
    %207 = arith.addf %206, %53 : vector<32x16xf32>
    %cst_137 = arith.constant dense<0xFF800000> : vector<32xf32>
    %208 = vector.multi_reduction <maximumf>, %207, %cst_137 [1] : vector<32x16xf32> to vector<32xf32>
    %209 = vector.shape_cast %208 : vector<32xf32> to vector<32x1xf32>
    %210 = vector.broadcast %209 : vector<32x1xf32> to vector<32x16xf32>
    %211 = arith.subf %207, %210 : vector<32x16xf32>
    %212 = math.exp %211 : vector<32x16xf32>
    %cst_138 = arith.constant dense<0.000000e+00> : vector<32xf32>
    %213 = vector.multi_reduction <add>, %212, %cst_138 [1] : vector<32x16xf32> to vector<32xf32>
    %214 = vector.shape_cast %213 : vector<32xf32> to vector<32x1xf32>
    %215 = tpu.reciprocal %214 {approx = true} : vector<32x1xf32> -> vector<32x1xf32>
    %216 = vector.broadcast %215 : vector<32x1xf32> to vector<32x16xf32>
    %217 = arith.mulf %212, %216 : vector<32x16xf32>
    %c160_139 = arith.constant 160 : index
    %c0_140 = arith.constant 0 : index
    %218 = vector.load %arg7[%c160_139, %c0_140] : memref<512x32xf32, #tpu.memory_space<vmem>>, vector<8x32xf32>
    %cst_141 = arith.constant dense<0.000000e+00> : vector<32x8xf32>
    %219 = tpu.matmul %217, %205, %cst_141 {dimension_numbers = #tpu.dot_dimension_numbers<[1], [0], [0], [1], [0, 0, 1, 1], [], []>} : vector<32x16xf32>, vector<16x8xf32>, vector<32x8xf32> -> vector<32x8xf32>
    %cst_142 = arith.constant dense<0.000000e+00> : vector<32x32xf32>
    %220 = tpu.matmul %219, %218, %cst_142 {dimension_numbers = #tpu.dot_dimension_numbers<[1], [0], [0], [1], [0, 0, 1, 1], [], []>} : vector<32x8xf32>, vector<8x32xf32>, vector<32x32xf32> -> vector<32x32xf32>
    %221 = vector.broadcast %202 : vector<1x32xf32> to vector<32x32xf32>
    %222 = arith.addf %221, %220 : vector<32x32xf32>
    %c0_143 = arith.constant 0 : index
    %c8_144 = arith.constant 8 : index
    %223 = vector.load %arg14[%c0_143, %c8_144] : memref<32x32xf32, #tpu.memory_space<vmem>>, vector<32x8xf32>
    %c0_145 = arith.constant 0 : index
    %c72 = arith.constant 72 : index
    %224 = vector.load %arg13[%c0_145, %c72] : memref<16x256xf32, #tpu.memory_space<vmem>>, vector<16x8xf32>
    %c0_146 = arith.constant 0 : index
    %c104 = arith.constant 104 : index
    %225 = vector.load %arg13[%c0_146, %c104] : memref<16x256xf32, #tpu.memory_space<vmem>>, vector<16x8xf32>
    %cst_147 = arith.constant dense<0.000000e+00> : vector<32x16xf32>
    %226 = tpu.matmul %223, %224, %cst_147 {dimension_numbers = #tpu.dot_dimension_numbers<[1], [1], [0], [0], [0, 0, 1, 0], [], []>} : vector<32x8xf32>, vector<16x8xf32>, vector<32x16xf32> -> vector<32x16xf32>
    %227 = arith.addf %226, %53 : vector<32x16xf32>
    %cst_148 = arith.constant dense<0xFF800000> : vector<32xf32>
    %228 = vector.multi_reduction <maximumf>, %227, %cst_148 [1] : vector<32x16xf32> to vector<32xf32>
    %229 = vector.shape_cast %228 : vector<32xf32> to vector<32x1xf32>
    %230 = vector.broadcast %229 : vector<32x1xf32> to vector<32x16xf32>
    %231 = arith.subf %227, %230 : vector<32x16xf32>
    %232 = math.exp %231 : vector<32x16xf32>
    %cst_149 = arith.constant dense<0.000000e+00> : vector<32xf32>
    %233 = vector.multi_reduction <add>, %232, %cst_149 [1] : vector<32x16xf32> to vector<32xf32>
    %234 = vector.shape_cast %233 : vector<32xf32> to vector<32x1xf32>
    %235 = tpu.reciprocal %234 {approx = true} : vector<32x1xf32> -> vector<32x1xf32>
    %236 = vector.broadcast %235 : vector<32x1xf32> to vector<32x16xf32>
    %237 = arith.mulf %232, %236 : vector<32x16xf32>
    %c168 = arith.constant 168 : index
    %c0_150 = arith.constant 0 : index
    %238 = vector.load %arg7[%c168, %c0_150] : memref<512x32xf32, #tpu.memory_space<vmem>>, vector<8x32xf32>
    %cst_151 = arith.constant dense<0.000000e+00> : vector<32x8xf32>
    %239 = tpu.matmul %237, %225, %cst_151 {dimension_numbers = #tpu.dot_dimension_numbers<[1], [0], [0], [1], [0, 0, 1, 1], [], []>} : vector<32x16xf32>, vector<16x8xf32>, vector<32x8xf32> -> vector<32x8xf32>
    %cst_152 = arith.constant dense<0.000000e+00> : vector<32x32xf32>
    %240 = tpu.matmul %239, %238, %cst_152 {dimension_numbers = #tpu.dot_dimension_numbers<[1], [0], [0], [1], [0, 0, 1, 1], [], []>} : vector<32x8xf32>, vector<8x32xf32>, vector<32x32xf32> -> vector<32x32xf32>
    %241 = arith.addf %222, %240 : vector<32x32xf32>
    %c0_153 = arith.constant 0 : index
    %c16_154 = arith.constant 16 : index
    %242 = vector.load %arg14[%c0_153, %c16_154] : memref<32x32xf32, #tpu.memory_space<vmem>>, vector<32x8xf32>
    %c0_155 = arith.constant 0 : index
    %c80 = arith.constant 80 : index
    %243 = vector.load %arg13[%c0_155, %c80] : memref<16x256xf32, #tpu.memory_space<vmem>>, vector<16x8xf32>
    %c0_156 = arith.constant 0 : index
    %c112 = arith.constant 112 : index
    %244 = vector.load %arg13[%c0_156, %c112] : memref<16x256xf32, #tpu.memory_space<vmem>>, vector<16x8xf32>
    %cst_157 = arith.constant dense<0.000000e+00> : vector<32x16xf32>
    %245 = tpu.matmul %242, %243, %cst_157 {dimension_numbers = #tpu.dot_dimension_numbers<[1], [1], [0], [0], [0, 0, 1, 0], [], []>} : vector<32x8xf32>, vector<16x8xf32>, vector<32x16xf32> -> vector<32x16xf32>
    %246 = arith.addf %245, %53 : vector<32x16xf32>
    %cst_158 = arith.constant dense<0xFF800000> : vector<32xf32>
    %247 = vector.multi_reduction <maximumf>, %246, %cst_158 [1] : vector<32x16xf32> to vector<32xf32>
    %248 = vector.shape_cast %247 : vector<32xf32> to vector<32x1xf32>
    %249 = vector.broadcast %248 : vector<32x1xf32> to vector<32x16xf32>
    %250 = arith.subf %246, %249 : vector<32x16xf32>
    %251 = math.exp %250 : vector<32x16xf32>
    %cst_159 = arith.constant dense<0.000000e+00> : vector<32xf32>
    %252 = vector.multi_reduction <add>, %251, %cst_159 [1] : vector<32x16xf32> to vector<32xf32>
    %253 = vector.shape_cast %252 : vector<32xf32> to vector<32x1xf32>
    %254 = tpu.reciprocal %253 {approx = true} : vector<32x1xf32> -> vector<32x1xf32>
    %255 = vector.broadcast %254 : vector<32x1xf32> to vector<32x16xf32>
    %256 = arith.mulf %251, %255 : vector<32x16xf32>
    %c176 = arith.constant 176 : index
    %c0_160 = arith.constant 0 : index
    %257 = vector.load %arg7[%c176, %c0_160] : memref<512x32xf32, #tpu.memory_space<vmem>>, vector<8x32xf32>
    %cst_161 = arith.constant dense<0.000000e+00> : vector<32x8xf32>
    %258 = tpu.matmul %256, %244, %cst_161 {dimension_numbers = #tpu.dot_dimension_numbers<[1], [0], [0], [1], [0, 0, 1, 1], [], []>} : vector<32x16xf32>, vector<16x8xf32>, vector<32x8xf32> -> vector<32x8xf32>
    %cst_162 = arith.constant dense<0.000000e+00> : vector<32x32xf32>
    %259 = tpu.matmul %258, %257, %cst_162 {dimension_numbers = #tpu.dot_dimension_numbers<[1], [0], [0], [1], [0, 0, 1, 1], [], []>} : vector<32x8xf32>, vector<8x32xf32>, vector<32x32xf32> -> vector<32x32xf32>
    %260 = arith.addf %241, %259 : vector<32x32xf32>
    %c0_163 = arith.constant 0 : index
    %c24_164 = arith.constant 24 : index
    %261 = vector.load %arg14[%c0_163, %c24_164] : memref<32x32xf32, #tpu.memory_space<vmem>>, vector<32x8xf32>
    %c0_165 = arith.constant 0 : index
    %c88 = arith.constant 88 : index
    %262 = vector.load %arg13[%c0_165, %c88] : memref<16x256xf32, #tpu.memory_space<vmem>>, vector<16x8xf32>
    %c0_166 = arith.constant 0 : index
    %c120 = arith.constant 120 : index
    %263 = vector.load %arg13[%c0_166, %c120] : memref<16x256xf32, #tpu.memory_space<vmem>>, vector<16x8xf32>
    %cst_167 = arith.constant dense<0.000000e+00> : vector<32x16xf32>
    %264 = tpu.matmul %261, %262, %cst_167 {dimension_numbers = #tpu.dot_dimension_numbers<[1], [1], [0], [0], [0, 0, 1, 0], [], []>} : vector<32x8xf32>, vector<16x8xf32>, vector<32x16xf32> -> vector<32x16xf32>
    %265 = arith.addf %264, %53 : vector<32x16xf32>
    %cst_168 = arith.constant dense<0xFF800000> : vector<32xf32>
    %266 = vector.multi_reduction <maximumf>, %265, %cst_168 [1] : vector<32x16xf32> to vector<32xf32>
    %267 = vector.shape_cast %266 : vector<32xf32> to vector<32x1xf32>
    %268 = vector.broadcast %267 : vector<32x1xf32> to vector<32x16xf32>
    %269 = arith.subf %265, %268 : vector<32x16xf32>
    %270 = math.exp %269 : vector<32x16xf32>
    %cst_169 = arith.constant dense<0.000000e+00> : vector<32xf32>
    %271 = vector.multi_reduction <add>, %270, %cst_169 [1] : vector<32x16xf32> to vector<32xf32>
    %272 = vector.shape_cast %271 : vector<32xf32> to vector<32x1xf32>
    %273 = tpu.reciprocal %272 {approx = true} : vector<32x1xf32> -> vector<32x1xf32>
    %274 = vector.broadcast %273 : vector<32x1xf32> to vector<32x16xf32>
    %275 = arith.mulf %270, %274 : vector<32x16xf32>
    %c184 = arith.constant 184 : index
    %c0_170 = arith.constant 0 : index
    %276 = vector.load %arg7[%c184, %c0_170] : memref<512x32xf32, #tpu.memory_space<vmem>>, vector<8x32xf32>
    %cst_171 = arith.constant dense<0.000000e+00> : vector<32x8xf32>
    %277 = tpu.matmul %275, %263, %cst_171 {dimension_numbers = #tpu.dot_dimension_numbers<[1], [0], [0], [1], [0, 0, 1, 1], [], []>} : vector<32x16xf32>, vector<16x8xf32>, vector<32x8xf32> -> vector<32x8xf32>
    %cst_172 = arith.constant dense<0.000000e+00> : vector<32x32xf32>
    %278 = tpu.matmul %277, %276, %cst_172 {dimension_numbers = #tpu.dot_dimension_numbers<[1], [0], [0], [1], [0, 0, 1, 1], [], []>} : vector<32x8xf32>, vector<8x32xf32>, vector<32x32xf32> -> vector<32x32xf32>
    %279 = arith.addf %260, %278 : vector<32x32xf32>
    %280 = arith.addf %195, %279 : vector<32x32xf32>
    %cst_173 = arith.constant dense<0.000000e+00> : vector<32xf32>
    %281 = vector.multi_reduction <add>, %280, %cst_173 [1] : vector<32x32xf32> to vector<32xf32>
    %282 = vector.shape_cast %281 : vector<32xf32> to vector<32x1xf32>
    %cst_174 = arith.constant 3.200000e+01 : f32
    %283 = vector.broadcast %cst_174 : f32 to vector<32x1xf32>
    %284 = arith.divf %282, %283 : vector<32x1xf32>
    %285 = vector.broadcast %284 : vector<32x1xf32> to vector<32x32xf32>
    %286 = arith.subf %280, %285 : vector<32x32xf32>
    %287 = arith.mulf %286, %286 : vector<32x32xf32>
    %cst_175 = arith.constant dense<0.000000e+00> : vector<32xf32>
    %288 = vector.multi_reduction <add>, %287, %cst_175 [1] : vector<32x32xf32> to vector<32xf32>
    %289 = vector.shape_cast %288 : vector<32xf32> to vector<32x1xf32>
    %cst_176 = arith.constant 3.200000e+01 : f32
    %290 = vector.broadcast %cst_176 : f32 to vector<32x1xf32>
    %291 = arith.divf %289, %290 : vector<32x1xf32>
    %cst_177 = arith.constant 9.99999974E-6 : f32
    %292 = vector.broadcast %cst_177 : f32 to vector<32x1xf32>
    %293 = arith.addf %291, %292 : vector<32x1xf32>
    %294 = math.rsqrt %293 : vector<32x1xf32>
    %295 = vector.broadcast %294 : vector<32x1xf32> to vector<32x32xf32>
    %296 = arith.mulf %286, %295 : vector<32x32xf32>
    %c20 = arith.constant 20 : index
    %c0_178 = arith.constant 0 : index
    %297 = vector.load %arg10[%c20, %c0_178] : memref<40x32xf32, #tpu.memory_space<vmem>>, vector<1x32xf32>
    %298 = vector.broadcast %297 : vector<1x32xf32> to vector<32x32xf32>
    %299 = arith.mulf %296, %298 : vector<32x32xf32>
    %c21 = arith.constant 21 : index
    %c0_179 = arith.constant 0 : index
    %300 = vector.load %arg10[%c21, %c0_179] : memref<40x32xf32, #tpu.memory_space<vmem>>, vector<1x32xf32>
    %301 = vector.broadcast %300 : vector<1x32xf32> to vector<32x32xf32>
    %302 = arith.addf %299, %301 : vector<32x32xf32>
    %c192 = arith.constant 192 : index
    %c0_180 = arith.constant 0 : index
    %303 = vector.load %arg7[%c192, %c0_180] : memref<512x32xf32, #tpu.memory_space<vmem>>, vector<32x32xf32>
    %cst_181 = arith.constant dense<0.000000e+00> : vector<32x32xf32>
    %304 = tpu.matmul %302, %303, %cst_181 {dimension_numbers = #tpu.dot_dimension_numbers<[1], [0], [0], [1], [0, 0, 1, 1], [], []>} : vector<32x32xf32>, vector<32x32xf32>, vector<32x32xf32> -> vector<32x32xf32>
    %c18 = arith.constant 18 : index
    %c0_182 = arith.constant 0 : index
    %305 = vector.load %arg10[%c18, %c0_182] : memref<40x32xf32, #tpu.memory_space<vmem>>, vector<1x32xf32>
    %306 = vector.broadcast %305 : vector<1x32xf32> to vector<32x32xf32>
    %307 = arith.addf %304, %306 : vector<32x32xf32>
    %cst_183 = arith.constant 0.000000e+00 : f32
    %308 = vector.broadcast %cst_183 : f32 to vector<32x32xf32>
    %309 = arith.maximumf %307, %308 : vector<32x32xf32>
    %c224 = arith.constant 224 : index
    %c0_184 = arith.constant 0 : index
    %310 = vector.load %arg7[%c224, %c0_184] : memref<512x32xf32, #tpu.memory_space<vmem>>, vector<32x32xf32>
    %cst_185 = arith.constant dense<0.000000e+00> : vector<32x32xf32>
    %311 = tpu.matmul %309, %310, %cst_185 {dimension_numbers = #tpu.dot_dimension_numbers<[1], [0], [0], [1], [0, 0, 1, 1], [], []>} : vector<32x32xf32>, vector<32x32xf32>, vector<32x32xf32> -> vector<32x32xf32>
    %c19 = arith.constant 19 : index
    %c0_186 = arith.constant 0 : index
    %312 = vector.load %arg10[%c19, %c0_186] : memref<40x32xf32, #tpu.memory_space<vmem>>, vector<1x32xf32>
    %313 = vector.broadcast %312 : vector<1x32xf32> to vector<32x32xf32>
    %314 = arith.addf %311, %313 : vector<32x32xf32>
    %315 = arith.addf %302, %314 : vector<32x32xf32>
    %cst_187 = arith.constant dense<0.000000e+00> : vector<32xf32>
    %316 = vector.multi_reduction <add>, %315, %cst_187 [1] : vector<32x32xf32> to vector<32xf32>
    %317 = vector.shape_cast %316 : vector<32xf32> to vector<32x1xf32>
    %cst_188 = arith.constant 3.200000e+01 : f32
    %318 = vector.broadcast %cst_188 : f32 to vector<32x1xf32>
    %319 = arith.divf %317, %318 : vector<32x1xf32>
    %320 = vector.broadcast %319 : vector<32x1xf32> to vector<32x32xf32>
    %321 = arith.subf %315, %320 : vector<32x32xf32>
    %322 = arith.mulf %321, %321 : vector<32x32xf32>
    %cst_189 = arith.constant dense<0.000000e+00> : vector<32xf32>
    %323 = vector.multi_reduction <add>, %322, %cst_189 [1] : vector<32x32xf32> to vector<32xf32>
    %324 = vector.shape_cast %323 : vector<32xf32> to vector<32x1xf32>
    %cst_190 = arith.constant 3.200000e+01 : f32
    %325 = vector.broadcast %cst_190 : f32 to vector<32x1xf32>
    %326 = arith.divf %324, %325 : vector<32x1xf32>
    %cst_191 = arith.constant 9.99999974E-6 : f32
    %327 = vector.broadcast %cst_191 : f32 to vector<32x1xf32>
    %328 = arith.addf %326, %327 : vector<32x1xf32>
    %329 = math.rsqrt %328 : vector<32x1xf32>
    %330 = vector.broadcast %329 : vector<32x1xf32> to vector<32x32xf32>
    %331 = arith.mulf %321, %330 : vector<32x32xf32>
    %c22 = arith.constant 22 : index
    %c0_192 = arith.constant 0 : index
    %332 = vector.load %arg10[%c22, %c0_192] : memref<40x32xf32, #tpu.memory_space<vmem>>, vector<1x32xf32>
    %333 = vector.broadcast %332 : vector<1x32xf32> to vector<32x32xf32>
    %334 = arith.mulf %331, %333 : vector<32x32xf32>
    %c23 = arith.constant 23 : index
    %c0_193 = arith.constant 0 : index
    %335 = vector.load %arg10[%c23, %c0_193] : memref<40x32xf32, #tpu.memory_space<vmem>>, vector<1x32xf32>
    %336 = vector.broadcast %335 : vector<1x32xf32> to vector<32x32xf32>
    %337 = arith.addf %334, %336 : vector<32x32xf32>
    %c256 = arith.constant 256 : index
    %c0_194 = arith.constant 0 : index
    %338 = vector.load %arg7[%c256, %c0_194] : memref<512x32xf32, #tpu.memory_space<vmem>>, vector<32x32xf32>
    %cst_195 = arith.constant dense<0.000000e+00> : vector<32x32xf32>
    %339 = tpu.matmul %337, %338, %cst_195 {dimension_numbers = #tpu.dot_dimension_numbers<[1], [0], [0], [1], [0, 0, 1, 1], [], []>} : vector<32x32xf32>, vector<32x32xf32>, vector<32x32xf32> -> vector<32x32xf32>
    %c24_196 = arith.constant 24 : index
    %c0_197 = arith.constant 0 : index
    %340 = vector.load %arg10[%c24_196, %c0_197] : memref<40x32xf32, #tpu.memory_space<vmem>>, vector<1x32xf32>
    %341 = vector.broadcast %340 : vector<1x32xf32> to vector<32x32xf32>
    %342 = arith.addf %339, %341 : vector<32x32xf32>
    %c0_198 = arith.constant 0 : index
    %c0_199 = arith.constant 0 : index
    %343 = vector.load %arg14[%c0_198, %c0_199] : memref<32x32xf32, #tpu.memory_space<vmem>>, vector<32x32xf32>
    tpu.vector_store %arg14[%c0_198, %c0_199], %342 {strides = array<i32>} : memref<32x32xf32, #tpu.memory_space<vmem>>, vector<32x32xf32>,
    %c25 = arith.constant 25 : index
    %c0_200 = arith.constant 0 : index
    %344 = vector.load %arg10[%c25, %c0_200] : memref<40x32xf32, #tpu.memory_space<vmem>>, vector<1x32xf32>
    %c0_201 = arith.constant 0 : index
    %c0_202 = arith.constant 0 : index
    %345 = vector.load %arg14[%c0_201, %c0_202] : memref<32x32xf32, #tpu.memory_space<vmem>>, vector<32x8xf32>
    %c0_203 = arith.constant 0 : index
    %c128_204 = arith.constant 128 : index
    %346 = vector.load %arg13[%c0_203, %c128_204] : memref<16x256xf32, #tpu.memory_space<vmem>>, vector<16x8xf32>
    %c0_205 = arith.constant 0 : index
    %c160_206 = arith.constant 160 : index
    %347 = vector.load %arg13[%c0_205, %c160_206] : memref<16x256xf32, #tpu.memory_space<vmem>>, vector<16x8xf32>
    %cst_207 = arith.constant dense<0.000000e+00> : vector<32x16xf32>
    %348 = tpu.matmul %345, %346, %cst_207 {dimension_numbers = #tpu.dot_dimension_numbers<[1], [1], [0], [0], [0, 0, 1, 0], [], []>} : vector<32x8xf32>, vector<16x8xf32>, vector<32x16xf32> -> vector<32x16xf32>
    %349 = arith.addf %348, %53 : vector<32x16xf32>
    %cst_208 = arith.constant dense<0xFF800000> : vector<32xf32>
    %350 = vector.multi_reduction <maximumf>, %349, %cst_208 [1] : vector<32x16xf32> to vector<32xf32>
    %351 = vector.shape_cast %350 : vector<32xf32> to vector<32x1xf32>
    %352 = vector.broadcast %351 : vector<32x1xf32> to vector<32x16xf32>
    %353 = arith.subf %349, %352 : vector<32x16xf32>
    %354 = math.exp %353 : vector<32x16xf32>
    %cst_209 = arith.constant dense<0.000000e+00> : vector<32xf32>
    %355 = vector.multi_reduction <add>, %354, %cst_209 [1] : vector<32x16xf32> to vector<32xf32>
    %356 = vector.shape_cast %355 : vector<32xf32> to vector<32x1xf32>
    %357 = tpu.reciprocal %356 {approx = true} : vector<32x1xf32> -> vector<32x1xf32>
    %358 = vector.broadcast %357 : vector<32x1xf32> to vector<32x16xf32>
    %359 = arith.mulf %354, %358 : vector<32x16xf32>
    %c288 = arith.constant 288 : index
    %c0_210 = arith.constant 0 : index
    %360 = vector.load %arg7[%c288, %c0_210] : memref<512x32xf32, #tpu.memory_space<vmem>>, vector<8x32xf32>
    %cst_211 = arith.constant dense<0.000000e+00> : vector<32x8xf32>
    %361 = tpu.matmul %359, %347, %cst_211 {dimension_numbers = #tpu.dot_dimension_numbers<[1], [0], [0], [1], [0, 0, 1, 1], [], []>} : vector<32x16xf32>, vector<16x8xf32>, vector<32x8xf32> -> vector<32x8xf32>
    %cst_212 = arith.constant dense<0.000000e+00> : vector<32x32xf32>
    %362 = tpu.matmul %361, %360, %cst_212 {dimension_numbers = #tpu.dot_dimension_numbers<[1], [0], [0], [1], [0, 0, 1, 1], [], []>} : vector<32x8xf32>, vector<8x32xf32>, vector<32x32xf32> -> vector<32x32xf32>
    %363 = vector.broadcast %344 : vector<1x32xf32> to vector<32x32xf32>
    %364 = arith.addf %363, %362 : vector<32x32xf32>
    %c0_213 = arith.constant 0 : index
    %c8_214 = arith.constant 8 : index
    %365 = vector.load %arg14[%c0_213, %c8_214] : memref<32x32xf32, #tpu.memory_space<vmem>>, vector<32x8xf32>
    %c0_215 = arith.constant 0 : index
    %c136 = arith.constant 136 : index
    %366 = vector.load %arg13[%c0_215, %c136] : memref<16x256xf32, #tpu.memory_space<vmem>>, vector<16x8xf32>
    %c0_216 = arith.constant 0 : index
    %c168_217 = arith.constant 168 : index
    %367 = vector.load %arg13[%c0_216, %c168_217] : memref<16x256xf32, #tpu.memory_space<vmem>>, vector<16x8xf32>
    %cst_218 = arith.constant dense<0.000000e+00> : vector<32x16xf32>
    %368 = tpu.matmul %365, %366, %cst_218 {dimension_numbers = #tpu.dot_dimension_numbers<[1], [1], [0], [0], [0, 0, 1, 0], [], []>} : vector<32x8xf32>, vector<16x8xf32>, vector<32x16xf32> -> vector<32x16xf32>
    %369 = arith.addf %368, %53 : vector<32x16xf32>
    %cst_219 = arith.constant dense<0xFF800000> : vector<32xf32>
    %370 = vector.multi_reduction <maximumf>, %369, %cst_219 [1] : vector<32x16xf32> to vector<32xf32>
    %371 = vector.shape_cast %370 : vector<32xf32> to vector<32x1xf32>
    %372 = vector.broadcast %371 : vector<32x1xf32> to vector<32x16xf32>
    %373 = arith.subf %369, %372 : vector<32x16xf32>
    %374 = math.exp %373 : vector<32x16xf32>
    %cst_220 = arith.constant dense<0.000000e+00> : vector<32xf32>
    %375 = vector.multi_reduction <add>, %374, %cst_220 [1] : vector<32x16xf32> to vector<32xf32>
    %376 = vector.shape_cast %375 : vector<32xf32> to vector<32x1xf32>
    %377 = tpu.reciprocal %376 {approx = true} : vector<32x1xf32> -> vector<32x1xf32>
    %378 = vector.broadcast %377 : vector<32x1xf32> to vector<32x16xf32>
    %379 = arith.mulf %374, %378 : vector<32x16xf32>
    %c296 = arith.constant 296 : index
    %c0_221 = arith.constant 0 : index
    %380 = vector.load %arg7[%c296, %c0_221] : memref<512x32xf32, #tpu.memory_space<vmem>>, vector<8x32xf32>
    %cst_222 = arith.constant dense<0.000000e+00> : vector<32x8xf32>
    %381 = tpu.matmul %379, %367, %cst_222 {dimension_numbers = #tpu.dot_dimension_numbers<[1], [0], [0], [1], [0, 0, 1, 1], [], []>} : vector<32x16xf32>, vector<16x8xf32>, vector<32x8xf32> -> vector<32x8xf32>
    %cst_223 = arith.constant dense<0.000000e+00> : vector<32x32xf32>
    %382 = tpu.matmul %381, %380, %cst_223 {dimension_numbers = #tpu.dot_dimension_numbers<[1], [0], [0], [1], [0, 0, 1, 1], [], []>} : vector<32x8xf32>, vector<8x32xf32>, vector<32x32xf32> -> vector<32x32xf32>
    %383 = arith.addf %364, %382 : vector<32x32xf32>
    %c0_224 = arith.constant 0 : index
    %c16_225 = arith.constant 16 : index
    %384 = vector.load %arg14[%c0_224, %c16_225] : memref<32x32xf32, #tpu.memory_space<vmem>>, vector<32x8xf32>
    %c0_226 = arith.constant 0 : index
    %c144 = arith.constant 144 : index
    %385 = vector.load %arg13[%c0_226, %c144] : memref<16x256xf32, #tpu.memory_space<vmem>>, vector<16x8xf32>
    %c0_227 = arith.constant 0 : index
    %c176_228 = arith.constant 176 : index
    %386 = vector.load %arg13[%c0_227, %c176_228] : memref<16x256xf32, #tpu.memory_space<vmem>>, vector<16x8xf32>
    %cst_229 = arith.constant dense<0.000000e+00> : vector<32x16xf32>
    %387 = tpu.matmul %384, %385, %cst_229 {dimension_numbers = #tpu.dot_dimension_numbers<[1], [1], [0], [0], [0, 0, 1, 0], [], []>} : vector<32x8xf32>, vector<16x8xf32>, vector<32x16xf32> -> vector<32x16xf32>
    %388 = arith.addf %387, %53 : vector<32x16xf32>
    %cst_230 = arith.constant dense<0xFF800000> : vector<32xf32>
    %389 = vector.multi_reduction <maximumf>, %388, %cst_230 [1] : vector<32x16xf32> to vector<32xf32>
    %390 = vector.shape_cast %389 : vector<32xf32> to vector<32x1xf32>
    %391 = vector.broadcast %390 : vector<32x1xf32> to vector<32x16xf32>
    %392 = arith.subf %388, %391 : vector<32x16xf32>
    %393 = math.exp %392 : vector<32x16xf32>
    %cst_231 = arith.constant dense<0.000000e+00> : vector<32xf32>
    %394 = vector.multi_reduction <add>, %393, %cst_231 [1] : vector<32x16xf32> to vector<32xf32>
    %395 = vector.shape_cast %394 : vector<32xf32> to vector<32x1xf32>
    %396 = tpu.reciprocal %395 {approx = true} : vector<32x1xf32> -> vector<32x1xf32>
    %397 = vector.broadcast %396 : vector<32x1xf32> to vector<32x16xf32>
    %398 = arith.mulf %393, %397 : vector<32x16xf32>
    %c304 = arith.constant 304 : index
    %c0_232 = arith.constant 0 : index
    %399 = vector.load %arg7[%c304, %c0_232] : memref<512x32xf32, #tpu.memory_space<vmem>>, vector<8x32xf32>
    %cst_233 = arith.constant dense<0.000000e+00> : vector<32x8xf32>
    %400 = tpu.matmul %398, %386, %cst_233 {dimension_numbers = #tpu.dot_dimension_numbers<[1], [0], [0], [1], [0, 0, 1, 1], [], []>} : vector<32x16xf32>, vector<16x8xf32>, vector<32x8xf32> -> vector<32x8xf32>
    %cst_234 = arith.constant dense<0.000000e+00> : vector<32x32xf32>
    %401 = tpu.matmul %400, %399, %cst_234 {dimension_numbers = #tpu.dot_dimension_numbers<[1], [0], [0], [1], [0, 0, 1, 1], [], []>} : vector<32x8xf32>, vector<8x32xf32>, vector<32x32xf32> -> vector<32x32xf32>
    %402 = arith.addf %383, %401 : vector<32x32xf32>
    %c0_235 = arith.constant 0 : index
    %c24_236 = arith.constant 24 : index
    %403 = vector.load %arg14[%c0_235, %c24_236] : memref<32x32xf32, #tpu.memory_space<vmem>>, vector<32x8xf32>
    %c0_237 = arith.constant 0 : index
    %c152 = arith.constant 152 : index
    %404 = vector.load %arg13[%c0_237, %c152] : memref<16x256xf32, #tpu.memory_space<vmem>>, vector<16x8xf32>
    %c0_238 = arith.constant 0 : index
    %c184_239 = arith.constant 184 : index
    %405 = vector.load %arg13[%c0_238, %c184_239] : memref<16x256xf32, #tpu.memory_space<vmem>>, vector<16x8xf32>
    %cst_240 = arith.constant dense<0.000000e+00> : vector<32x16xf32>
    %406 = tpu.matmul %403, %404, %cst_240 {dimension_numbers = #tpu.dot_dimension_numbers<[1], [1], [0], [0], [0, 0, 1, 0], [], []>} : vector<32x8xf32>, vector<16x8xf32>, vector<32x16xf32> -> vector<32x16xf32>
    %407 = arith.addf %406, %53 : vector<32x16xf32>
    %cst_241 = arith.constant dense<0xFF800000> : vector<32xf32>
    %408 = vector.multi_reduction <maximumf>, %407, %cst_241 [1] : vector<32x16xf32> to vector<32xf32>
    %409 = vector.shape_cast %408 : vector<32xf32> to vector<32x1xf32>
    %410 = vector.broadcast %409 : vector<32x1xf32> to vector<32x16xf32>
    %411 = arith.subf %407, %410 : vector<32x16xf32>
    %412 = math.exp %411 : vector<32x16xf32>
    %cst_242 = arith.constant dense<0.000000e+00> : vector<32xf32>
    %413 = vector.multi_reduction <add>, %412, %cst_242 [1] : vector<32x16xf32> to vector<32xf32>
    %414 = vector.shape_cast %413 : vector<32xf32> to vector<32x1xf32>
    %415 = tpu.reciprocal %414 {approx = true} : vector<32x1xf32> -> vector<32x1xf32>
    %416 = vector.broadcast %415 : vector<32x1xf32> to vector<32x16xf32>
    %417 = arith.mulf %412, %416 : vector<32x16xf32>
    %c312 = arith.constant 312 : index
    %c0_243 = arith.constant 0 : index
    %418 = vector.load %arg7[%c312, %c0_243] : memref<512x32xf32, #tpu.memory_space<vmem>>, vector<8x32xf32>
    %cst_244 = arith.constant dense<0.000000e+00> : vector<32x8xf32>
    %419 = tpu.matmul %417, %405, %cst_244 {dimension_numbers = #tpu.dot_dimension_numbers<[1], [0], [0], [1], [0, 0, 1, 1], [], []>} : vector<32x16xf32>, vector<16x8xf32>, vector<32x8xf32> -> vector<32x8xf32>
    %cst_245 = arith.constant dense<0.000000e+00> : vector<32x32xf32>
    %420 = tpu.matmul %419, %418, %cst_245 {dimension_numbers = #tpu.dot_dimension_numbers<[1], [0], [0], [1], [0, 0, 1, 1], [], []>} : vector<32x8xf32>, vector<8x32xf32>, vector<32x32xf32> -> vector<32x32xf32>
    %421 = arith.addf %402, %420 : vector<32x32xf32>
    %422 = arith.addf %337, %421 : vector<32x32xf32>
    %cst_246 = arith.constant dense<0.000000e+00> : vector<32xf32>
    %423 = vector.multi_reduction <add>, %422, %cst_246 [1] : vector<32x32xf32> to vector<32xf32>
    %424 = vector.shape_cast %423 : vector<32xf32> to vector<32x1xf32>
    %cst_247 = arith.constant 3.200000e+01 : f32
    %425 = vector.broadcast %cst_247 : f32 to vector<32x1xf32>
    %426 = arith.divf %424, %425 : vector<32x1xf32>
    %427 = vector.broadcast %426 : vector<32x1xf32> to vector<32x32xf32>
    %428 = arith.subf %422, %427 : vector<32x32xf32>
    %429 = arith.mulf %428, %428 : vector<32x32xf32>
    %cst_248 = arith.constant dense<0.000000e+00> : vector<32xf32>
    %430 = vector.multi_reduction <add>, %429, %cst_248 [1] : vector<32x32xf32> to vector<32xf32>
    %431 = vector.shape_cast %430 : vector<32xf32> to vector<32x1xf32>
    %cst_249 = arith.constant 3.200000e+01 : f32
    %432 = vector.broadcast %cst_249 : f32 to vector<32x1xf32>
    %433 = arith.divf %431, %432 : vector<32x1xf32>
    %cst_250 = arith.constant 9.99999974E-6 : f32
    %434 = vector.broadcast %cst_250 : f32 to vector<32x1xf32>
    %435 = arith.addf %433, %434 : vector<32x1xf32>
    %436 = math.rsqrt %435 : vector<32x1xf32>
    %437 = vector.broadcast %436 : vector<32x1xf32> to vector<32x32xf32>
    %438 = arith.mulf %428, %437 : vector<32x32xf32>
    %c28 = arith.constant 28 : index
    %c0_251 = arith.constant 0 : index
    %439 = vector.load %arg10[%c28, %c0_251] : memref<40x32xf32, #tpu.memory_space<vmem>>, vector<1x32xf32>
    %440 = vector.broadcast %439 : vector<1x32xf32> to vector<32x32xf32>
    %441 = arith.mulf %438, %440 : vector<32x32xf32>
    %c29 = arith.constant 29 : index
    %c0_252 = arith.constant 0 : index
    %442 = vector.load %arg10[%c29, %c0_252] : memref<40x32xf32, #tpu.memory_space<vmem>>, vector<1x32xf32>
    %443 = vector.broadcast %442 : vector<1x32xf32> to vector<32x32xf32>
    %444 = arith.addf %441, %443 : vector<32x32xf32>
    %c320 = arith.constant 320 : index
    %c0_253 = arith.constant 0 : index
    %445 = vector.load %arg7[%c320, %c0_253] : memref<512x32xf32, #tpu.memory_space<vmem>>, vector<32x32xf32>
    %cst_254 = arith.constant dense<0.000000e+00> : vector<32x32xf32>
    %446 = tpu.matmul %444, %445, %cst_254 {dimension_numbers = #tpu.dot_dimension_numbers<[1], [0], [0], [1], [0, 0, 1, 1], [], []>} : vector<32x32xf32>, vector<32x32xf32>, vector<32x32xf32> -> vector<32x32xf32>
    %c26 = arith.constant 26 : index
    %c0_255 = arith.constant 0 : index
    %447 = vector.load %arg10[%c26, %c0_255] : memref<40x32xf32, #tpu.memory_space<vmem>>, vector<1x32xf32>
    %448 = vector.broadcast %447 : vector<1x32xf32> to vector<32x32xf32>
    %449 = arith.addf %446, %448 : vector<32x32xf32>
    %cst_256 = arith.constant 0.000000e+00 : f32
    %450 = vector.broadcast %cst_256 : f32 to vector<32x32xf32>
    %451 = arith.maximumf %449, %450 : vector<32x32xf32>
    %c352 = arith.constant 352 : index
    %c0_257 = arith.constant 0 : index
    %452 = vector.load %arg7[%c352, %c0_257] : memref<512x32xf32, #tpu.memory_space<vmem>>, vector<32x32xf32>
    %cst_258 = arith.constant dense<0.000000e+00> : vector<32x32xf32>
    %453 = tpu.matmul %451, %452, %cst_258 {dimension_numbers = #tpu.dot_dimension_numbers<[1], [0], [0], [1], [0, 0, 1, 1], [], []>} : vector<32x32xf32>, vector<32x32xf32>, vector<32x32xf32> -> vector<32x32xf32>
    %c27 = arith.constant 27 : index
    %c0_259 = arith.constant 0 : index
    %454 = vector.load %arg10[%c27, %c0_259] : memref<40x32xf32, #tpu.memory_space<vmem>>, vector<1x32xf32>
    %455 = vector.broadcast %454 : vector<1x32xf32> to vector<32x32xf32>
    %456 = arith.addf %453, %455 : vector<32x32xf32>
    %457 = arith.addf %444, %456 : vector<32x32xf32>
    %cst_260 = arith.constant dense<0.000000e+00> : vector<32xf32>
    %458 = vector.multi_reduction <add>, %457, %cst_260 [1] : vector<32x32xf32> to vector<32xf32>
    %459 = vector.shape_cast %458 : vector<32xf32> to vector<32x1xf32>
    %cst_261 = arith.constant 3.200000e+01 : f32
    %460 = vector.broadcast %cst_261 : f32 to vector<32x1xf32>
    %461 = arith.divf %459, %460 : vector<32x1xf32>
    %462 = vector.broadcast %461 : vector<32x1xf32> to vector<32x32xf32>
    %463 = arith.subf %457, %462 : vector<32x32xf32>
    %464 = arith.mulf %463, %463 : vector<32x32xf32>
    %cst_262 = arith.constant dense<0.000000e+00> : vector<32xf32>
    %465 = vector.multi_reduction <add>, %464, %cst_262 [1] : vector<32x32xf32> to vector<32xf32>
    %466 = vector.shape_cast %465 : vector<32xf32> to vector<32x1xf32>
    %cst_263 = arith.constant 3.200000e+01 : f32
    %467 = vector.broadcast %cst_263 : f32 to vector<32x1xf32>
    %468 = arith.divf %466, %467 : vector<32x1xf32>
    %cst_264 = arith.constant 9.99999974E-6 : f32
    %469 = vector.broadcast %cst_264 : f32 to vector<32x1xf32>
    %470 = arith.addf %468, %469 : vector<32x1xf32>
    %471 = math.rsqrt %470 : vector<32x1xf32>
    %472 = vector.broadcast %471 : vector<32x1xf32> to vector<32x32xf32>
    %473 = arith.mulf %463, %472 : vector<32x32xf32>
    %c30 = arith.constant 30 : index
    %c0_265 = arith.constant 0 : index
    %474 = vector.load %arg10[%c30, %c0_265] : memref<40x32xf32, #tpu.memory_space<vmem>>, vector<1x32xf32>
    %475 = vector.broadcast %474 : vector<1x32xf32> to vector<32x32xf32>
    %476 = arith.mulf %473, %475 : vector<32x32xf32>
    %c31 = arith.constant 31 : index
    %c0_266 = arith.constant 0 : index
    %477 = vector.load %arg10[%c31, %c0_266] : memref<40x32xf32, #tpu.memory_space<vmem>>, vector<1x32xf32>
    %478 = vector.broadcast %477 : vector<1x32xf32> to vector<32x32xf32>
    %479 = arith.addf %476, %478 : vector<32x32xf32>
    %c384 = arith.constant 384 : index
    %c0_267 = arith.constant 0 : index
    %480 = vector.load %arg7[%c384, %c0_267] : memref<512x32xf32, #tpu.memory_space<vmem>>, vector<32x32xf32>
    %cst_268 = arith.constant dense<0.000000e+00> : vector<32x32xf32>
    %481 = tpu.matmul %479, %480, %cst_268 {dimension_numbers = #tpu.dot_dimension_numbers<[1], [0], [0], [1], [0, 0, 1, 1], [], []>} : vector<32x32xf32>, vector<32x32xf32>, vector<32x32xf32> -> vector<32x32xf32>
    %c32_269 = arith.constant 32 : index
    %c0_270 = arith.constant 0 : index
    %482 = vector.load %arg10[%c32_269, %c0_270] : memref<40x32xf32, #tpu.memory_space<vmem>>, vector<1x32xf32>
    %483 = vector.broadcast %482 : vector<1x32xf32> to vector<32x32xf32>
    %484 = arith.addf %481, %483 : vector<32x32xf32>
    %c0_271 = arith.constant 0 : index
    %c0_272 = arith.constant 0 : index
    %485 = vector.load %arg14[%c0_271, %c0_272] : memref<32x32xf32, #tpu.memory_space<vmem>>, vector<32x32xf32>
    tpu.vector_store %arg14[%c0_271, %c0_272], %484 {strides = array<i32>} : memref<32x32xf32, #tpu.memory_space<vmem>>, vector<32x32xf32>,
    %c33 = arith.constant 33 : index
    %c0_273 = arith.constant 0 : index
    %486 = vector.load %arg10[%c33, %c0_273] : memref<40x32xf32, #tpu.memory_space<vmem>>, vector<1x32xf32>
    %c0_274 = arith.constant 0 : index
    %c0_275 = arith.constant 0 : index
    %487 = vector.load %arg14[%c0_274, %c0_275] : memref<32x32xf32, #tpu.memory_space<vmem>>, vector<32x8xf32>
    %c0_276 = arith.constant 0 : index
    %c192_277 = arith.constant 192 : index
    %488 = vector.load %arg13[%c0_276, %c192_277] : memref<16x256xf32, #tpu.memory_space<vmem>>, vector<16x8xf32>
    %c0_278 = arith.constant 0 : index
    %c224_279 = arith.constant 224 : index
    %489 = vector.load %arg13[%c0_278, %c224_279] : memref<16x256xf32, #tpu.memory_space<vmem>>, vector<16x8xf32>
    %cst_280 = arith.constant dense<0.000000e+00> : vector<32x16xf32>
    %490 = tpu.matmul %487, %488, %cst_280 {dimension_numbers = #tpu.dot_dimension_numbers<[1], [1], [0], [0], [0, 0, 1, 0], [], []>} : vector<32x8xf32>, vector<16x8xf32>, vector<32x16xf32> -> vector<32x16xf32>
    %491 = arith.addf %490, %53 : vector<32x16xf32>
    %cst_281 = arith.constant dense<0xFF800000> : vector<32xf32>
    %492 = vector.multi_reduction <maximumf>, %491, %cst_281 [1] : vector<32x16xf32> to vector<32xf32>
    %493 = vector.shape_cast %492 : vector<32xf32> to vector<32x1xf32>
    %494 = vector.broadcast %493 : vector<32x1xf32> to vector<32x16xf32>
    %495 = arith.subf %491, %494 : vector<32x16xf32>
    %496 = math.exp %495 : vector<32x16xf32>
    %cst_282 = arith.constant dense<0.000000e+00> : vector<32xf32>
    %497 = vector.multi_reduction <add>, %496, %cst_282 [1] : vector<32x16xf32> to vector<32xf32>
    %498 = vector.shape_cast %497 : vector<32xf32> to vector<32x1xf32>
    %499 = tpu.reciprocal %498 {approx = true} : vector<32x1xf32> -> vector<32x1xf32>
    %500 = vector.broadcast %499 : vector<32x1xf32> to vector<32x16xf32>
    %501 = arith.mulf %496, %500 : vector<32x16xf32>
    %c416 = arith.constant 416 : index
    %c0_283 = arith.constant 0 : index
    %502 = vector.load %arg7[%c416, %c0_283] : memref<512x32xf32, #tpu.memory_space<vmem>>, vector<8x32xf32>
    %cst_284 = arith.constant dense<0.000000e+00> : vector<32x8xf32>
    %503 = tpu.matmul %501, %489, %cst_284 {dimension_numbers = #tpu.dot_dimension_numbers<[1], [0], [0], [1], [0, 0, 1, 1], [], []>} : vector<32x16xf32>, vector<16x8xf32>, vector<32x8xf32> -> vector<32x8xf32>
    %cst_285 = arith.constant dense<0.000000e+00> : vector<32x32xf32>
    %504 = tpu.matmul %503, %502, %cst_285 {dimension_numbers = #tpu.dot_dimension_numbers<[1], [0], [0], [1], [0, 0, 1, 1], [], []>} : vector<32x8xf32>, vector<8x32xf32>, vector<32x32xf32> -> vector<32x32xf32>
    %505 = vector.broadcast %486 : vector<1x32xf32> to vector<32x32xf32>
    %506 = arith.addf %505, %504 : vector<32x32xf32>
    %c0_286 = arith.constant 0 : index
    %c8_287 = arith.constant 8 : index
    %507 = vector.load %arg14[%c0_286, %c8_287] : memref<32x32xf32, #tpu.memory_space<vmem>>, vector<32x8xf32>
    %c0_288 = arith.constant 0 : index
    %c200 = arith.constant 200 : index
    %508 = vector.load %arg13[%c0_288, %c200] : memref<16x256xf32, #tpu.memory_space<vmem>>, vector<16x8xf32>
    %c0_289 = arith.constant 0 : index
    %c232 = arith.constant 232 : index
    %509 = vector.load %arg13[%c0_289, %c232] : memref<16x256xf32, #tpu.memory_space<vmem>>, vector<16x8xf32>
    %cst_290 = arith.constant dense<0.000000e+00> : vector<32x16xf32>
    %510 = tpu.matmul %507, %508, %cst_290 {dimension_numbers = #tpu.dot_dimension_numbers<[1], [1], [0], [0], [0, 0, 1, 0], [], []>} : vector<32x8xf32>, vector<16x8xf32>, vector<32x16xf32> -> vector<32x16xf32>
    %511 = arith.addf %510, %53 : vector<32x16xf32>
    %cst_291 = arith.constant dense<0xFF800000> : vector<32xf32>
    %512 = vector.multi_reduction <maximumf>, %511, %cst_291 [1] : vector<32x16xf32> to vector<32xf32>
    %513 = vector.shape_cast %512 : vector<32xf32> to vector<32x1xf32>
    %514 = vector.broadcast %513 : vector<32x1xf32> to vector<32x16xf32>
    %515 = arith.subf %511, %514 : vector<32x16xf32>
    %516 = math.exp %515 : vector<32x16xf32>
    %cst_292 = arith.constant dense<0.000000e+00> : vector<32xf32>
    %517 = vector.multi_reduction <add>, %516, %cst_292 [1] : vector<32x16xf32> to vector<32xf32>
    %518 = vector.shape_cast %517 : vector<32xf32> to vector<32x1xf32>
    %519 = tpu.reciprocal %518 {approx = true} : vector<32x1xf32> -> vector<32x1xf32>
    %520 = vector.broadcast %519 : vector<32x1xf32> to vector<32x16xf32>
    %521 = arith.mulf %516, %520 : vector<32x16xf32>
    %c424 = arith.constant 424 : index
    %c0_293 = arith.constant 0 : index
    %522 = vector.load %arg7[%c424, %c0_293] : memref<512x32xf32, #tpu.memory_space<vmem>>, vector<8x32xf32>
    %cst_294 = arith.constant dense<0.000000e+00> : vector<32x8xf32>
    %523 = tpu.matmul %521, %509, %cst_294 {dimension_numbers = #tpu.dot_dimension_numbers<[1], [0], [0], [1], [0, 0, 1, 1], [], []>} : vector<32x16xf32>, vector<16x8xf32>, vector<32x8xf32> -> vector<32x8xf32>
    %cst_295 = arith.constant dense<0.000000e+00> : vector<32x32xf32>
    %524 = tpu.matmul %523, %522, %cst_295 {dimension_numbers = #tpu.dot_dimension_numbers<[1], [0], [0], [1], [0, 0, 1, 1], [], []>} : vector<32x8xf32>, vector<8x32xf32>, vector<32x32xf32> -> vector<32x32xf32>
    %525 = arith.addf %506, %524 : vector<32x32xf32>
    %c0_296 = arith.constant 0 : index
    %c16_297 = arith.constant 16 : index
    %526 = vector.load %arg14[%c0_296, %c16_297] : memref<32x32xf32, #tpu.memory_space<vmem>>, vector<32x8xf32>
    %c0_298 = arith.constant 0 : index
    %c208 = arith.constant 208 : index
    %527 = vector.load %arg13[%c0_298, %c208] : memref<16x256xf32, #tpu.memory_space<vmem>>, vector<16x8xf32>
    %c0_299 = arith.constant 0 : index
    %c240 = arith.constant 240 : index
    %528 = vector.load %arg13[%c0_299, %c240] : memref<16x256xf32, #tpu.memory_space<vmem>>, vector<16x8xf32>
    %cst_300 = arith.constant dense<0.000000e+00> : vector<32x16xf32>
    %529 = tpu.matmul %526, %527, %cst_300 {dimension_numbers = #tpu.dot_dimension_numbers<[1], [1], [0], [0], [0, 0, 1, 0], [], []>} : vector<32x8xf32>, vector<16x8xf32>, vector<32x16xf32> -> vector<32x16xf32>
    %530 = arith.addf %529, %53 : vector<32x16xf32>
    %cst_301 = arith.constant dense<0xFF800000> : vector<32xf32>
    %531 = vector.multi_reduction <maximumf>, %530, %cst_301 [1] : vector<32x16xf32> to vector<32xf32>
    %532 = vector.shape_cast %531 : vector<32xf32> to vector<32x1xf32>
    %533 = vector.broadcast %532 : vector<32x1xf32> to vector<32x16xf32>
    %534 = arith.subf %530, %533 : vector<32x16xf32>
    %535 = math.exp %534 : vector<32x16xf32>
    %cst_302 = arith.constant dense<0.000000e+00> : vector<32xf32>
    %536 = vector.multi_reduction <add>, %535, %cst_302 [1] : vector<32x16xf32> to vector<32xf32>
    %537 = vector.shape_cast %536 : vector<32xf32> to vector<32x1xf32>
    %538 = tpu.reciprocal %537 {approx = true} : vector<32x1xf32> -> vector<32x1xf32>
    %539 = vector.broadcast %538 : vector<32x1xf32> to vector<32x16xf32>
    %540 = arith.mulf %535, %539 : vector<32x16xf32>
    %c432 = arith.constant 432 : index
    %c0_303 = arith.constant 0 : index
    %541 = vector.load %arg7[%c432, %c0_303] : memref<512x32xf32, #tpu.memory_space<vmem>>, vector<8x32xf32>
    %cst_304 = arith.constant dense<0.000000e+00> : vector<32x8xf32>
    %542 = tpu.matmul %540, %528, %cst_304 {dimension_numbers = #tpu.dot_dimension_numbers<[1], [0], [0], [1], [0, 0, 1, 1], [], []>} : vector<32x16xf32>, vector<16x8xf32>, vector<32x8xf32> -> vector<32x8xf32>
    %cst_305 = arith.constant dense<0.000000e+00> : vector<32x32xf32>
    %543 = tpu.matmul %542, %541, %cst_305 {dimension_numbers = #tpu.dot_dimension_numbers<[1], [0], [0], [1], [0, 0, 1, 1], [], []>} : vector<32x8xf32>, vector<8x32xf32>, vector<32x32xf32> -> vector<32x32xf32>
    %544 = arith.addf %525, %543 : vector<32x32xf32>
    %c0_306 = arith.constant 0 : index
    %c24_307 = arith.constant 24 : index
    %545 = vector.load %arg14[%c0_306, %c24_307] : memref<32x32xf32, #tpu.memory_space<vmem>>, vector<32x8xf32>
    %c0_308 = arith.constant 0 : index
    %c216 = arith.constant 216 : index
    %546 = vector.load %arg13[%c0_308, %c216] : memref<16x256xf32, #tpu.memory_space<vmem>>, vector<16x8xf32>
    %c0_309 = arith.constant 0 : index
    %c248 = arith.constant 248 : index
    %547 = vector.load %arg13[%c0_309, %c248] : memref<16x256xf32, #tpu.memory_space<vmem>>, vector<16x8xf32>
    %cst_310 = arith.constant dense<0.000000e+00> : vector<32x16xf32>
    %548 = tpu.matmul %545, %546, %cst_310 {dimension_numbers = #tpu.dot_dimension_numbers<[1], [1], [0], [0], [0, 0, 1, 0], [], []>} : vector<32x8xf32>, vector<16x8xf32>, vector<32x16xf32> -> vector<32x16xf32>
    %549 = arith.addf %548, %53 : vector<32x16xf32>
    %cst_311 = arith.constant dense<0xFF800000> : vector<32xf32>
    %550 = vector.multi_reduction <maximumf>, %549, %cst_311 [1] : vector<32x16xf32> to vector<32xf32>
    %551 = vector.shape_cast %550 : vector<32xf32> to vector<32x1xf32>
    %552 = vector.broadcast %551 : vector<32x1xf32> to vector<32x16xf32>
    %553 = arith.subf %549, %552 : vector<32x16xf32>
    %554 = math.exp %553 : vector<32x16xf32>
    %cst_312 = arith.constant dense<0.000000e+00> : vector<32xf32>
    %555 = vector.multi_reduction <add>, %554, %cst_312 [1] : vector<32x16xf32> to vector<32xf32>
    %556 = vector.shape_cast %555 : vector<32xf32> to vector<32x1xf32>
    %557 = tpu.reciprocal %556 {approx = true} : vector<32x1xf32> -> vector<32x1xf32>
    %558 = vector.broadcast %557 : vector<32x1xf32> to vector<32x16xf32>
    %559 = arith.mulf %554, %558 : vector<32x16xf32>
    %c440 = arith.constant 440 : index
    %c0_313 = arith.constant 0 : index
    %560 = vector.load %arg7[%c440, %c0_313] : memref<512x32xf32, #tpu.memory_space<vmem>>, vector<8x32xf32>
    %cst_314 = arith.constant dense<0.000000e+00> : vector<32x8xf32>
    %561 = tpu.matmul %559, %547, %cst_314 {dimension_numbers = #tpu.dot_dimension_numbers<[1], [0], [0], [1], [0, 0, 1, 1], [], []>} : vector<32x16xf32>, vector<16x8xf32>, vector<32x8xf32> -> vector<32x8xf32>
    %cst_315 = arith.constant dense<0.000000e+00> : vector<32x32xf32>
    %562 = tpu.matmul %561, %560, %cst_315 {dimension_numbers = #tpu.dot_dimension_numbers<[1], [0], [0], [1], [0, 0, 1, 1], [], []>} : vector<32x8xf32>, vector<8x32xf32>, vector<32x32xf32> -> vector<32x32xf32>
    %563 = arith.addf %544, %562 : vector<32x32xf32>
    %564 = arith.addf %479, %563 : vector<32x32xf32>
    %cst_316 = arith.constant dense<0.000000e+00> : vector<32xf32>
    %565 = vector.multi_reduction <add>, %564, %cst_316 [1] : vector<32x32xf32> to vector<32xf32>
    %566 = vector.shape_cast %565 : vector<32xf32> to vector<32x1xf32>
    %cst_317 = arith.constant 3.200000e+01 : f32
    %567 = vector.broadcast %cst_317 : f32 to vector<32x1xf32>
    %568 = arith.divf %566, %567 : vector<32x1xf32>
    %569 = vector.broadcast %568 : vector<32x1xf32> to vector<32x32xf32>
    %570 = arith.subf %564, %569 : vector<32x32xf32>
    %571 = arith.mulf %570, %570 : vector<32x32xf32>
    %cst_318 = arith.constant dense<0.000000e+00> : vector<32xf32>
    %572 = vector.multi_reduction <add>, %571, %cst_318 [1] : vector<32x32xf32> to vector<32xf32>
    %573 = vector.shape_cast %572 : vector<32xf32> to vector<32x1xf32>
    %cst_319 = arith.constant 3.200000e+01 : f32
    %574 = vector.broadcast %cst_319 : f32 to vector<32x1xf32>
    %575 = arith.divf %573, %574 : vector<32x1xf32>
    %cst_320 = arith.constant 9.99999974E-6 : f32
    %576 = vector.broadcast %cst_320 : f32 to vector<32x1xf32>
    %577 = arith.addf %575, %576 : vector<32x1xf32>
    %578 = math.rsqrt %577 : vector<32x1xf32>
    %579 = vector.broadcast %578 : vector<32x1xf32> to vector<32x32xf32>
    %580 = arith.mulf %570, %579 : vector<32x32xf32>
    %c36 = arith.constant 36 : index
    %c0_321 = arith.constant 0 : index
    %581 = vector.load %arg10[%c36, %c0_321] : memref<40x32xf32, #tpu.memory_space<vmem>>, vector<1x32xf32>
    %582 = vector.broadcast %581 : vector<1x32xf32> to vector<32x32xf32>
    %583 = arith.mulf %580, %582 : vector<32x32xf32>
    %c37 = arith.constant 37 : index
    %c0_322 = arith.constant 0 : index
    %584 = vector.load %arg10[%c37, %c0_322] : memref<40x32xf32, #tpu.memory_space<vmem>>, vector<1x32xf32>
    %585 = vector.broadcast %584 : vector<1x32xf32> to vector<32x32xf32>
    %586 = arith.addf %583, %585 : vector<32x32xf32>
    %c448 = arith.constant 448 : index
    %c0_323 = arith.constant 0 : index
    %587 = vector.load %arg7[%c448, %c0_323] : memref<512x32xf32, #tpu.memory_space<vmem>>, vector<32x32xf32>
    %cst_324 = arith.constant dense<0.000000e+00> : vector<32x32xf32>
    %588 = tpu.matmul %586, %587, %cst_324 {dimension_numbers = #tpu.dot_dimension_numbers<[1], [0], [0], [1], [0, 0, 1, 1], [], []>} : vector<32x32xf32>, vector<32x32xf32>, vector<32x32xf32> -> vector<32x32xf32>
    %c34 = arith.constant 34 : index
    %c0_325 = arith.constant 0 : index
    %589 = vector.load %arg10[%c34, %c0_325] : memref<40x32xf32, #tpu.memory_space<vmem>>, vector<1x32xf32>
    %590 = vector.broadcast %589 : vector<1x32xf32> to vector<32x32xf32>
    %591 = arith.addf %588, %590 : vector<32x32xf32>
    %cst_326 = arith.constant 0.000000e+00 : f32
    %592 = vector.broadcast %cst_326 : f32 to vector<32x32xf32>
    %593 = arith.maximumf %591, %592 : vector<32x32xf32>
    %c480 = arith.constant 480 : index
    %c0_327 = arith.constant 0 : index
    %594 = vector.load %arg7[%c480, %c0_327] : memref<512x32xf32, #tpu.memory_space<vmem>>, vector<32x32xf32>
    %cst_328 = arith.constant dense<0.000000e+00> : vector<32x32xf32>
    %595 = tpu.matmul %593, %594, %cst_328 {dimension_numbers = #tpu.dot_dimension_numbers<[1], [0], [0], [1], [0, 0, 1, 1], [], []>} : vector<32x32xf32>, vector<32x32xf32>, vector<32x32xf32> -> vector<32x32xf32>
    %c35 = arith.constant 35 : index
    %c0_329 = arith.constant 0 : index
    %596 = vector.load %arg10[%c35, %c0_329] : memref<40x32xf32, #tpu.memory_space<vmem>>, vector<1x32xf32>
    %597 = vector.broadcast %596 : vector<1x32xf32> to vector<32x32xf32>
    %598 = arith.addf %595, %597 : vector<32x32xf32>
    %599 = arith.addf %586, %598 : vector<32x32xf32>
    %cst_330 = arith.constant dense<0.000000e+00> : vector<32xf32>
    %600 = vector.multi_reduction <add>, %599, %cst_330 [1] : vector<32x32xf32> to vector<32xf32>
    %601 = vector.shape_cast %600 : vector<32xf32> to vector<32x1xf32>
    %cst_331 = arith.constant 3.200000e+01 : f32
    %602 = vector.broadcast %cst_331 : f32 to vector<32x1xf32>
    %603 = arith.divf %601, %602 : vector<32x1xf32>
    %604 = vector.broadcast %603 : vector<32x1xf32> to vector<32x32xf32>
    %605 = arith.subf %599, %604 : vector<32x32xf32>
    %606 = arith.mulf %605, %605 : vector<32x32xf32>
    %cst_332 = arith.constant dense<0.000000e+00> : vector<32xf32>
    %607 = vector.multi_reduction <add>, %606, %cst_332 [1] : vector<32x32xf32> to vector<32xf32>
    %608 = vector.shape_cast %607 : vector<32xf32> to vector<32x1xf32>
    %cst_333 = arith.constant 3.200000e+01 : f32
    %609 = vector.broadcast %cst_333 : f32 to vector<32x1xf32>
    %610 = arith.divf %608, %609 : vector<32x1xf32>
    %cst_334 = arith.constant 9.99999974E-6 : f32
    %611 = vector.broadcast %cst_334 : f32 to vector<32x1xf32>
    %612 = arith.addf %610, %611 : vector<32x1xf32>
    %613 = math.rsqrt %612 : vector<32x1xf32>
    %614 = vector.broadcast %613 : vector<32x1xf32> to vector<32x32xf32>
    %615 = arith.mulf %605, %614 : vector<32x32xf32>
    %c38 = arith.constant 38 : index
    %c0_335 = arith.constant 0 : index
    %616 = vector.load %arg10[%c38, %c0_335] : memref<40x32xf32, #tpu.memory_space<vmem>>, vector<1x32xf32>
    %617 = vector.broadcast %616 : vector<1x32xf32> to vector<32x32xf32>
    %618 = arith.mulf %615, %617 : vector<32x32xf32>
    %c39 = arith.constant 39 : index
    %c0_336 = arith.constant 0 : index
    %619 = vector.load %arg10[%c39, %c0_336] : memref<40x32xf32, #tpu.memory_space<vmem>>, vector<1x32xf32>
    %620 = vector.broadcast %619 : vector<1x32xf32> to vector<32x32xf32>
    %621 = arith.addf %618, %620 : vector<32x32xf32>
    %622 = arith.addf %14, %621 : vector<32x32xf32>
    %c6 = arith.constant 6 : index
    %c0_337 = arith.constant 0 : index
    %623 = vector.load %arg10[%c6, %c0_337] : memref<40x32xf32, #tpu.memory_space<vmem>>, vector<1x32xf32>
    %cst_338 = arith.constant dense<0.000000e+00> : vector<1x32xf32>
    %624 = tpu.matmul %623, %622, %cst_338 {dimension_numbers = #tpu.dot_dimension_numbers<[1], [1], [0], [0], [0, 0, 1, 0], [], []>} : vector<1x32xf32>, vector<32x32xf32>, vector<1x32xf32> -> vector<1x32xf32>
    %c7_339 = arith.constant 7 : index
    %c0_340 = arith.constant 0 : index
    %625 = vector.load %arg10[%c7_339, %c0_340] : memref<40x32xf32, #tpu.memory_space<vmem>>, vector<1x1xf32>
    %626 = vector.broadcast %625 : vector<1x1xf32> to vector<1x32xf32>
    %627 = arith.addf %624, %626 : vector<1x32xf32>
    %c0_341 = arith.constant 0 : index
    %c0_342 = arith.constant 0 : index
    %628 = vector.load %arg11[%c0_341, %c0_342] : memref<1x32xf32, #tpu.memory_space<vmem>>, vector<1x32xf32>
    tpu.vector_store %arg11[%c0_341, %c0_342], %627 {strides = array<i32>} : memref<1x32xf32, #tpu.memory_space<vmem>>, vector<1x32xf32>,
    return
  }
  func.func @transform_0(%arg0: i32) -> (i32, i32) {
    %c0_i32 = arith.constant 0 : i32
    %c0_i32_0 = arith.constant 0 : i32
    %c0_i32_1 = arith.constant 0 : i32
    return %c0_i32, %c0_i32_0 : i32, i32
  }
  func.func @transform_1(%arg0: i32) -> (i32, i32) {
    %c0_i32 = arith.constant 0 : i32
    %c0_i32_0 = arith.constant 0 : i32
    %c0_i32_1 = arith.constant 0 : i32
    return %c0_i32, %c0_i32_0 : i32, i32
  }
  func.func @transform_2(%arg0: i32) -> (i32, i32) {
    %c0_i32 = arith.constant 0 : i32
    %c0_i32_0 = arith.constant 0 : i32
    %c0_i32_1 = arith.constant 0 : i32
    return %c0_i32, %c0_i32_0 : i32, i32
  }
  func.func @transform_3(%arg0: i32) -> (i32, i32) {
    %c0_i32 = arith.constant 0 : i32
    %c0_i32_0 = arith.constant 0 : i32
    %c0_i32_1 = arith.constant 0 : i32
    return %c0_i32, %c0_i32_0 : i32, i32
  }
  func.func @transform_4(%arg0: i32) -> (i32, i32) {
    %c0_i32 = arith.constant 0 : i32
    %c0_i32_0 = arith.constant 0 : i32
    %c0_i32_1 = arith.constant 0 : i32
    return %c0_i32, %c0_i32_0 : i32, i32
  }
  func.func @transform_5(%arg0: i32) -> (i32, i32) {
    %c0_i32 = arith.constant 0 : i32
    %c0_i32_0 = arith.constant 0 : i32
    %c0_i32_1 = arith.constant 0 : i32
    return %c0_i32, %c0_i32_0 : i32, i32
  }
  func.func @transform_6(%arg0: i32) -> (i32, i32) {
    %c0_i32 = arith.constant 0 : i32
    %c0_i32_0 = arith.constant 0 : i32
    %c0_i32_1 = arith.constant 0 : i32
    return %c0_i32, %c0_i32_0 : i32, i32
  }
  func.func @transform_7(%arg0: i32) -> (i32, i32) {
    %c0_i32 = arith.constant 0 : i32
    %c0_i32_0 = arith.constant 0 : i32
    %c0_i32_1 = arith.constant 0 : i32
    return %c0_i32, %c0_i32_0 : i32, i32
  }
  func.func @transform_8(%arg0: i32) -> (i32, i32) {
    %c0_i32 = arith.constant 0 : i32
    %c0_i32_0 = arith.constant 0 : i32
    %c0_i32_1 = arith.constant 0 : i32
    return %c0_i32, %c0_i32_0 : i32, i32
  }
  func.func @transform_9(%arg0: i32) -> (i32, i32) {
    %c0_i32 = arith.constant 0 : i32
    %c0_i32_0 = arith.constant 0 : i32
    %c0_i32_1 = arith.constant 0 : i32
    return %c0_i32, %c0_i32_0 : i32, i32
  }
  func.func @transform_10(%arg0: i32) -> (i32, i32) {
    %c0_i32 = arith.constant 0 : i32
    %c0_i32_0 = arith.constant 0 : i32
    %c0_i32_1 = arith.constant 0 : i32
    return %c0_i32, %c0_i32_0 : i32, i32
  }
}

</mosaic_0001>

<bundles_post_ra>
// kernel: eq.11
= control target key start
LH: loop header
LB: loop body
LE: loop exit
PB: predicated region body
PF: predicated region fallthrough
CT: control target
= control target key end

     0   :  { %vm7_vm0 = vcmask 64512   ;;  %vm13_vm1 = vcmask 130112   ;;  %s39_s0 = inlined_call_operand.vmem [shape: s32[2,8], index: 0, kind: input, shape index: {}]   ;;  %s40_s1 = inlined_call_operand.vmem [shape: s32[16], index: 1, kind: output, shape index: {}]  }
   0x1   :  { %v4_v0 = vld [vmem:[%s39_s0] sm:$0x3]  ;;  %s22_s0 = smov 8  }
   0x2   :  { %5 = vst [vmem:[#allocation1] sm:$0x3] %v4_v0 }
   0x9   :  { %v10_v1 = vld [vmem:[#allocation1 + $0x1] sm:$0x1]   ;;  %v6_v2 = vld [vmem:[#allocation1] sm:$0x1]  }
   0xa   :  { %11 = vrot.lane.b32.xlu0 %v10_v1, %s22_s0  ;;  %8 = vst.msk [vmem:[#allocation0] sm:$0x1] %vm7_vm0, %v6_v2  }
  0x7c   :  { %v12_v3 = vpop.permute.xlu0 %11  }
  0x7d   :  { %14 = vst.msk [vmem:[#allocation0] sm:$0x1] %vm13_vm1, %v12_v3  }
  0x84   :  { %v18_v4 = vld [vmem:[#allocation0] sm:$0x1] }
  0x85   :  { %20 = vst [vmem:[%s40_s1] sm:$0x1] %v18_v4 }

// kernel: eq.8
= control target key start
LH: loop header
LB: loop body
LE: loop exit
PB: predicated region body
PF: predicated region fallthrough
CT: control target
= control target key end

     0   :  { %vm7_vm0 = vcmask 130048   ;;  %vm13_vm1 = vcmask 261248   ;;  %s39_s0 = inlined_call_operand.vmem [shape: s32[2,16], index: 0, kind: input, shape index: {}]   ;;  %s40_s1 = inlined_call_operand.vmem [shape: s32[32], index: 1, kind: output, shape index: {}]  }
   0x1   :  { %v4_v0 = vld [vmem:[%s39_s0] sm:$0x3]  ;;  %s22_s0 = smov 16  }
   0x2   :  { %5 = vst [vmem:[#allocation1] sm:$0x3] %v4_v0 }
   0x9   :  { %v10_v1 = vld [vmem:[#allocation1 + $0x1] sm:$0x1]   ;;  %v6_v2 = vld [vmem:[#allocation1] sm:$0x1]  }
   0xa   :  { %11 = vrot.lane.b32.xlu0 %v10_v1, %s22_s0  ;;  %8 = vst.msk [vmem:[#allocation0] sm:$0x1] %vm7_vm0, %v6_v2  }
  0x7c   :  { %v12_v3 = vpop.permute.xlu0 %11  }
  0x7d   :  { %14 = vst.msk [vmem:[#allocation0] sm:$0x1] %vm13_vm1, %v12_v3  }
  0x84   :  { %v18_v4 = vld [vmem:[#allocation0] sm:$0x1] }
  0x85   :  { %20 = vst [vmem:[%s40_s1] sm:$0x1] %v18_v4 }

// kernel: spectra_transformer_decoder.1
= control target key start
LH: loop header
LB: loop body
LE: loop exit
PB: predicated region body
PF: predicated region fallthrough
CT: control target
= control target key end

     0   :  { %vm52_vm0 = vcmask 261120   ;;  %v10812_v14 = vmov 0.0|0.0   ;;  %vm10813_vm1 = vmmov 0   ;;  %v10814_v25 = vmov 0.0   ;;  %s10815_s15 = smov 120   ;;  %s10816_s16 = smov 96   ;;  %s12373_s5 = inlined_call_operand.vmem [shape: f32[192,32], index: 5, kind: input, shape index: {}]   ;;  %s12374_s0 = inlined_call_operand.vmem [shape: f32[32,32], index: 0, kind: input, shape index: {}]   ;;  %s12375_s1 = inlined_call_operand.vmem [shape: f32[2,32], index: 1, kind: input, shape index: {}]   ;;  %s12376_s2 = inlined_call_operand.vmem [shape: f32[16,32], index: 2, kind: input, shape index: {}]   ;;  %s12377_s9 = inlined_call_operand.vmem [shape: f32[40,32], index: 9, kind: input, shape index: {}]   ;;  %s12378_s6 = inlined_call_operand.vmem [shape: f32[512,32], index: 6, kind: input, shape index: {}]   ;;  %s12379_s7 = inlined_call_operand.vmem [shape: f32[32,256], index: 7, kind: input, shape index: {}]   ;;  %s12380_s3 = inlined_call_operand.vmem [shape: f32[32,32], index: 3, kind: input, shape index: {}]   ;;  %s12381_s8 = inlined_call_operand.vmem [shape: f32[1,256], index: 8, kind: input, shape index: {}]   ;;  %s12382_s4 = inlined_call_operand.vmem [shape: f32[32,16], index: 4, kind: input, shape index: {}]   ;;  %s12383_s10 = inlined_call_operand.vmem [shape: f32[1,32], index: 10, kind: output, shape index: {}]  }
   0x1   :  { %v43_v0 = vld [vmem:[%s12373_s5] sm:$0xff]  ;;  %v44_v1 = vld [vmem:[%s12373_s5 + $0x8] sm:$0xff]  ;;  %v45_v2 = vld [vmem:[%s12373_s5 + $0x10] sm:$0xff]  ;;  %vm618_vm2 = vcmask 254977   ;;  %vm616_vm3 = vcmask 253952   ;;  %vm850_vm4 = vcmask 64512  }
   0x2   :  { %v9930_v3 = vpack.c.bf16 %v44_v1, %v43_v0  ;;  %v46_v4 = vld [vmem:[%s12373_s5 + $0x18] sm:$0xff]  ;;  %v39_v5 = vld [vmem:[%s12374_s0] sm:$0xff]  ;;  %v266_v8 = vld [vmem:[%s12373_s5 + $0x48] sm:$0xff]  ;;  %vm954_vm6 = vcmask 130048   ;;  %s10817_s17 = smov 112   ;;  %s10819_s19 = smov 104  }
   0x3   :  { %v9934_v6 = vpack.c.bf16 %v46_v4, %v45_v2  ;;  %9239 = vmatprep.mubr.msk.f32.mxu0 %vm52_vm0, %v39_v5  ;;  %v265_v7 = vld [vmem:[%s12373_s5 + $0x40] sm:$0xff]  ;;  %v155_v10 = vld [vmem:[%s12373_s5 + $0x28] sm:$0xff]  ;;  %v41_v15 = vld [vmem:[%s12374_s0 + $0x10] sm:$0xff]  ;;  %s10821_s23 = smov 72   ;;  %s10822_s30 = smov 64  }
   0x4   :  { %9931 = vmatprep.subr.bf16.mxu0 %v9930_v3  ;;  %v154_v9 = vld [vmem:[%s12373_s5 + $0x20] sm:$0xff]  ;;  %v40_v12 = vld [vmem:[%s12374_s0 + $0x8] sm:$0xff]  ;;  %v9947_v13 = vpack.c.bf16 %v266_v8, %v265_v7  ;;  %v267_v16 = vld [vmem:[%s12373_s5 + $0x50] sm:$0xff]  ;;  %s10824_s14 = smov 56   ;;  %s10825_s18 = smov 48  }
   0x5   :  { %9933 = vmatpush3.bf16.msra.mxu0 %v9930_v3  ;;  %v9938_v11 = vpack.c.bf16 %v155_v10, %v154_v9  ;;  %v268_v17 = vld [vmem:[%s12373_s5 + $0x58] sm:$0xff]  ;;  %v432_v18 = vld [vmem:[%s12373_s5 + $0x80] sm:$0xff]  ;;  %v433_v19 = vld [vmem:[%s12373_s5 + $0x88] sm:$0xff]  ;;  %s10826_s21 = smov 40   ;;  %s10827_s22 = smov 16  }
   0x6   :  { %9935 = vmatprep.subr.bf16.mxu0 %v9934_v6  ;;  %v42_v20 = vld [vmem:[%s12374_s0 + $0x18] sm:$0xff]  ;;  %v9950_v21 = vpack.c.bf16 %v268_v17, %v267_v16  ;;  %v9958_v22 = vpack.c.bf16 %v433_v19, %v432_v18  ;;  %v434_v23 = vld [vmem:[%s12373_s5 + $0x90] sm:$0xff]  ;;  %v264_v26 = vld [vmem:[%s12375_s1] sm:$0x3]  ;;  %s10823_s1 = smov 32   ;;  %s10829_s28 = smov 8  }
   0x7   :  { %9939 = vmatprep.subr.bf16.mxu1 %v9938_v11  ;;  %v435_v24 = vld [vmem:[%s12373_s5 + $0x98] sm:$0xff]  ;;  %v430_v28 = vld [vmem:[%s12376_s2] sm:$0xff]  ;;  %v431_v29 = vld [vmem:[%s12376_s2 + $0x8] sm:$0xff] }
   0x8   :  { %9941 = vmatpush3.bf16.msra.mxu1 %v9938_v11  ;;  %v9962_v27 = vpack.c.bf16 %v435_v24, %v434_v23  ;;  %v156_v30 = vld [vmem:[%s12373_s5 + $0x30] sm:$0xff]  ;;  %v157_v31 = vld [vmem:[%s12373_s5 + $0x38] sm:$0xff]  ;;  %v8489_v33 = vld [vmem:[%s12377_s9] ss:$0 sm:$0xff] }
   0x9   :  { %9937 = vmatpush3.bf16.msra.mxu0 %v9934_v6  ;;  %v9942_v32 = vpack.c.bf16 %v157_v31, %v156_v30  ;;  %v348_v37 = vld [vmem:[%s12373_s5 + $0x60] sm:$0xff]  ;;  %v349_v38 = vld [vmem:[%s12373_s5 + $0x68] sm:$0xff]  ;;  %v350_v46 = vld [vmem:[%s12373_s5 + $0x70] sm:$0xff] }
   0xa   :  { %9946 = vmatprep.subr.bf16.mxu0 %v10812_v14  ;;  %v9953_v43 = vpack.c.bf16 %v349_v38, %v348_v37  ;;  %v351_v47 = vld [vmem:[%s12373_s5 + $0x78] sm:$0xff]  ;;  %v8499_v49 = vld [vmem:[%s12377_s9 + $0x2] ss:$0 sm:$0xff]  ;;  %v525_v51 = vld [vmem:[%s12373_s5 + $0xa8] sm:$0xff] }
   0xb   :  { %9943 = vmatprep.subr.bf16.mxu1 %v9942_v32  ;;  %v524_v50 = vld [vmem:[%s12373_s5 + $0xa0] sm:$0xff]  ;;  %v9956_v55 = vpack.c.bf16 %v351_v47, %v350_v46  ;;  %v526_v59 = vld [vmem:[%s12373_s5 + $0xb0] sm:$0xff]  ;;  %v527_v60 = vld [vmem:[%s12373_s5 + $0xb8] sm:$0xff]  ;;  %s10818_s5 = smov 80  }
   0xc   :  { %9240 = vmatmul.mubr.msk.f32.vlgmr.msra.gmra.mrb[0].mxu0 %vm52_vm0, %v40_v12  ;;  %9945 = vmatpush3.bf16.msra.mxu1 %v9942_v32  ;;  %v9966_v58 = vpack.c.bf16 %v525_v51, %v524_v50  ;;  %v9970_v62 = vpack.c.bf16 %v527_v60, %v526_v59  ;;  %v8503_v63 = vld [vmem:[%s12377_s9 + $0x4] ss:$0 sm:$0xff]  ;;  %v734_v1 = vld [vmem:[%s12378_s6 + $0x8] sm:$0xff]  ;;  %v735_v9 = vld [vmem:[%s12378_s6 + $0x10] sm:$0xff] }
   0xd   :  { %9948 = vmatpush3.bf16.msra.mxu0 %v9947_v13  ;;  %9242 = vmatprep.mubr.msk.f32.mxu0 %vm52_vm0, %v41_v15  ;;  %v733_v0 = vld [vmem:[%s12378_s6] sm:$0xff]  ;;  %v736_v10 = vld [vmem:[%s12378_s6 + $0x18] sm:$0xff]  ;;  %v623_v12 = vld [vmem:[%s12379_s7 + $0x8] sm:$0xff] }
   0xe   :  { %9949 = vmatprep.subr.bf16.mxu0 %v10812_v14  ;;  %9952 = vmatprep.subr.bf16.mxu1 %v10812_v14  ;;  %v9982_v5 = vpack.c.bf16 %v734_v1, %v733_v0  ;;  %v9986_v11 = vpack.c.bf16 %v736_v10, %v735_v9  ;;  %v625_v13 = vld [vmem:[%s12379_s7 + $0x18] sm:$0xff]  ;;  %v622_v16 = vld [vmem:[%s12379_s7] sm:$0xff]  ;;  %v624_v17 = vld [vmem:[%s12379_s7 + $0x10] sm:$0xff] }
   0xf   :  { %v9974_v15 = vpack.c.bf16 %v625_v13, %v623_v12  ;;  %v9976_v18 = vpack.c.bf16 %v624_v17, %v622_v16  ;;  %v627_v19 = vld [vmem:[%s12379_s7 + $0x28] sm:$0xff]  ;;  %v628_v23 = vld [vmem:[%s12379_s7 + $0x30] sm:$0xff]  ;;  %v8501_v46 = vld [vmem:[%s12377_s9 + $0x3] ss:$0 sm:$0xff] }
  0x10   :  { %9243 = vmatmul.mubr.msk.f32.gmra.mrb[2].mxu0 %vm52_vm0, %v42_v20  ;;  %v629_v20 = vld [vmem:[%s12379_s7 + $0x38] sm:$0xff]  ;;  %v36_v31 = vld [vmem:[%s12380_s3 + $0x8] sm:$0xff]  ;;  %v37_v37 = vld [vmem:[%s12380_s3 + $0x10] sm:$0xff] }
  0x11   :  { %9951 = vmatpush3.bf16.msra.mxu0 %v9950_v21  ;;  %9267 = vmatprep.mubr.msk.f32.mxu0 %vm10813_vm1, %v10814_v25  ;;  %v626_v21 = vld [vmem:[%s12379_s7 + $0x20] sm:$0xff]  ;;  %v8511_v59 = vld [vmem:[%s12377_s9 + $0x8] ss:$0 sm:$0xff]  ;;  %vm11106_vm5 = vmpackc.low %vm850_vm4, %vm850_vm4  ;;  %s10820_s7 = smov 88  }
  0x12   :  { %9959 = vmatprep.subr.bf16.mxu0 %v9958_v22  ;;  %v9980_v24 = vpack.c.bf16 %v628_v23, %v626_v21  ;;  %vm10240_vm7 = vmpackc.low %vm52_vm0, %vm52_vm0 }
  0x14   :  { %9268 = vmatmul.mubr.msk.f32.vlgmr.msra.gmra.mrb[4].mxu0 %vm52_vm0, %v264_v26  ;;  %v8494_v26 = vld [vmem:[%s12377_s9 + $0x1] ss:$0 sm:$0xff] }
  0x15   :  { %9961 = vmatpush3.bf16.msra.mxu0 %v9958_v22  ;;  %9289 = vmatprep.mubr.msk.f32.mxu0 %vm52_vm0, %v430_v28  ;;  %v9978_v22 = vpack.c.bf16 %v629_v20, %v627_v19 }
  0x16   :  { %9963 = vmatprep.subr.bf16.mxu0 %v9962_v27 }
  0x19   :  { %9965 = vmatpush3.bf16.msra.mxu0 %v9962_v27 }
  0x1a   :  { %9975 = vmatprep.subr.bf16.mxu0 %v9974_v15 }
  0x1c   :  { %9290 = vmatmul.mubr.msk.f32.vlgmr.msra.gmra.mrb[6].mxu0 %vm52_vm0, %v431_v29  ;;  %v35_v29 = vld [vmem:[%s12380_s3] sm:$0xff] }
  0x1d   :  { %712 = vmatprep.mubr.f32.mxu0 %v10814_v25  ;;  %9977 = vmatpush1.bf16.msra.mxu0 %v9976_v18 }
  0x1e   :  { %9979 = vmatprep.subr.bf16.mxu0 %v9978_v22 }
  0x21   :  { %9981 = vmatpush1.bf16.msra.mxu0 %v9980_v24  ;;  %v11135_v24 = vld [vmem:[%s12382_s4] sm:$0xff] }
  0xdf   :  { %v9241_v34 = vpop.f32.mrb[0].mxu0 }
  0xe0   :  { %v137_v35 = vadd.f32 %v9241_v34, %v8489_v33  ;;  %v131_v36 = vpop.f32.mrb[1].mxu0 }
  0xe1   :  { %v132_v39 = vadd.f32 %v8489_v33, %v131_v36 }
  0xe2   :  { %v151_v40 = vmax.f32 %v137_v35, 0.0 }
  0xe3   :  { %v150_v41 = vmax.f32 %v132_v39, 0.0  ;;  %v9244_v42 = vpop.f32.mrb[2].mxu0  ;;  %v38_v39 = vld [vmem:[%s12380_s3 + $0x18] sm:$0xff]  ;;  %s10828_s3 = smov 24  }
  0xe4   :  { %v147_v44 = vadd.f32 %v9244_v42, %v8489_v33  ;;  %v141_v45 = vpop.f32.mrb[3].mxu0 }
  0xe5   :  { %v142_v48 = vadd.f32 %v8489_v33, %v141_v45  ;;  %9253 = vmatprep.mubr.msk.f32.mxu1 %vm52_vm0, %v150_v41  ;;  %v8506_v45 = vld [vmem:[%s12377_s9 + $0x5] ss:$0 sm:$0xff] }
  0xe6   :  { %v153_v52 = vmax.f32 %v147_v44, 0.0  ;;  %9254 = vmatmul.mubr.msk.f32.vlgmr.msra.gmra.mrb[0].mxu1 %vm52_vm0, %v151_v40 }
  0xe7   :  { %v152_v53 = vmax.f32 %v142_v48, 0.0  ;;  %v343_v54 = vpop.f32.mrb[4].mxu0  ;;  %9954 = vmatpush3.bf16.msra.mxu1 %v9953_v43 }
  0xe8   :  { %v344_v56 = vadd.f32 %v8499_v49, %v343_v54  ;;  %v9269_v57 = vpop.f32.mrb[5].mxu0  ;;  %9955 = vmatprep.subr.bf16.mxu1 %v10812_v14  ;;  %v632_v54 = vlaneseq }
  0xe9   :  { %9256 = vmatprep.mubr.msk.f32.mxu1 %vm52_vm0, %v152_v53 }
  0xea   :  { %v347_v61 = vmax.f32 %v344_v56, 0.0  ;;  %9257 = vmatmul.mubr.msk.f32.gmra.mrb[2].mxu1 %vm52_vm0, %v153_v52  ;;  %v630_v56 = vld [vmem:[%s12381_s8] sm:$0x3] }
  0xeb   :  { %9957 = vmatpush3.bf16.msra.mxu1 %v9956_v55  ;;  %9278 = vmatprep.mubr.msk.f32.mxu1 %vm10813_vm1, %v10814_v25  ;;  %v633_v55 = vshrl.u32 %v632_v54, 7 }
  0xec   :  { %9967 = vmatprep.subr.bf16.mxu1 %v9966_v58 }
  0xed   :  { %v638_v57 = vsub.s32 1, %v633_v55 }
  0xee   :  { %9279 = vmatmul.mubr.msk.f32.vlgmr.msra.gmra.mrb[4].mxu1 %vm52_vm0, %v347_v61 }
  0xef   :  { %v9291_v2 = vpop.f32.mrb[6].mxu0  ;;  %9969 = vmatpush3.bf16.msra.mxu1 %v9966_v58  ;;  %v639_v58 = vrot.slane %v630_v56, %v638_v57 }
  0xf0   :  { %v519_v3 = vadd.f32 %v9291_v2, %v8503_v63  ;;  %v513_v4 = vpop.f32.mrb[7].mxu0  ;;  %9971 = vmatprep.subr.bf16.mxu1 %v9970_v62 }
  0xf1   :  { %v514_v6 = vadd.f32 %v8503_v63, %v513_v4 }
  0xf2   :  { %v523_v8 = vmax.f32 %v519_v3, 0.0 }
  0xf3   :  { %v522_v7 = vmax.f32 %v514_v6, 0.0  ;;  %9973 = vmatpush3.bf16.msra.mxu1 %v9970_v62 }
  0xf4   :  { %9983 = vmatprep.subr.bf16.mxu1 %v9982_v5 }
  0xf5   :  { %9300 = vmatprep.mubr.msk.f32.mxu1 %vm52_vm0, %v522_v7 }
  0xf6   :  { %9301 = vmatmul.mubr.msk.f32.vlgmr.msra.gmra.mrb[6].mxu1 %vm52_vm0, %v523_v8 }
  0xf7   :  { %9985 = vmatpush3.bf16.msra.mxu1 %v9982_v5  ;;  %v634_v5 = vsub.s32 0, %v633_v55 }
  0xf8   :  { %9987 = vmatprep.subr.bf16.mxu1 %v9986_v11 }
  0xf9   :  { %v635_v7 = vrot.slane %v630_v56, %v634_v5 }
  0xfb   :  { %9989 = vmatpush3.bf16.msra.mxu1 %v9986_v11 }
 0x1b9   :  { %v9255_v27 = vpop.f32.mrb[0].mxu1 }
 0x1ba   :  { %v247_v28 = vadd.f32 %v9255_v27, %v8494_v26  ;;  %v241_v30 = vpop.f32.mrb[1].mxu1  ;;  %v11140_v27 = vld [vmem:[%s12382_s4 + $0x8] sm:$0xff] }
 0x1bb   :  { %v242_v32 = vadd.f32 %v8494_v26, %v241_v30  ;;  %v11146_v30 = vld [vmem:[%s12382_s4 + $0x10] sm:$0xff] }
 0x1bc   :  { %v11058_v35 = vadd.f32 %v247_v28, %v36_v31 }
 0x1bd   :  { %v11056_v33 = vadd.f32 %v242_v32, %v35_v29  ;;  %v9258_v34 = vpop.f32.mrb[2].mxu1 }
 0x1be   :  { %v257_v36 = vadd.f32 %v9258_v34, %v8494_v26  ;;  %v251_v38 = vpop.f32.mrb[3].mxu1 }
 0x1bf   :  { %v252_v40 = vadd.f32 %v8494_v26, %v251_v38  ;;  %9311 = vmatprep.mubr.msk.f32.mxu1 %vm52_vm0, %v11056_v33 }
 0x1c0   :  { %9312 = vmatmul.mubr.msk.f32.vlgmr.msra.gmra.mrb[8].mxu1 %vm52_vm0, %v11058_v35  ;;  %v11072_v43 = vadd.f32 %v257_v36, %v38_v39  ;;  %v11153_v36 = vld [vmem:[%s12382_s4 + $0x18] sm:$0xff] }
 0x1c1   :  { %v11070_v41 = vadd.f32 %v252_v40, %v37_v37  ;;  %v426_v42 = vpop.f32.mrb[4].mxu1 }
 0x1c2   :  { %v9280_v44 = vpop.f32.mrb[5].mxu1  ;;  %v427_v50 = vadd.f32 %v8501_v46, %v426_v42 }
 0x1c3   :  { %9314 = vmatprep.mubr.msk.f32.mxu1 %vm52_vm0, %v11070_v41 }
 0x1c4   :  { %9315 = vmatmul.mubr.msk.f32.gmra.mrb[10].mxu1 %vm52_vm0, %v11072_v43 }
 0x1c9   :  { %v9302_v47 = vpop.f32.mrb[6].mxu1 }
 0x1ca   :  { %v611_v48 = vadd.f32 %v9302_v47, %v8506_v45  ;;  %v605_v49 = vpop.f32.mrb[7].mxu1 }
 0x1cb   :  { %v606_v51 = vadd.f32 %v8506_v45, %v605_v49 }
 0x1cc   :  { %615 = vst.msk [vmem:[#allocation2 + $0x8] sm:$0xff] %vm52_vm0, %v611_v48 }
 0x1cd   :  { %619 = vst.msk [vmem:[#allocation2 + $0xe] sm:$0x2] %vm618_vm2, %v427_v50 }
 0x1ce   :  { %614 = vst.msk [vmem:[#allocation2] sm:$0xff] %vm52_vm0, %v606_v51 }
 0x1cf   :  { %617 = vst.msk [vmem:[#allocation2 + $0x7] sm:$0x1] %vm616_vm3, %v427_v50 }
 0x1d4   :  { %v621_v53 = vld [vmem:[#allocation2 + $0x8] sm:$0xff] }
 0x1d6   :  { %v620_v52 = vld [vmem:[#allocation2] sm:$0xff] }
 0x1d7   :  { %8509 = vmatmul.mubr.msk.f32.vlgmr.msra.gmra.mrb[8].mxu0 %vm52_vm0, %v620_v52 }
 0x1d8   :  { %718 = vmatprep.mubr.f32.mxu0 %v10814_v25 }
 0x1db   :  { %8510 = vmatmul.mubr.msk.f32.gmra.mrb[10].mxu0 %vm52_vm0, %v621_v53 }
 0x293   :  { %v9313_v60 = vpop.f32.mrb[8].mxu1 }
 0x294   :  { %v826_v61 = vadd.f32 %v9313_v60, %v8511_v59  ;;  %v820_v62 = vpop.f32.mrb[9].mxu1 }
 0x295   :  { %v821_v63 = vadd.f32 %v8511_v59, %v820_v62 }
 0x296   :  { %840 = vst.msk [vmem:[#allocation4 + $0x8] sm:$0xff] %vm52_vm0, %v826_v61 }
 0x297   :  { %839 = vst.msk [vmem:[#allocation4] sm:$0xff] %vm52_vm0, %v821_v63  ;;  %v9316_v0 = vpop.f32.mrb[10].mxu1 }
 0x298   :  { %v836_v1 = vadd.f32 %v9316_v0, %v8511_v59  ;;  %v830_v2 = vpop.f32.mrb[11].mxu1 }
 0x299   :  { %v831_v3 = vadd.f32 %v8511_v59, %v830_v2 }
 0x29a   :  { %842 = vst.msk [vmem:[#allocation4 + $0x18] sm:$0xff] %vm52_vm0, %v836_v1 }
 0x29b   :  { %841 = vst.msk [vmem:[#allocation4 + $0x10] sm:$0xff] %vm52_vm0, %v831_v3 }
 0x29d   :  { %v11120_v21 = vld [vmem:[#allocation4 + $0x8] sm:$0xff] }
 0x29e   :  { %v11100_v4 = vld [vmem:[#allocation4] sm:$0xff] }
 0x29f   :  { %9321 = vmatprep.mubr.msk.f32.mxu0 %vm850_vm4, %v11100_v4 }
 0x2a1   :  { %v11128_v23 = vld [vmem:[#allocation4 + $0x18] sm:$0xff] }
 0x2a2   :  { %v11124_v22 = vld [vmem:[#allocation4 + $0x10] sm:$0xff] }
 0x2aa   :  { %v714_v6 = vpop.f32.mrb[8].mxu0 }
 0x2ab   :  { %v716_v8 = vpop.f32.mrb[9].mxu0  ;;  %v715_v11 = vadd.f32 %v714_v6, %v635_v7 }
 0x2ac   :  { %v717_v9 = vadd.f32 %v716_v8, %v639_v58 }
 0x2ae   :  { %v720_v10 = vpop.f32.mrb[10].mxu0 }
 0x2af   :  { %v721_v12 = vadd.f32 %v720_v10, %v635_v7  ;;  %v722_v13 = vpop.f32.mrb[11].mxu0 }
 0x2b0   :  { %v723_v15 = vadd.f32 %v722_v13, %v639_v58 }
 0x2b1   :  { %v9990_v17 = vpack.c.bf16 %v721_v12, %v715_v11  ;;  %v11110_v18 = vpack.i.bf16 %v721_v12, %v715_v11 }
 0x2b2   :  { %v11116_v19 = vpack.c.bf16 %v723_v15, %v717_v9  ;;  %v11118_v20 = vpack.i.bf16 %v723_v15, %v717_v9 }
 0x2b3   :  { %9992 = vmatprep.subr.msk.bf16.mxu0 %vm11106_vm5, %v9990_v17 }
 0x2b4   :  { %9995 = vmatpush3.bf16.xpose.msk.msra.mxu0 %vm11106_vm5, %v9990_v17 }
 0x2bb   :  { %9322 = vmatmul.mubr.msk.f32.vlgmr.msra.gmra.mrb[12].mxu0 %vm850_vm4, %v11120_v21 }
 0x2bc   :  { %9324 = vmatprep.mubr.msk.f32.mxu0 %vm850_vm4, %v11124_v22 }
 0x2bf   :  { %9325 = vmatmul.mubr.msk.f32.gmra.mrb[14].mxu0 %vm850_vm4, %v11128_v23 }
 0x38e   :  { %v9323_v26 = vpop.f32.mrb[12].mxu0 }
 0x38f   :  { %v935_v28 = vpop.f32.mrb[13].mxu0  ;;  %v941_v31 = vadd.f32 %v9323_v26, %v11140_v27 }
 0x390   :  { %v936_v29 = vadd.f32 %v935_v28, %v11135_v24 }
 0x391   :  { %v958_v42 = vsel %vm954_vm6, %v941_v31, -inf }
 0x392   :  { %v9326_v32 = vpop.f32.mrb[14].mxu0  ;;  %v955_v34 = vsel %vm954_vm6, %v936_v29, -inf }
 0x393   :  { %v945_v37 = vpop.f32.mrb[15].mxu0  ;;  %956 = vmax.xlane.f32.xlu0 %v955_v34  ;;  %v951_v39 = vadd.f32 %v9326_v32, %v11153_v36 }
 0x394   :  { %v946_v38 = vadd.f32 %v945_v37, %v11146_v30 }
 0x395   :  { %v964_v44 = vsel %vm954_vm6, %v951_v39, -inf }
 0x396   :  { %v961_v40 = vsel %vm954_vm6, %v946_v38, -inf }
 0x397   :  { %962 = vmax.xlane.f32.xlu1 %v961_v40  ;;  %959 = vmax.xlane.f32.xlu0 %v958_v42 }
 0x39b   :  { %965 = vmax.xlane.f32.xlu1 %v964_v44 }
 0x420   :  { %v957_v45 = vpop.xlane.xlu0 %956 }
 0x421   :  { %v967_v46 = vsub.f32 %v936_v29, %v957_v45 }
 0x423   :  { %v971_v47 = vmul.f32 1.442695, %v967_v46 }
 0x424   :  { %v963_v48 = vpop.xlane.xlu1 %962  ;;  %v960_v49 = vpop.xlane.xlu0 %959 }
 0x425   :  { %10480 = vpow2.f32 %v971_v47  ;;  %v969_v50 = vsub.f32 %v946_v38, %v963_v48  ;;  %v968_v51 = vsub.f32 %v941_v31, %v960_v49 }
 0x427   :  { %v975_v52 = vmul.f32 1.442695, %v969_v50  ;;  %v973_v53 = vmul.f32 1.442695, %v968_v51  ;;  %v999_v51 = vld [vmem:[%s12378_s6 + $0x20] sm:$0xff] }
 0x428   :  { %v966_v54 = vpop.xlane.xlu1 %965  ;;  %9337 = vmatprep.subr.mxu0 %v999_v51 }
 0x429   :  { %10482 = vpow2.f32 %v975_v52  ;;  %v970_v55 = vsub.f32 %v951_v39, %v966_v54  ;;  %9338 = vmatpush3.msra.mxu0 %v999_v51 }
 0x42a   :  { %10484 = vpow2.f32 %v973_v53 }
 0x42b   :  { %v977_v56 = vmul.f32 1.442695, %v970_v55 }
 0x42d   :  { %10486 = vpow2.f32 %v977_v56 }
 0x42f   :  { %v10481_v57 = vpop.eup %10480 }
 0x430   :  { %v979_v58 = vsel %vm954_vm6, %v10481_v57, 0.0 }
 0x431   :  { %980 = vadd.xlane.f32.xlu0 %v979_v58 }
 0x433   :  { %v10483_v59 = vpop.eup %10482 }
 0x434   :  { %v10485_v60 = vpop.eup %10484  ;;  %v985_v61 = vsel %vm954_vm6, %v10483_v59, 0.0 }
 0x435   :  { %986 = vadd.xlane.f32.xlu0 %v985_v61  ;;  %v982_v62 = vsel %vm954_vm6, %v10485_v60, 0.0 }
 0x436   :  { %983 = vadd.xlane.f32.xlu1 %v982_v62 }
 0x437   :  { %v10487_v63 = vpop.eup %10486 }
 0x438   :  { %v988_v0 = vsel %vm954_vm6, %v10487_v63, 0.0 }
 0x43a   :  { %989 = vadd.xlane.f32.xlu1 %v988_v0 }
 0x44b   :  { %10335 = vrot.lane.b32.xlu1 %v11110_v18, %s10815_s15  ;;  %10330 = vrot.lane.b32.xlu0 %v11110_v18, %s10816_s16 }
 0x44f   :  { %10340 = vrot.lane.b32.xlu1 %v11110_v18, %s10817_s17  ;;  %1210 = vrot.lane.b32.xlu0 %v11120_v21, %s10815_s15 }
 0x453   :  { %1208 = vrot.lane.b32.xlu1 %v11100_v4, %s10815_s15  ;;  %1214 = vrot.lane.b32.xlu0 %v11128_v23, %s10815_s15 }
 0x457   :  { %1212 = vrot.lane.b32.xlu1 %v11124_v22, %s10815_s15  ;;  %1568 = vrot.lane.b32.xlu0 %v11120_v21, %s10817_s17 }
 0x45b   :  { %1566 = vrot.lane.b32.xlu1 %v11100_v4, %s10817_s17  ;;  %1572 = vrot.lane.b32.xlu0 %v11128_v23, %s10817_s17 }
 0x45f   :  { %1570 = vrot.lane.b32.xlu1 %v11124_v22, %s10817_s17 }
 0x4be   :  { %v981_v1 = vpop.xlane.xlu0 %980 }
 0x4bf   :  { %10488 = vrcp.f32 %v981_v1 }
 0x4c2   :  { %v987_v2 = vpop.xlane.xlu0 %986 }
 0x4c3   :  { %v984_v3 = vpop.xlane.xlu1 %983  ;;  %10490 = vrcp.f32 %v987_v2 }
 0x4c4   :  { %10492 = vrcp.f32 %v984_v3 }
 0x4c6   :  { %v10331_v5 = vpop.permute.xlu0 %10330 }
 0x4c7   :  { %v990_v6 = vpop.xlane.xlu1 %989  ;;  %v10333_v7 = vunpack.i.h.bf16 %v10331_v5  ;;  %v10332_v8 = vunpack.i.l.bf16 %v10331_v5 }
 0x4c8   :  { %10494 = vrcp.f32 %v990_v6 }
 0x4c9   :  { %v10489_v9 = vpop.eup %10488  ;;  %v9996_v10 = vpack.c.bf16 %v10333_v7, %v10332_v8 }
 0x4ca   :  { %v995_v11 = vmul.f32 %v10489_v9, %v10481_v57  ;;  %v1211_v44 = vpop.permute.xlu0 %1210 }
 0x4cb   :  { %v10336_v12 = vpop.permute.xlu1 %10335  ;;  %9997 = vmatprep.subr.bf16.mxu1 %v9996_v10 }
 0x4cc   :  { %v10338_v13 = vunpack.i.h.bf16 %v10336_v12  ;;  %v10337_v15 = vunpack.i.l.bf16 %v10336_v12  ;;  %9999 = vmatpush3.bf16.msra.mxu1 %v9996_v10  ;;  %9331 = vmatprep.mubr.msk.f32.mxu1 %vm954_vm6, %v995_v11 }
 0x4cd   :  { %v10491_v17 = vpop.eup %10490 }
 0x4ce   :  { %v10493_v26 = vpop.eup %10492  ;;  %v10000_v28 = vpack.c.bf16 %v10338_v13, %v10337_v15  ;;  %v997_v29 = vmul.f32 %v10491_v17, %v10483_v59  ;;  %v1215_v46 = vpop.permute.xlu0 %1214 }
 0x4cf   :  { %v996_v31 = vmul.f32 %v10493_v26, %v10485_v60  ;;  %v10341_v32 = vpop.permute.xlu1 %10340 }
 0x4d0   :  { %10002 = vmatprep.subr.msk.bf16.mxu1 %vm11106_vm5, %v10000_v28  ;;  %v10343_v34 = vunpack.i.h.bf16 %v10341_v32  ;;  %v10342_v37 = vunpack.i.l.bf16 %v10341_v32 }
 0x4d1   :  { %9332 = vmatmul.mubr.msk.f32.vlgmr.msra.gmra.mrb[12].mxu1 %vm954_vm6, %v996_v31 }
 0x4d2   :  { %v10495_v38 = vpop.eup %10494  ;;  %9334 = vmatprep.mubr.msk.f32.mxu1 %vm954_vm6, %v997_v29  ;;  %v10010_v42 = vpack.c.bf16 %v10343_v34, %v10342_v37  ;;  %v1569_v48 = vpop.permute.xlu0 %1568 }
 0x4d3   :  { %v1209_v39 = vpop.permute.xlu1 %1208  ;;  %v998_v40 = vmul.f32 %v10495_v38, %v10487_v63 }
 0x4d5   :  { %9335 = vmatmul.mubr.msk.f32.gmra.mrb[14].mxu1 %vm954_vm6, %v998_v40 }
 0x4d6   :  { %10005 = vmatpush3.bf16.xpose.msk.msra.mxu1 %vm11106_vm5, %v10000_v28  ;;  %9349 = vmatprep.mubr.msk.f32.mxu1 %vm850_vm4, %v1209_v39  ;;  %v1573_v50 = vpop.permute.xlu0 %1572 }
 0x4d7   :  { %10012 = vmatprep.subr.msk.bf16.mxu1 %vm11106_vm5, %v10010_v42  ;;  %v1213_v45 = vpop.permute.xlu1 %1212 }
 0x4db   :  { %v1567_v47 = vpop.permute.xlu1 %1566 }
 0x4dd   :  { %9350 = vmatmul.mubr.msk.f32.vlgmr.msra.gmra.mrb[16].mxu1 %vm850_vm4, %v1211_v44 }
 0x4de   :  { %9352 = vmatprep.mubr.msk.f32.mxu1 %vm850_vm4, %v1213_v45  ;;  %10015 = vmatpush3.bf16.xpose.msk.msra.mxu1 %vm11106_vm5, %v10010_v42 }
 0x4df   :  { %v1571_v49 = vpop.permute.xlu1 %1570 }
 0x4e1   :  { %9353 = vmatmul.mubr.msk.f32.gmra.mrb[18].mxu1 %vm850_vm4, %v1215_v46 }
 0x4e2   :  { %9377 = vmatprep.mubr.msk.f32.mxu1 %vm850_vm4, %v1567_v47 }
 0x4e5   :  { %9378 = vmatmul.mubr.msk.f32.vlgmr.msra.gmra.mrb[20].mxu1 %vm850_vm4, %v1569_v48 }
 0x4e6   :  { %9380 = vmatprep.mubr.msk.f32.mxu1 %vm850_vm4, %v1571_v49 }
 0x4e9   :  { %9381 = vmatmul.mubr.msk.f32.gmra.mrb[22].mxu1 %vm850_vm4, %v1573_v50 }
 0x5a4   :  { %v9333_v52 = vpop.f32.mrb[12].mxu1 }
 0x5a5   :  { %v1084_v53 = vpop.f32.mrb[13].mxu1 }
 0x5a6   :  { %9339 = vmatprep.mubr.msk.f32.mxu0 %vm850_vm4, %v1084_v53 }
 0x5a7   :  { %9340 = vmatmul.mubr.msk.f32.vlgmr.msra.gmra.mrb[16].mxu0 %vm850_vm4, %v9333_v52 }
 0x5a8   :  { %v9336_v54 = vpop.f32.mrb[14].mxu1 }
 0x5a9   :  { %v1094_v55 = vpop.f32.mrb[15].mxu1 }
 0x5aa   :  { %9342 = vmatprep.mubr.msk.f32.mxu0 %vm850_vm4, %v1094_v55 }
 0x5ab   :  { %9343 = vmatmul.mubr.msk.f32.gmra.mrb[18].mxu0 %vm850_vm4, %v9336_v54 }
 0x5b0   :  { %v9351_v56 = vpop.f32.mrb[16].mxu1 }
 0x5b1   :  { %v11213_v57 = vpop.f32.mrb[17].mxu1  ;;  %v1304_v50 = vadd.f32 %v9351_v56, %v11140_v27 }
 0x5b2   :  { %v1299_v53 = vadd.f32 %v11213_v57, %v11135_v24 }
 0x5b4   :  { %v11215_v58 = vpop.f32.mrb[18].mxu1  ;;  %v1317_v54 = vsel %vm954_vm6, %v1299_v53, -inf }
 0x5b5   :  { %v1308_v59 = vpop.f32.mrb[19].mxu1  ;;  %v1314_v51 = vadd.f32 %v11215_v58, %v11153_v36 }
 0x5b7   :  { %v1326_v52 = vsel %vm954_vm6, %v1314_v51, -inf }
 0x5b8   :  { %v9379_v60 = vpop.f32.mrb[20].mxu1 }
 0x5b9   :  { %v1662_v61 = vadd.f32 %v9379_v60, %v11140_v27  ;;  %v1656_v62 = vpop.f32.mrb[21].mxu1 }
 0x5ba   :  { %v1657_v63 = vadd.f32 %v1656_v62, %v11135_v24 }
 0x5bb   :  { %v1678_v0 = vsel %vm954_vm6, %v1662_v61, -inf }
 0x5bc   :  { %1679 = vmax.xlane.f32.xlu0 %v1678_v0  ;;  %v9382_v1 = vpop.f32.mrb[22].mxu1  ;;  %v1675_v2 = vsel %vm954_vm6, %v1657_v63, -inf }
 0x5bd   :  { %v1666_v3 = vpop.f32.mrb[23].mxu1  ;;  %1676 = vmax.xlane.f32.xlu1 %v1675_v2  ;;  %v1672_v6 = vadd.f32 %v9382_v1, %v11153_v36 }
 0x5be   :  { %v1667_v5 = vadd.f32 %v1666_v3, %v11146_v30 }
 0x5bf   :  { %v1684_v8 = vsel %vm954_vm6, %v1672_v6, -inf }
 0x5c0   :  { %v1681_v7 = vsel %vm954_vm6, %v1667_v5, -inf }
 0x5c1   :  { %1682 = vmax.xlane.f32.xlu0 %v1681_v7 }
 0x5c5   :  { %1685 = vmax.xlane.f32.xlu0 %v1684_v8 }
 0x5ce   :  { %10345 = vrot.lane.b32.xlu1 %v11110_v18, %s10818_s5 }
 0x649   :  { %v1680_v9 = vpop.xlane.xlu0 %1679 }
 0x64a   :  { %v1688_v10 = vsub.f32 %v1662_v61, %v1680_v9  ;;  %v1677_v11 = vpop.xlane.xlu1 %1676 }
 0x64b   :  { %v1687_v12 = vsub.f32 %v1657_v63, %v1677_v11 }
 0x64c   :  { %v1693_v13 = vmul.f32 1.442695, %v1688_v10 }
 0x64d   :  { %v1691_v15 = vmul.f32 1.442695, %v1687_v12 }
 0x64e   :  { %10496 = vpow2.f32 %v1693_v13  ;;  %v1683_v17 = vpop.xlane.xlu0 %1682  ;;  %v10346_v26 = vpop.permute.xlu1 %10345 }
 0x64f   :  { %10498 = vpow2.f32 %v1691_v15  ;;  %v10348_v28 = vunpack.i.h.bf16 %v10346_v26  ;;  %v10347_v29 = vunpack.i.l.bf16 %v10346_v26  ;;  %v1689_v46 = vsub.f32 %v1667_v5, %v1683_v17 }
 0x651   :  { %v10016_v31 = vpack.c.bf16 %v10348_v28, %v10347_v29  ;;  %v1695_v47 = vmul.f32 1.442695, %v1689_v46 }
 0x652   :  { %v1686_v32 = vpop.xlane.xlu0 %1685 }
 0x653   :  { %v1690_v34 = vsub.f32 %v1672_v6, %v1686_v32  ;;  %10017 = vmatprep.subr.bf16.mxu1 %v10016_v31 }
 0x654   :  { %10019 = vmatpush3.bf16.msra.mxu1 %v10016_v31 }
 0x655   :  { %v1697_v37 = vmul.f32 1.442695, %v1690_v34 }
 0x657   :  { %10500 = vpow2.f32 %v1697_v37 }
 0x658   :  { %v10497_v38 = vpop.eup %10496  ;;  %10502 = vpow2.f32 %v1695_v47 }
 0x659   :  { %v10499_v39 = vpop.eup %10498  ;;  %v1702_v40 = vsel %vm954_vm6, %v10497_v38, 0.0 }
 0x65a   :  { %1703 = vadd.xlane.f32.xlu0 %v1702_v40  ;;  %v1699_v42 = vsel %vm954_vm6, %v10499_v39, 0.0 }
 0x65b   :  { %1700 = vadd.xlane.f32.xlu1 %v1699_v42 }
 0x661   :  { %v10501_v44 = vpop.eup %10500 }
 0x662   :  { %v1708_v45 = vsel %vm954_vm6, %v10501_v44, 0.0  ;;  %v10503_v48 = vpop.eup %10502 }
 0x663   :  { %1709 = vadd.xlane.f32.xlu0 %v1708_v45  ;;  %v1705_v49 = vsel %vm954_vm6, %v10503_v48, 0.0 }
 0x66c   :  { %1924 = vrot.lane.b32.xlu1 %v11100_v4, %s10819_s19  ;;  %v11241_v4 = vadd.f32 %v1308_v59, %v11146_v30 }
 0x670   :  { %1926 = vrot.lane.b32.xlu1 %v11120_v21, %s10819_s19  ;;  %v1320_v21 = vsel %vm954_vm6, %v1304_v50, -inf }
 0x679   :  { %10350 = vrot.lane.b32.xlu0 %v11110_v18, %s10819_s19 }
 0x67d   :  { %1930 = vrot.lane.b32.xlu0 %v11128_v23, %s10819_s19  ;;  %v1323_v23 = vsel %vm954_vm6, %v11241_v4, -inf }
 0x694   :  { %1706 = vadd.xlane.f32.xlu1 %v1705_v49 }
 0x69c   :  { %1321 = vmax.xlane.f32.xlu0 %v1320_v21 }
 0x6a0   :  { %1324 = vmax.xlane.f32.xlu0 %v1323_v23 }
 0x6a4   :  { %1327 = vmax.xlane.f32.xlu0 %v1326_v52 }
 0x6a5   :  { %1928 = vrot.lane.b32.xlu1 %v11124_v22, %s10819_s19 }
 0x6c9   :  { %1318 = vmax.xlane.f32.xlu1 %v1317_v54 }
 0x6e7   :  { %v1704_v55 = vpop.xlane.xlu0 %1703 }
 0x6e8   :  { %10504 = vrcp.f32 %v1704_v55  ;;  %v1701_v56 = vpop.xlane.xlu1 %1700 }
 0x6e9   :  { %10506 = vrcp.f32 %v1701_v56 }
 0x6ec   :  { %v1925_v57 = vpop.permute.xlu1 %1924 }
 0x6f0   :  { %v1710_v58 = vpop.xlane.xlu0 %1709  ;;  %v1927_v2 = vpop.permute.xlu1 %1926 }
 0x6f1   :  { %10508 = vrcp.f32 %v1710_v58 }
 0x6f2   :  { %v10505_v59 = vpop.eup %10504 }
 0x6f3   :  { %v10507_v60 = vpop.eup %10506  ;;  %v1716_v63 = vmul.f32 %v10505_v59, %v10497_v38 }
 0x6f4   :  { %v10351_v61 = vpop.permute.xlu0 %10350  ;;  %v1715_v62 = vmul.f32 %v10507_v60, %v10499_v39 }
 0x6f5   :  { %v10353_v0 = vunpack.i.h.bf16 %v10351_v61  ;;  %v10352_v1 = vunpack.i.l.bf16 %v10351_v61 }
 0x6f6   :  { %9387 = vmatprep.mubr.msk.f32.mxu1 %vm954_vm6, %v1715_v62 }
 0x6f7   :  { %v10020_v22 = vpack.c.bf16 %v10353_v0, %v10352_v1  ;;  %9388 = vmatmul.mubr.msk.f32.vlgmr.msra.gmra.mrb[24].mxu1 %vm954_vm6, %v1716_v63 }
 0x6f8   :  { %v1931_v5 = vpop.permute.xlu0 %1930 }
 0x6f9   :  { %10022 = vmatprep.subr.msk.bf16.mxu1 %vm11106_vm5, %v10020_v22 }
 0x6fa   :  { %10025 = vmatpush3.bf16.xpose.msk.msra.mxu1 %vm11106_vm5, %v10020_v22 }
 0x6fb   :  { %v10509_v8 = vpop.eup %10508 }
 0x6fc   :  { %v1718_v13 = vmul.f32 %v10509_v8, %v10501_v44 }
 0x721   :  { %v1707_v3 = vpop.xlane.xlu1 %1706 }
 0x722   :  { %10510 = vrcp.f32 %v1707_v3 }
 0x725   :  { %v1929_v26 = vpop.permute.xlu1 %1928 }
 0x729   :  { %v1322_v6 = vpop.xlane.xlu0 %1321 }
 0x72a   :  { %v1330_v7 = vsub.f32 %v1304_v50, %v1322_v6 }
 0x72c   :  { %v10511_v9 = vpop.eup %10510  ;;  %v1335_v10 = vmul.f32 1.442695, %v1330_v7 }
 0x72d   :  { %v1325_v11 = vpop.xlane.xlu0 %1324  ;;  %v1717_v12 = vmul.f32 %v10511_v9, %v10503_v48 }
 0x72e   :  { %10512 = vpow2.f32 %v1335_v10  ;;  %v1331_v37 = vsub.f32 %v11241_v4, %v1325_v11 }
 0x72f   :  { %9390 = vmatprep.mubr.msk.f32.mxu1 %vm954_vm6, %v1717_v12 }
 0x730   :  { %9391 = vmatmul.mubr.msk.f32.gmra.mrb[26].mxu1 %vm954_vm6, %v1718_v13  ;;  %v1337_v40 = vmul.f32 1.442695, %v1331_v37 }
 0x731   :  { %9405 = vmatprep.mubr.msk.f32.mxu1 %vm850_vm4, %v1925_v57  ;;  %v1328_v15 = vpop.xlane.xlu0 %1327 }
 0x732   :  { %v1332_v17 = vsub.f32 %v1314_v51, %v1328_v15 }
 0x734   :  { %v1339_v28 = vmul.f32 1.442695, %v1332_v17  ;;  %9406 = vmatmul.mubr.msk.f32.vlgmr.msra.gmra.mrb[28].mxu1 %vm850_vm4, %v1927_v2 }
 0x735   :  { %9408 = vmatprep.mubr.msk.f32.mxu1 %vm850_vm4, %v1929_v26 }
 0x736   :  { %10514 = vpow2.f32 %v1339_v28 }
 0x738   :  { %v10513_v29 = vpop.eup %10512  ;;  %9409 = vmatmul.mubr.msk.f32.gmra.mrb[30].mxu1 %vm850_vm4, %v1931_v5 }
 0x739   :  { %v1344_v31 = vsel %vm954_vm6, %v10513_v29, 0.0 }
 0x73a   :  { %1345 = vadd.xlane.f32.xlu0 %v1344_v31 }
 0x740   :  { %v10515_v32 = vpop.eup %10514 }
 0x741   :  { %v1350_v34 = vsel %vm954_vm6, %v10515_v32, 0.0 }
 0x742   :  { %1351 = vadd.xlane.f32.xlu0 %v1350_v34 }
 0x756   :  { %v1319_v38 = vpop.xlane.xlu1 %1318 }
 0x757   :  { %v1329_v39 = vsub.f32 %v1299_v53, %v1319_v38 }
 0x759   :  { %v1333_v42 = vmul.f32 1.442695, %v1329_v39 }
 0x75b   :  { %10516 = vpow2.f32 %v1333_v42 }
 0x75c   :  { %10518 = vpow2.f32 %v1337_v40 }
 0x765   :  { %v10517_v44 = vpop.eup %10516 }
 0x766   :  { %v1341_v45 = vsel %vm954_vm6, %v10517_v44, 0.0  ;;  %v10519_v46 = vpop.eup %10518 }
 0x767   :  { %1342 = vadd.xlane.f32.xlu1 %v1341_v45  ;;  %v1347_v47 = vsel %vm954_vm6, %v10519_v46, 0.0 }
 0x76b   :  { %1348 = vadd.xlane.f32.xlu1 %v1347_v47 }
 0x77c   :  { %10355 = vrot.lane.b32.xlu1 %v11110_v18, %s10820_s7 }
 0x7c7   :  { %v1346_v50 = vpop.xlane.xlu0 %1345 }
 0x7ca   :  { %v11273_v48 = vpop.f32.mrb[24].mxu1 }
 0x7cb   :  { %v11275_v49 = vpop.f32.mrb[25].mxu1 }
 0x7cf   :  { %v1352_v21 = vpop.xlane.xlu0 %1351 }
 0x7f4   :  { %v1343_v4 = vpop.xlane.xlu1 %1342 }
 0x7f5   :  { %10520 = vrcp.f32 %v1343_v4 }
 0x7f6   :  { %10522 = vrcp.f32 %v1346_v50 }
 0x7f8   :  { %v1349_v51 = vpop.xlane.xlu1 %1348 }
 0x7f9   :  { %10524 = vrcp.f32 %v1349_v51 }
 0x7fa   :  { %10526 = vrcp.f32 %v1352_v21 }
 0x7fc   :  { %v10356_v23 = vpop.permute.xlu1 %10355 }
 0x7fd   :  { %v10358_v52 = vunpack.i.h.bf16 %v10356_v23  ;;  %v10357_v53 = vunpack.i.l.bf16 %v10356_v23 }
 0x7ff   :  { %v10521_v54 = vpop.eup %10520  ;;  %v10006_v55 = vpack.c.bf16 %v10358_v52, %v10357_v53 }
 0x800   :  { %v10523_v56 = vpop.eup %10522  ;;  %v1357_v58 = vmul.f32 %v10521_v54, %v10517_v44 }
 0x801   :  { %10007 = vmatprep.subr.bf16.mxu0 %v10006_v55  ;;  %v1358_v60 = vmul.f32 %v10523_v56, %v10513_v29 }
 0x802   :  { %10009 = vmatpush3.bf16.msra.mxu0 %v10006_v55  ;;  %9359 = vmatprep.mubr.msk.f32.mxu0 %vm954_vm6, %v1357_v58 }
 0x803   :  { %v10525_v59 = vpop.eup %10524  ;;  %v11278_v61 = vpop.f32.mrb[26].mxu1 }
 0x804   :  { %v10527_v62 = vpop.eup %10526  ;;  %v11280_v63 = vpop.f32.mrb[27].mxu1  ;;  %v1359_v0 = vmul.f32 %v10525_v59, %v10519_v46 }
 0x805   :  { %9360 = vmatmul.mubr.msk.f32.vlgmr.msra.gmra.mrb[20].mxu0 %vm954_vm6, %v1358_v60  ;;  %v1360_v22 = vmul.f32 %v10527_v62, %v10515_v32 }
 0x806   :  { %9362 = vmatprep.mubr.msk.f32.mxu0 %vm954_vm6, %v1359_v0 }
 0x807   :  { %v9407_v1 = vpop.f32.mrb[28].mxu1 }
 0x808   :  { %v2020_v57 = vadd.f32 %v9407_v1, %v11140_v27  ;;  %v2014_v2 = vpop.f32.mrb[29].mxu1 }
 0x809   :  { %9363 = vmatmul.mubr.msk.f32.gmra.mrb[22].mxu0 %vm954_vm6, %v1360_v22  ;;  %v2015_v3 = vadd.f32 %v2014_v2, %v11135_v24  ;;  %v1361_v24 = vld [vmem:[%s12378_s6 + $0x28] sm:$0xff] }
 0x80a   :  { %v2036_v5 = vsel %vm954_vm6, %v2020_v57, -inf  ;;  %9365 = vmatprep.subr.mxu0 %v1361_v24 }
 0x80b   :  { %v9410_v6 = vpop.f32.mrb[30].mxu1  ;;  %2037 = vmax.xlane.f32.xlu0 %v2036_v5  ;;  %v2033_v9 = vsel %vm954_vm6, %v2015_v3, -inf  ;;  %9366 = vmatpush3.msra.mxu0 %v1361_v24 }
 0x80c   :  { %v2024_v7 = vpop.f32.mrb[31].mxu1  ;;  %v2030_v10 = vadd.f32 %v9410_v6, %v11153_v36  ;;  %v8530_v6 = vld [vmem:[%s12377_s9 + $0x9] ss:$0 sm:$0xff] }
 0x80d   :  { %v2025_v8 = vadd.f32 %v2024_v7, %v11146_v30  ;;  %v1719_v30 = vld [vmem:[%s12378_s6 + $0x30] sm:$0xff] }
 0x80e   :  { %v2042_v27 = vsel %vm954_vm6, %v2030_v10, -inf  ;;  %9393 = vmatprep.subr.mxu0 %v1719_v30 }
 0x80f   :  { %2034 = vmax.xlane.f32.xlu0 %v2033_v9  ;;  %v2039_v11 = vsel %vm954_vm6, %v2025_v8, -inf }
 0x813   :  { %2040 = vmax.xlane.f32.xlu0 %v2039_v11 }
 0x817   :  { %2043 = vmax.xlane.f32.xlu0 %v2042_v27 }
 0x898   :  { %v2038_v12 = vpop.xlane.xlu0 %2037 }
 0x899   :  { %v2046_v13 = vsub.f32 %v2020_v57, %v2038_v12 }
 0x89b   :  { %v2051_v36 = vmul.f32 1.442695, %v2046_v13 }
 0x89c   :  { %v2035_v15 = vpop.xlane.xlu0 %2034 }
 0x89d   :  { %10528 = vpow2.f32 %v2051_v36  ;;  %v2045_v17 = vsub.f32 %v2015_v3, %v2035_v15 }
 0x89f   :  { %v2049_v26 = vmul.f32 1.442695, %v2045_v17 }
 0x8a0   :  { %v2041_v28 = vpop.xlane.xlu0 %2040 }
 0x8a1   :  { %10530 = vpow2.f32 %v2049_v26  ;;  %v2047_v29 = vsub.f32 %v2025_v8, %v2041_v28 }
 0x8a3   :  { %v2053_v37 = vmul.f32 1.442695, %v2047_v29 }
 0x8a4   :  { %v2044_v31 = vpop.xlane.xlu0 %2043 }
 0x8a5   :  { %v2048_v32 = vsub.f32 %v2030_v10, %v2044_v31 }
 0x8a7   :  { %v10529_v34 = vpop.eup %10528  ;;  %v2055_v38 = vmul.f32 1.442695, %v2048_v32 }
 0x8a8   :  { %v2060_v39 = vsel %vm954_vm6, %v10529_v34, 0.0 }
 0x8a9   :  { %10532 = vpow2.f32 %v2055_v38  ;;  %2061 = vadd.xlane.f32.xlu0 %v2060_v39 }
 0x8aa   :  { %10534 = vpow2.f32 %v2053_v37 }
 0x8ab   :  { %v10531_v40 = vpop.eup %10530 }
 0x8ac   :  { %v2057_v42 = vsel %vm954_vm6, %v10531_v40, 0.0 }
 0x8ad   :  { %2058 = vadd.xlane.f32.xlu1 %v2057_v42 }
 0x8b3   :  { %v10533_v44 = vpop.eup %10532 }
 0x8b4   :  { %v2066_v45 = vsel %vm954_vm6, %v10533_v44, 0.0  ;;  %v10535_v46 = vpop.eup %10534 }
 0x8b5   :  { %2067 = vadd.xlane.f32.xlu0 %v2066_v45  ;;  %v2063_v47 = vsel %vm954_vm6, %v10535_v46, 0.0 }
 0x8b9   :  { %2064 = vadd.xlane.f32.xlu0 %v2063_v47 }
 0x8cf   :  { %10360 = vrot.lane.b32.xlu0 %v11110_v18, %s10821_s23 }
 0x8d8   :  { %v9361_v50 = vpop.f32.mrb[20].mxu0 }
 0x8d9   :  { %v1446_v4 = vpop.f32.mrb[21].mxu0 }
 0x8da   :  { %9367 = vmatprep.mubr.msk.f32.mxu0 %vm850_vm4, %v1446_v4 }
 0x8db   :  { %9368 = vmatmul.mubr.msk.f32.vlgmr.msra.gmra.mrb[16].mxu0 %vm850_vm4, %v9361_v50 }
 0x8dc   :  { %v9364_v21 = vpop.f32.mrb[22].mxu0  ;;  %9394 = vmatpush3.msra.mxu0 %v1719_v30 }
 0x8dd   :  { %v1456_v51 = vpop.f32.mrb[23].mxu0 }
 0x8de   :  { %9370 = vmatprep.mubr.msk.f32.mxu0 %vm850_vm4, %v1456_v51 }
 0x8df   :  { %9371 = vmatmul.mubr.msk.f32.gmra.mrb[18].mxu0 %vm850_vm4, %v9364_v21 }
 0x8e0   :  { %9395 = vmatprep.mubr.msk.f32.mxu0 %vm850_vm4, %v11275_v49 }
 0x8e3   :  { %9396 = vmatmul.mubr.msk.f32.vlgmr.msra.gmra.mrb[16].mxu0 %vm850_vm4, %v11273_v48 }
 0x8e4   :  { %9398 = vmatprep.mubr.msk.f32.mxu0 %vm850_vm4, %v11280_v63 }
 0x8e7   :  { %9399 = vmatmul.mubr.msk.f32.gmra.mrb[18].mxu0 %vm850_vm4, %v11278_v61  ;;  %v2077_v61 = vld [vmem:[%s12378_s6 + $0x38] sm:$0xff] }
 0x936   :  { %v2062_v52 = vpop.xlane.xlu0 %2061 }
 0x93a   :  { %v2059_v23 = vpop.xlane.xlu1 %2058 }
 0x93b   :  { %10536 = vrcp.f32 %v2059_v23 }
 0x93c   :  { %10538 = vrcp.f32 %v2062_v52 }
 0x942   :  { %v2068_v53 = vpop.xlane.xlu0 %2067 }
 0x945   :  { %v10537_v54 = vpop.eup %10536 }
 0x946   :  { %v2065_v55 = vpop.xlane.xlu0 %2064  ;;  %v2073_v56 = vmul.f32 %v10537_v54, %v10531_v40  ;;  %v10539_v60 = vpop.eup %10538 }
 0x947   :  { %10540 = vrcp.f32 %v2065_v55  ;;  %v2074_v63 = vmul.f32 %v10539_v60, %v10529_v34  ;;  %v2357_v55 = vld [vmem:[%s12378_s6 + $0x40] sm:$0xff] }
 0x948   :  { %10542 = vrcp.f32 %v2068_v53  ;;  %9415 = vmatprep.mubr.msk.f32.mxu0 %vm954_vm6, %v2073_v56  ;;  %v2358_v56 = vld [vmem:[%s12378_s6 + $0x48] sm:$0xff]  ;;  %v2467_v60 = vld [vmem:[%s12378_s6 + $0x60] sm:$0xff] }
 0x94a   :  { %v10361_v49 = vpop.permute.xlu0 %10360 }
 0x94b   :  { %v10363_v48 = vunpack.i.h.bf16 %v10361_v49  ;;  %v10362_v58 = vunpack.i.l.bf16 %v10361_v49  ;;  %v10030_v49 = vpack.c.bf16 %v2358_v56, %v2357_v55  ;;  %v8580_v56 = vld [vmem:[%s12377_s9 + $0xb] ss:$0 sm:$0xff] }
 0x94d   :  { %v10026_v59 = vpack.c.bf16 %v10363_v48, %v10362_v58  ;;  %v2359_v48 = vld [vmem:[%s12378_s6 + $0x50] sm:$0xff]  ;;  %v2360_v58 = vld [vmem:[%s12378_s6 + $0x58] sm:$0xff]  ;;  %10031 = vmatprep.subr.bf16.mxu1 %v10030_v49 }
 0x94e   :  { %10033 = vmatpush3.bf16.msra.mxu1 %v10030_v49 }
 0x94f   :  { %10027 = vmatprep.subr.bf16.mxu0 %v10026_v59 }
 0x950   :  { %10029 = vmatpush3.bf16.msra.mxu0 %v10026_v59  ;;  %v10034_v59 = vpack.c.bf16 %v2360_v58, %v2359_v48 }
 0x951   :  { %v10541_v62 = vpop.eup %10540  ;;  %9421 = vmatprep.subr.mxu0 %v2077_v61 }
 0x952   :  { %v10543_v0 = vpop.eup %10542  ;;  %v2075_v1 = vmul.f32 %v10541_v62, %v10535_v46  ;;  %10035 = vmatprep.subr.bf16.mxu1 %v10034_v59 }
 0x953   :  { %9416 = vmatmul.mubr.msk.f32.vlgmr.msra.gmra.mrb[24].mxu0 %vm954_vm6, %v2074_v63  ;;  %v2076_v22 = vmul.f32 %v10543_v0, %v10533_v44  ;;  %10037 = vmatpush3.bf16.msra.mxu1 %v10034_v59 }
 0x954   :  { %9418 = vmatprep.mubr.msk.f32.mxu0 %vm954_vm6, %v2075_v1  ;;  %9422 = vmatpush3.msra.mxu0 %v2077_v61  ;;  %v2468_v61 = vld [vmem:[%s12378_s6 + $0x68] sm:$0xff] }
 0x955   :  { %v10038_v62 = vpack.c.bf16 %v2468_v61, %v2467_v60 }
 0x957   :  { %9419 = vmatmul.mubr.msk.f32.gmra.mrb[26].mxu0 %vm954_vm6, %v2076_v22  ;;  %10039 = vmatprep.subr.bf16.mxu1 %v10038_v62 }
 0xa26   :  { %v9417_v57 = vpop.f32.mrb[24].mxu0 }
 0xa27   :  { %v2162_v2 = vpop.f32.mrb[25].mxu0 }
 0xa28   :  { %9423 = vmatprep.mubr.msk.f32.mxu0 %vm850_vm4, %v2162_v2 }
 0xa29   :  { %9424 = vmatmul.mubr.msk.f32.vlgmr.msra.gmra.mrb[16].mxu0 %vm850_vm4, %v9417_v57 }
 0xa2a   :  { %v9420_v3 = vpop.f32.mrb[26].mxu0 }
 0xa2b   :  { %v2172_v5 = vpop.f32.mrb[27].mxu0 }
 0xa2c   :  { %9426 = vmatprep.mubr.msk.f32.mxu0 %vm850_vm4, %v2172_v5 }
 0xa2d   :  { %9427 = vmatmul.mubr.msk.f32.gmra.mrb[18].mxu0 %vm850_vm4, %v9420_v3 }
 0xafc   :  { %v9425_v7 = vpop.f32.mrb[16].mxu0 }
 0xafd   :  { %v10246_v8 = vadd.f32 %v9425_v7, %v8530_v6  ;;  %v2259_v9 = vpop.f32.mrb[17].mxu0 }
 0xafe   :  { %v10247_v10 = vadd.f32 %v8530_v6, %v2259_v9 }
 0xaff   :  { %v2283_v11 = vadd.f32 %v10246_v8, %v11058_v35 }
 0xb00   :  { %v9428_v27 = vpop.f32.mrb[18].mxu0  ;;  %v2282_v24 = vadd.f32 %v10247_v10, %v11056_v33 }
 0xb01   :  { %v2269_v30 = vpop.f32.mrb[19].mxu0  ;;  %v2289_v12 = vsel %vm52_vm0, %v2283_v11, 0.0  ;;  %v10248_v13 = vadd.f32 %v9428_v27, %v8530_v6  ;;  %v8573_v27 = vld [vmem:[%s12377_s9 + $0xc] ss:$0 sm:$0xff] }
 0xb02   :  { %v10249_v36 = vadd.f32 %v8530_v6, %v2269_v30  ;;  %2290 = vadd.xlane.f32.xlu0 %v2289_v12  ;;  %v2286_v15 = vsel %vm52_vm0, %v2282_v24, 0.0 }
 0xb03   :  { %2287 = vadd.xlane.f32.xlu1 %v2286_v15  ;;  %v2285_v28 = vadd.f32 %v10248_v13, %v11072_v43 }
 0xb04   :  { %v2284_v17 = vadd.f32 %v10249_v36, %v11070_v41  ;;  %v8574_v36 = vld [vmem:[%s12377_s9 + $0xd] ss:$0 sm:$0xff] }
 0xb05   :  { %v2295_v29 = vsel %vm52_vm0, %v2285_v28, 0.0 }
 0xb06   :  { %v2292_v26 = vsel %vm52_vm0, %v2284_v17, 0.0 }
 0xb07   :  { %2293 = vadd.xlane.f32.xlu1 %v2292_v26 }
 0xb0b   :  { %2296 = vadd.xlane.f32.xlu1 %v2295_v29 }
 0xb8f   :  { %v2291_v31 = vpop.xlane.xlu0 %2290 }
 0xb90   :  { %v2300_v32 = vmul.f32 0.03125, %v2291_v31  ;;  %v2288_v34 = vpop.xlane.xlu1 %2287 }
 0xb91   :  { %v2299_v37 = vmul.f32 0.03125, %v2288_v34 }
 0xb92   :  { %v2304_v38 = vsub.f32 %v2283_v11, %v2300_v32 }
 0xb93   :  { %v2303_v39 = vsub.f32 %v2282_v24, %v2299_v37 }
 0xb94   :  { %v2294_v40 = vpop.xlane.xlu1 %2293  ;;  %v2308_v42 = vmul.f32 %v2304_v38, %v2304_v38 }
 0xb95   :  { %v2301_v44 = vmul.f32 0.03125, %v2294_v40  ;;  %v2307_v46 = vmul.f32 %v2303_v39, %v2303_v39  ;;  %v2470_v40 = vld [vmem:[%s12378_s6 + $0x78] sm:$0xff] }
 0xb96   :  { %v2314_v45 = vsel %vm52_vm0, %v2308_v42, 0.0 }
 0xb97   :  { %v2305_v47 = vsub.f32 %v2284_v17, %v2301_v44  ;;  %2315 = vadd.xlane.f32.xlu1 %v2314_v45  ;;  %v2311_v21 = vsel %vm52_vm0, %v2307_v46, 0.0  ;;  %v8575_v44 = vld [vmem:[%s12377_s9 + $0xa] ss:$0 sm:$0xff] }
 0xb98   :  { %v2297_v50 = vpop.xlane.xlu1 %2296 }
 0xb99   :  { %v2302_v4 = vmul.f32 0.03125, %v2297_v50  ;;  %v2309_v51 = vmul.f32 %v2305_v47, %v2305_v47 }
 0xb9b   :  { %v2306_v23 = vsub.f32 %v2285_v28, %v2302_v4  ;;  %2312 = vadd.xlane.f32.xlu1 %v2311_v21  ;;  %v2317_v52 = vsel %vm52_vm0, %v2309_v51, 0.0 }
 0xb9d   :  { %v2310_v53 = vmul.f32 %v2306_v23, %v2306_v23 }
 0xb9f   :  { %2318 = vadd.xlane.f32.xlu1 %v2317_v52  ;;  %v2320_v54 = vsel %vm52_vm0, %v2310_v53, 0.0 }
 0xba3   :  { %2321 = vadd.xlane.f32.xlu1 %v2320_v54 }
 0xc24   :  { %v2316_v63 = vpop.xlane.xlu1 %2315 }
 0xc25   :  { %v2324_v0 = vmul.f32 0.03125, %v2316_v63 }
 0xc27   :  { %v2328_v1 = vadd.f32 1e-05, %v2324_v0 }
 0xc28   :  { %v2313_v22 = vpop.xlane.xlu1 %2312 }
 0xc29   :  { %10544 = vrsqrt.f32 %v2328_v1  ;;  %v2323_v57 = vmul.f32 0.03125, %v2313_v22 }
 0xc2b   :  { %v2327_v2 = vadd.f32 1e-05, %v2323_v57 }
 0xc2c   :  { %v2319_v3 = vpop.xlane.xlu1 %2318 }
 0xc2d   :  { %10546 = vrsqrt.f32 %v2327_v2  ;;  %v2325_v5 = vmul.f32 0.03125, %v2319_v3 }
 0xc2f   :  { %v2329_v6 = vadd.f32 1e-05, %v2325_v5 }
 0xc30   :  { %v2322_v7 = vpop.xlane.xlu1 %2321 }
 0xc31   :  { %10548 = vrsqrt.f32 %v2329_v6  ;;  %v2326_v8 = vmul.f32 0.03125, %v2322_v7 }
 0xc33   :  { %v10545_v9 = vpop.eup %10544  ;;  %v2330_v10 = vadd.f32 1e-05, %v2326_v8 }
 0xc34   :  { %v2336_v11 = vmul.f32 %v10545_v9, %v2304_v38 }
 0xc35   :  { %10550 = vrsqrt.f32 %v2330_v10 }
 0xc36   :  { %v2345_v12 = vmul.f32 %v8573_v27, %v2336_v11 }
 0xc37   :  { %v10547_v24 = vpop.eup %10546 }
 0xc38   :  { %v2335_v30 = vmul.f32 %v10547_v24, %v2303_v39  ;;  %v2354_v28 = vadd.f32 %v8574_v36, %v2345_v12  ;;  %v2469_v39 = vld [vmem:[%s12378_s6 + $0x70] sm:$0xff] }
 0xc39   :  { %v10042_v42 = vpack.c.bf16 %v2470_v40, %v2469_v39  ;;  %v2648_v39 = vld [vmem:[%s12378_s6 + $0x88] sm:$0xff] }
 0xc3a   :  { %v2344_v13 = vmul.f32 %v8573_v27, %v2335_v30 }
 0xc3b   :  { %v10549_v15 = vpop.eup %10548 }
 0xc3c   :  { %v2353_v17 = vadd.f32 %v8574_v36, %v2344_v13  ;;  %v2337_v26 = vmul.f32 %v10549_v15, %v2305_v47 }
 0xc3e   :  { %9437 = vmatprep.mubr.msk.f32.mxu1 %vm52_vm0, %v2353_v17  ;;  %v2346_v29 = vmul.f32 %v8573_v27, %v2337_v26 }
 0xc3f   :  { %v10551_v31 = vpop.eup %10550  ;;  %9438 = vmatmul.mubr.msk.f32.vlgmr.msra.gmra.mrb[32].mxu1 %vm52_vm0, %v2354_v28 }
 0xc40   :  { %v2355_v32 = vadd.f32 %v8574_v36, %v2346_v29  ;;  %v2338_v34 = vmul.f32 %v10551_v31, %v2306_v23  ;;  %10041 = vmatpush3.bf16.msra.mxu1 %v10038_v62 }
 0xc41   :  { %10043 = vmatprep.subr.bf16.mxu1 %v10042_v42 }
 0xc42   :  { %9440 = vmatprep.mubr.msk.f32.mxu1 %vm52_vm0, %v2355_v32  ;;  %v2347_v37 = vmul.f32 %v8573_v27, %v2338_v34 }
 0xc44   :  { %v2356_v38 = vadd.f32 %v8574_v36, %v2347_v37  ;;  %10045 = vmatpush3.bf16.msra.mxu1 %v10042_v42  ;;  %v2649_v42 = vld [vmem:[%s12378_s6 + $0x90] sm:$0xff] }
 0xc46   :  { %9441 = vmatmul.mubr.msk.f32.gmra.mrb[34].mxu1 %vm52_vm0, %v2356_v38 }
 0xd12   :  { %v9439_v45 = vpop.f32.mrb[32].mxu1 }
 0xd13   :  { %v2450_v46 = vadd.f32 %v9439_v45, %v8575_v44  ;;  %v2444_v47 = vpop.f32.mrb[33].mxu1 }
 0xd14   :  { %v2445_v50 = vadd.f32 %v8575_v44, %v2444_v47 }
 0xd15   :  { %v2464_v21 = vmax.f32 %v2450_v46, 0.0 }
 0xd16   :  { %v2463_v4 = vmax.f32 %v2445_v50, 0.0 }
 0xd18   :  { %9451 = vmatprep.mubr.msk.f32.mxu1 %vm52_vm0, %v2463_v4 }
 0xd19   :  { %v9442_v51 = vpop.f32.mrb[34].mxu1  ;;  %9452 = vmatmul.mubr.msk.f32.vlgmr.msra.gmra.mrb[36].mxu1 %vm52_vm0, %v2464_v21 }
 0xd1a   :  { %v2460_v23 = vadd.f32 %v9442_v51, %v8575_v44  ;;  %v2454_v52 = vpop.f32.mrb[35].mxu1 }
 0xd1b   :  { %v2455_v53 = vadd.f32 %v8575_v44, %v2454_v52  ;;  %v2650_v44 = vld [vmem:[%s12378_s6 + $0x98] sm:$0xff] }
 0xd1c   :  { %v2466_v55 = vmax.f32 %v2460_v23, 0.0  ;;  %v10050_v45 = vpack.c.bf16 %v2650_v44, %v2649_v42  ;;  %v11467_v42 = vld [vmem:[%s12382_s4] sm:$0xff] }
 0xd1d   :  { %v2465_v54 = vmax.f32 %v2455_v53, 0.0 }
 0xd1f   :  { %9454 = vmatprep.mubr.msk.f32.mxu1 %vm52_vm0, %v2465_v54 }
 0xd20   :  { %9455 = vmatmul.mubr.msk.f32.gmra.mrb[38].mxu1 %vm52_vm0, %v2466_v55 }
 0xdec   :  { %v9453_v49 = vpop.f32.mrb[36].mxu1 }
 0xded   :  { %v2560_v48 = vadd.f32 %v9453_v49, %v8580_v56  ;;  %v2554_v58 = vpop.f32.mrb[37].mxu1 }
 0xdee   :  { %v2555_v59 = vadd.f32 %v8580_v56, %v2554_v58 }
 0xdef   :  { %v2574_v60 = vadd.f32 %v2560_v48, %v2354_v28 }
 0xdf0   :  { %v2573_v61 = vadd.f32 %v2555_v59, %v2353_v17 }
 0xdf1   :  { %v2580_v62 = vsel %vm52_vm0, %v2574_v60, 0.0 }
 0xdf2   :  { %2581 = vadd.xlane.f32.xlu0 %v2580_v62  ;;  %v2577_v63 = vsel %vm52_vm0, %v2573_v61, 0.0 }
 0xdf3   :  { %2578 = vadd.xlane.f32.xlu1 %v2577_v63  ;;  %v9456_v0 = vpop.f32.mrb[38].mxu1 }
 0xdf4   :  { %v2570_v1 = vadd.f32 %v9456_v0, %v8580_v56  ;;  %v2564_v22 = vpop.f32.mrb[39].mxu1 }
 0xdf5   :  { %v2565_v57 = vadd.f32 %v8580_v56, %v2564_v22  ;;  %v8586_v22 = vld [vmem:[%s12377_s9 + $0xf] ss:$0 sm:$0xff] }
 0xdf6   :  { %v2576_v2 = vadd.f32 %v2570_v1, %v2356_v38  ;;  %v2647_v38 = vld [vmem:[%s12378_s6 + $0x80] sm:$0xff] }
 0xdf7   :  { %v2575_v3 = vadd.f32 %v2565_v57, %v2355_v32  ;;  %v10046_v40 = vpack.c.bf16 %v2648_v39, %v2647_v38  ;;  %v11461_v38 = vld [vmem:[%s12382_s4 + $0x8] sm:$0xff] }
 0xdf8   :  { %v2586_v5 = vsel %vm52_vm0, %v2576_v2, 0.0 }
 0xdf9   :  { %2587 = vadd.xlane.f32.xlu0 %v2586_v5  ;;  %v2583_v6 = vsel %vm52_vm0, %v2575_v3, 0.0  ;;  %10047 = vmatprep.subr.bf16.mxu0 %v10046_v40 }
 0xdfa   :  { %2584 = vadd.xlane.f32.xlu1 %v2583_v6  ;;  %10049 = vmatpush3.bf16.msra.mxu0 %v10046_v40 }
 0xdfb   :  { %10051 = vmatprep.subr.bf16.mxu0 %v10050_v45 }
 0xdfe   :  { %10053 = vmatpush3.bf16.msra.mxu0 %v10050_v45 }
 0xe7f   :  { %v2582_v7 = vpop.xlane.xlu0 %2581 }
 0xe80   :  { %v2590_v8 = vmul.f32 0.03125, %v2582_v7  ;;  %v2579_v9 = vpop.xlane.xlu1 %2578 }
 0xe81   :  { %v2589_v10 = vmul.f32 0.03125, %v2579_v9 }
 0xe82   :  { %v2594_v11 = vsub.f32 %v2574_v60, %v2590_v8 }
 0xe83   :  { %v2593_v27 = vsub.f32 %v2573_v61, %v2589_v10  ;;  %v8585_v61 = vld [vmem:[%s12377_s9 + $0xe] ss:$0 sm:$0xff] }
 0xe84   :  { %v2598_v24 = vmul.f32 %v2594_v11, %v2594_v11 }
 0xe85   :  { %v2597_v30 = vmul.f32 %v2593_v27, %v2593_v27 }
 0xe86   :  { %v2588_v12 = vpop.xlane.xlu0 %2587  ;;  %v2604_v13 = vsel %vm52_vm0, %v2598_v24, 0.0  ;;  %v8587_v24 = vld [vmem:[%s12377_s9 + $0x10] ss:$0 sm:$0xff] }
 0xe87   :  { %v2592_v36 = vmul.f32 0.03125, %v2588_v12  ;;  %2605 = vadd.xlane.f32.xlu0 %v2604_v13  ;;  %v2585_v15 = vpop.xlane.xlu1 %2584  ;;  %v2601_v17 = vsel %vm52_vm0, %v2597_v30, 0.0 }
 0xe88   :  { %v2591_v26 = vmul.f32 0.03125, %v2585_v15  ;;  %2602 = vadd.xlane.f32.xlu1 %v2601_v17 }
 0xe89   :  { %v2596_v28 = vsub.f32 %v2576_v2, %v2592_v36 }
 0xe8a   :  { %v2595_v29 = vsub.f32 %v2575_v3, %v2591_v26 }
 0xe8b   :  { %v2600_v31 = vmul.f32 %v2596_v28, %v2596_v28 }
 0xe8c   :  { %v2599_v32 = vmul.f32 %v2595_v29, %v2595_v29 }
 0xe8d   :  { %v2610_v34 = vsel %vm52_vm0, %v2600_v31, 0.0 }
 0xe8e   :  { %2611 = vadd.xlane.f32.xlu0 %v2610_v34  ;;  %v2607_v37 = vsel %vm52_vm0, %v2599_v32, 0.0 }
 0xe8f   :  { %2608 = vadd.xlane.f32.xlu1 %v2607_v37 }
 0xea0   :  { %10365 = vrot.lane.b32.xlu1 %v11110_v18, %s10822_s30 }
 0xf14   :  { %v2606_v46 = vpop.xlane.xlu0 %2605 }
 0xf15   :  { %v2614_v47 = vmul.f32 0.03125, %v2606_v46  ;;  %v2603_v50 = vpop.xlane.xlu1 %2602 }
 0xf16   :  { %v2613_v4 = vmul.f32 0.03125, %v2603_v50  ;;  %v11475_v50 = vld [vmem:[%s12382_s4 + $0x18] sm:$0xff] }
 0xf17   :  { %v2618_v21 = vadd.f32 1e-05, %v2614_v47 }
 0xf18   :  { %v2617_v51 = vadd.f32 1e-05, %v2613_v4 }
 0xf19   :  { %10552 = vrsqrt.f32 %v2618_v21 }
 0xf1a   :  { %10554 = vrsqrt.f32 %v2617_v51 }
 0xf1b   :  { %v2612_v23 = vpop.xlane.xlu0 %2611 }
 0xf1c   :  { %v2616_v52 = vmul.f32 0.03125, %v2612_v23  ;;  %v2609_v53 = vpop.xlane.xlu1 %2608  ;;  %v11482_v23 = vld [vmem:[%s12382_s4 + $0x10] sm:$0xff] }
 0xf1d   :  { %v2615_v54 = vmul.f32 0.03125, %v2609_v53 }
 0xf1e   :  { %v2620_v55 = vadd.f32 1e-05, %v2616_v52 }
 0xf1f   :  { %v2619_v56 = vadd.f32 1e-05, %v2615_v54 }
 0xf20   :  { %10556 = vrsqrt.f32 %v2620_v55  ;;  %v10366_v49 = vpop.permute.xlu1 %10365 }
 0xf21   :  { %10558 = vrsqrt.f32 %v2619_v56  ;;  %v10368_v48 = vunpack.i.h.bf16 %v10366_v49  ;;  %v10367_v58 = vunpack.i.l.bf16 %v10366_v49 }
 0xf23   :  { %v10553_v59 = vpop.eup %10552  ;;  %v10054_v60 = vpack.c.bf16 %v10368_v48, %v10367_v58 }
 0xf24   :  { %v10555_v62 = vpop.eup %10554  ;;  %v2626_v63 = vmul.f32 %v10553_v59, %v2594_v11 }
 0xf25   :  { %10056 = vmatprep.subr.msk.bf16.mxu1 %vm11106_vm5, %v10054_v60  ;;  %v2625_v0 = vmul.f32 %v10555_v62, %v2593_v27 }
 0xf26   :  { %10059 = vmatpush3.bf16.xpose.msk.msra.mxu1 %vm11106_vm5, %v10054_v60  ;;  %v2635_v1 = vmul.f32 %v8585_v61, %v2626_v63 }
 0xf27   :  { %v2634_v57 = vmul.f32 %v8585_v61, %v2625_v0 }
 0xf28   :  { %v11421_v5 = vadd.f32 %v8586_v22, %v2635_v1 }
 0xf29   :  { %v11419_v2 = vadd.f32 %v8586_v22, %v2634_v57 }
 0xf2a   :  { %v10557_v3 = vpop.eup %10556 }
 0xf2b   :  { %v10559_v6 = vpop.eup %10558  ;;  %9465 = vmatprep.mubr.msk.f32.mxu0 %vm52_vm0, %v11419_v2  ;;  %v2628_v7 = vmul.f32 %v10557_v3, %v2596_v28 }
 0xf2c   :  { %9466 = vmatmul.mubr.msk.f32.vlgmr.msra.gmra.mrb[28].mxu0 %vm52_vm0, %v11421_v5  ;;  %v2627_v8 = vmul.f32 %v10559_v6, %v2595_v29 }
 0xf2d   :  { %v2637_v9 = vmul.f32 %v8585_v61, %v2628_v7 }
 0xf2e   :  { %v2636_v10 = vmul.f32 %v8585_v61, %v2627_v8 }
 0xf2f   :  { %v11429_v27 = vadd.f32 %v8586_v22, %v2637_v9 }
 0xf30   :  { %v11427_v11 = vadd.f32 %v8586_v22, %v2636_v10 }
 0xf32   :  { %9468 = vmatprep.mubr.msk.f32.mxu0 %vm52_vm0, %v11427_v11 }
 0xf33   :  { %9469 = vmatmul.mubr.msk.f32.gmra.mrb[30].mxu0 %vm52_vm0, %v11429_v27 }
 0xfff   :  { %v9467_v30 = vpop.f32.mrb[28].mxu0 }
0x1000   :  { %v2740_v12 = vadd.f32 %v9467_v30, %v8587_v24  ;;  %v2734_v13 = vpop.f32.mrb[29].mxu0 }
0x1001   :  { %v2735_v36 = vadd.f32 %v8587_v24, %v2734_v13 }
0x1002   :  { %2754 = vst.msk [vmem:[#allocation4 + $0x8] sm:$0xff] %vm52_vm0, %v2740_v12 }
0x1003   :  { %2753 = vst.msk [vmem:[#allocation4] sm:$0xff] %vm52_vm0, %v2735_v36 }
0x1006   :  { %v9470_v15 = vpop.f32.mrb[30].mxu0 }
0x1007   :  { %v2750_v17 = vadd.f32 %v9470_v15, %v8587_v24  ;;  %v2744_v26 = vpop.f32.mrb[31].mxu0 }
0x1008   :  { %v2745_v28 = vadd.f32 %v8587_v24, %v2744_v26 }
0x1009   :  { %2756 = vst.msk [vmem:[#allocation4 + $0x18] sm:$0xff] %vm52_vm0, %v2750_v17  ;;  %v11446_v31 = vld [vmem:[#allocation4 + $0x8] sm:$0xff] }
0x100a   :  { %2755 = vst.msk [vmem:[#allocation4 + $0x10] sm:$0xff] %vm52_vm0, %v2745_v28  ;;  %v11442_v29 = vld [vmem:[#allocation4] sm:$0xff] }
0x100b   :  { %9475 = vmatprep.mubr.msk.f32.mxu1 %vm850_vm4, %v11442_v29 }
0x100c   :  { %9476 = vmatmul.mubr.msk.f32.vlgmr.msra.gmra.mrb[40].mxu1 %vm850_vm4, %v11446_v31 }
0x1010   :  { %v11454_v34 = vld [vmem:[#allocation4 + $0x18] sm:$0xff] }
0x1011   :  { %v11450_v32 = vld [vmem:[#allocation4 + $0x10] sm:$0xff] }
0x1012   :  { %9478 = vmatprep.mubr.msk.f32.mxu1 %vm850_vm4, %v11450_v32 }
0x1013   :  { %9479 = vmatmul.mubr.msk.f32.gmra.mrb[42].mxu1 %vm850_vm4, %v11454_v34 }
0x10df   :  { %v9477_v37 = vpop.f32.mrb[40].mxu1 }
0x10e0   :  { %v2858_v39 = vadd.f32 %v11461_v38, %v9477_v37  ;;  %v2852_v40 = vpop.f32.mrb[41].mxu1 }
0x10e1   :  { %v2853_v44 = vadd.f32 %v11467_v42, %v2852_v40 }
0x10e2   :  { %v2874_v45 = vsel %vm954_vm6, %v2858_v39, -inf }
0x10e3   :  { %2875 = vmax.xlane.f32.xlu0 %v2874_v45  ;;  %v2871_v47 = vsel %vm954_vm6, %v2853_v44, -inf }
0x10e6   :  { %v9480_v46 = vpop.f32.mrb[42].mxu1 }
0x10e7   :  { %v2868_v4 = vadd.f32 %v11475_v50, %v9480_v46  ;;  %v2862_v21 = vpop.f32.mrb[43].mxu1  ;;  %2872 = vmax.xlane.f32.xlu0 %v2871_v47 }
0x10e8   :  { %v2863_v52 = vadd.f32 %v11482_v23, %v2862_v21 }
0x10e9   :  { %v2880_v51 = vsel %vm954_vm6, %v2868_v4, -inf }
0x10ea   :  { %v2877_v53 = vsel %vm954_vm6, %v2863_v52, -inf }
0x10eb   :  { %2881 = vmax.xlane.f32.xlu0 %v2880_v51 }
0x10ef   :  { %2878 = vmax.xlane.f32.xlu0 %v2877_v53 }
0x1105   :  { %10370 = vrot.lane.b32.xlu0 %v11110_v18, %s10823_s1 }
0x1170   :  { %v2876_v54 = vpop.xlane.xlu0 %2875 }
0x1171   :  { %v2884_v55 = vsub.f32 %v2858_v39, %v2876_v54 }
0x1173   :  { %v2889_v56 = vmul.f32 1.442695, %v2884_v55 }
0x1174   :  { %v2873_v49 = vpop.xlane.xlu0 %2872 }
0x1175   :  { %10560 = vpow2.f32 %v2889_v56  ;;  %v2883_v48 = vsub.f32 %v2853_v44, %v2873_v49 }
0x1177   :  { %v2887_v58 = vmul.f32 1.442695, %v2883_v48 }
0x1178   :  { %v2882_v59 = vpop.xlane.xlu0 %2881 }
0x1179   :  { %10562 = vpow2.f32 %v2887_v58  ;;  %v2886_v6 = vsub.f32 %v2868_v4, %v2882_v59 }
0x117b   :  { %v2893_v7 = vmul.f32 1.442695, %v2886_v6 }
0x117c   :  { %v2879_v60 = vpop.xlane.xlu0 %2878 }
0x117d   :  { %v2885_v8 = vsub.f32 %v2863_v52, %v2879_v60  ;;  %10564 = vpow2.f32 %v2893_v7 }
0x117f   :  { %v10561_v61 = vpop.eup %10560  ;;  %v2891_v9 = vmul.f32 1.442695, %v2885_v8 }
0x1180   :  { %v10371_v62 = vpop.permute.xlu0 %10370  ;;  %v2898_v63 = vsel %vm954_vm6, %v10561_v61, 0.0 }
0x1181   :  { %v10373_v0 = vunpack.i.h.bf16 %v10371_v62  ;;  %v10372_v1 = vunpack.i.l.bf16 %v10371_v62  ;;  %2899 = vadd.xlane.f32.xlu0 %v2898_v63  ;;  %10566 = vpow2.f32 %v2891_v9  ;;  %v2915_v63 = vld [vmem:[%s12378_s6 + $0xa0] sm:$0xff] }
0x1182   :  { %9491 = vmatprep.subr.mxu1 %v2915_v63 }
0x1183   :  { %v10563_v22 = vpop.eup %10562  ;;  %v10060_v57 = vpack.c.bf16 %v10373_v0, %v10372_v1  ;;  %9492 = vmatpush3.msra.mxu1 %v2915_v63 }
0x1184   :  { %v2895_v3 = vsel %vm954_vm6, %v10563_v22, 0.0 }
0x1185   :  { %2896 = vadd.xlane.f32.xlu1 %v2895_v3  ;;  %10061 = vmatprep.subr.bf16.mxu0 %v10060_v57 }
0x1186   :  { %10063 = vmatpush3.bf16.msra.mxu0 %v10060_v57 }
0x1187   :  { %v10565_v10 = vpop.eup %10564 }
0x1188   :  { %v2904_v24 = vsel %vm954_vm6, %v10565_v10, 0.0 }
0x118b   :  { %v10567_v30 = vpop.eup %10566 }
0x118c   :  { %v2901_v12 = vsel %vm954_vm6, %v10567_v30, 0.0 }
0x1196   :  { %10375 = vrot.lane.b32.xlu1 %v11110_v18, %s10824_s14 }
0x1197   :  { %10380 = vrot.lane.b32.xlu0 %v11110_v18, %s10825_s18 }
0x119a   :  { %3482 = vrot.lane.b32.xlu1 %v11442_v29, %s10817_s17 }
0x119b   :  { %3124 = vrot.lane.b32.xlu0 %v11442_v29, %s10815_s15 }
0x119e   :  { %3486 = vrot.lane.b32.xlu1 %v11450_v32, %s10817_s17 }
0x11ba   :  { %2905 = vadd.xlane.f32.xlu0 %v2904_v24 }
0x11be   :  { %2902 = vadd.xlane.f32.xlu0 %v2901_v12 }
0x11d4   :  { %3126 = vrot.lane.b32.xlu0 %v11446_v31, %s10815_s15 }
0x11d8   :  { %3128 = vrot.lane.b32.xlu0 %v11450_v32, %s10815_s15 }
0x11dc   :  { %3130 = vrot.lane.b32.xlu0 %v11454_v34, %s10815_s15 }
0x11e0   :  { %3484 = vrot.lane.b32.xlu0 %v11446_v31, %s10817_s17 }
0x11e4   :  { %3488 = vrot.lane.b32.xlu0 %v11454_v34, %s10817_s17 }
0x120e   :  { %v2900_v13 = vpop.xlane.xlu0 %2899 }
0x120f   :  { %10568 = vrcp.f32 %v2900_v13 }
0x1212   :  { %v2897_v36 = vpop.xlane.xlu1 %2896  ;;  %v10381_v37 = vpop.permute.xlu0 %10380 }
0x1213   :  { %10570 = vrcp.f32 %v2897_v36  ;;  %v10383_v44 = vunpack.i.h.bf16 %v10381_v37  ;;  %v10382_v45 = vunpack.i.l.bf16 %v10381_v37 }
0x1215   :  { %v10074_v4 = vpack.c.bf16 %v10383_v44, %v10382_v45 }
0x1216   :  { %v10376_v15 = vpop.permute.xlu1 %10375  ;;  %v3125_v21 = vpop.permute.xlu0 %3124 }
0x1217   :  { %v10378_v17 = vunpack.i.h.bf16 %v10376_v15  ;;  %v10377_v26 = vunpack.i.l.bf16 %v10376_v15 }
0x1219   :  { %v10064_v28 = vpack.c.bf16 %v10378_v17, %v10377_v26  ;;  %v10569_v39 = vpop.eup %10568 }
0x121a   :  { %v2912_v47 = vmul.f32 %v10569_v39, %v10561_v61  ;;  %v3483_v59 = vpop.permute.xlu1 %3482 }
0x121b   :  { %10066 = vmatprep.subr.msk.bf16.mxu0 %vm11106_vm5, %v10064_v28 }
0x121d   :  { %v10571_v40 = vpop.eup %10570 }
0x121e   :  { %v2911_v46 = vmul.f32 %v10571_v40, %v10563_v22  ;;  %v3487_v61 = vpop.permute.xlu1 %3486 }
0x1220   :  { %9485 = vmatprep.mubr.msk.f32.mxu0 %vm954_vm6, %v2911_v46 }
0x1221   :  { %9486 = vmatmul.mubr.msk.f32.vlgmr.msra.gmra.mrb[32].mxu0 %vm954_vm6, %v2912_v47 }
0x1222   :  { %10069 = vmatpush3.bf16.xpose.msk.msra.mxu0 %vm11106_vm5, %v10064_v28 }
0x1223   :  { %10076 = vmatprep.subr.msk.bf16.mxu0 %vm11106_vm5, %v10074_v4 }
0x1247   :  { %v2906_v51 = vpop.xlane.xlu0 %2905 }
0x1248   :  { %10572 = vrcp.f32 %v2906_v51 }
0x124b   :  { %v2903_v52 = vpop.xlane.xlu0 %2902 }
0x124c   :  { %10574 = vrcp.f32 %v2903_v52 }
0x124f   :  { %v3127_v53 = vpop.permute.xlu0 %3126 }
0x1252   :  { %v10573_v54 = vpop.eup %10572 }
0x1253   :  { %v3129_v56 = vpop.permute.xlu0 %3128  ;;  %v2914_v48 = vmul.f32 %v10573_v54, %v10565_v10 }
0x1256   :  { %v10575_v55 = vpop.eup %10574 }
0x1257   :  { %v2913_v49 = vmul.f32 %v10575_v55, %v10567_v30  ;;  %v3131_v58 = vpop.permute.xlu0 %3130 }
0x1259   :  { %9488 = vmatprep.mubr.msk.f32.mxu0 %vm954_vm6, %v2913_v49 }
0x125a   :  { %9489 = vmatmul.mubr.msk.f32.gmra.mrb[34].mxu0 %vm954_vm6, %v2914_v48 }
0x125b   :  { %9503 = vmatprep.mubr.msk.f32.mxu0 %vm850_vm4, %v3125_v21  ;;  %v3485_v60 = vpop.permute.xlu0 %3484 }
0x125e   :  { %9504 = vmatmul.mubr.msk.f32.vlgmr.msra.gmra.mrb[36].mxu0 %vm850_vm4, %v3127_v53 }
0x125f   :  { %10079 = vmatpush3.bf16.xpose.msk.msra.mxu0 %vm11106_vm5, %v10074_v4  ;;  %9506 = vmatprep.mubr.msk.f32.mxu0 %vm850_vm4, %v3129_v56  ;;  %v3489_v62 = vpop.permute.xlu0 %3488 }
0x1262   :  { %9507 = vmatmul.mubr.msk.f32.gmra.mrb[38].mxu0 %vm850_vm4, %v3131_v58 }
0x1263   :  { %9531 = vmatprep.mubr.msk.f32.mxu0 %vm850_vm4, %v3483_v59 }
0x1266   :  { %9532 = vmatmul.mubr.msk.f32.vlgmr.msra.gmra.mrb[40].mxu0 %vm850_vm4, %v3485_v60 }
0x1267   :  { %9534 = vmatprep.mubr.msk.f32.mxu0 %vm850_vm4, %v3487_v61 }
0x126a   :  { %9535 = vmatmul.mubr.msk.f32.gmra.mrb[42].mxu0 %vm850_vm4, %v3489_v62 }
0x12f4   :  { %v9487_v0 = vpop.f32.mrb[32].mxu0 }
0x12f5   :  { %v3000_v1 = vpop.f32.mrb[33].mxu0 }
0x12f6   :  { %9493 = vmatprep.mubr.msk.f32.mxu1 %vm850_vm4, %v3000_v1 }
0x12f7   :  { %9494 = vmatmul.mubr.msk.f32.vlgmr.msra.gmra.mrb[44].mxu1 %vm850_vm4, %v9487_v0 }
0x132d   :  { %v9490_v22 = vpop.f32.mrb[34].mxu0 }
0x132e   :  { %v3010_v57 = vpop.f32.mrb[35].mxu0 }
0x132f   :  { %9496 = vmatprep.mubr.msk.f32.mxu1 %vm850_vm4, %v3010_v57 }
0x1330   :  { %9497 = vmatmul.mubr.msk.f32.gmra.mrb[46].mxu1 %vm850_vm4, %v9490_v22 }
0x1331   :  { %v9505_v3 = vpop.f32.mrb[36].mxu0 }
0x1332   :  { %v3214_v6 = vpop.f32.mrb[37].mxu0  ;;  %v3220_v62 = vadd.f32 %v11461_v38, %v9505_v3 }
0x1333   :  { %v3215_v63 = vadd.f32 %v11467_v42, %v3214_v6 }
0x1335   :  { %v9508_v7 = vpop.f32.mrb[38].mxu0  ;;  %v3233_v22 = vsel %vm954_vm6, %v3215_v63, -inf }
0x1336   :  { %v3224_v8 = vpop.f32.mrb[39].mxu0  ;;  %v3230_v1 = vadd.f32 %v11475_v50, %v9508_v7 }
0x1337   :  { %v3225_v0 = vadd.f32 %v11482_v23, %v3224_v8 }
0x1339   :  { %v9533_v9 = vpop.f32.mrb[40].mxu0 }
0x133a   :  { %v3578_v10 = vadd.f32 %v11461_v38, %v9533_v9  ;;  %v3572_v24 = vpop.f32.mrb[41].mxu0 }
0x133b   :  { %v3573_v30 = vadd.f32 %v11467_v42, %v3572_v24 }
0x133c   :  { %v3594_v12 = vsel %vm954_vm6, %v3578_v10, -inf }
0x133d   :  { %3595 = vmax.xlane.f32.xlu0 %v3594_v12  ;;  %v9536_v13 = vpop.f32.mrb[42].mxu0  ;;  %v3591_v36 = vsel %vm954_vm6, %v3573_v30, -inf }
0x133e   :  { %v3588_v15 = vadd.f32 %v11475_v50, %v9536_v13  ;;  %v3582_v17 = vpop.f32.mrb[43].mxu0  ;;  %3592 = vmax.xlane.f32.xlu1 %v3591_v36 }
0x133f   :  { %v3583_v26 = vadd.f32 %v11482_v23, %v3582_v17 }
0x1340   :  { %v3600_v28 = vsel %vm954_vm6, %v3588_v15, -inf }
0x1341   :  { %v3597_v37 = vsel %vm954_vm6, %v3583_v26, -inf }
0x1342   :  { %3598 = vmax.xlane.f32.xlu0 %v3597_v37  ;;  %3601 = vmax.xlane.f32.xlu1 %v3600_v28 }
0x13ca   :  { %v3596_v39 = vpop.xlane.xlu0 %3595 }
0x13cb   :  { %v3604_v40 = vsub.f32 %v3578_v10, %v3596_v39  ;;  %v3593_v44 = vpop.xlane.xlu1 %3592 }
0x13cc   :  { %v3603_v45 = vsub.f32 %v3573_v30, %v3593_v44 }
0x13cd   :  { %v3609_v46 = vmul.f32 1.442695, %v3604_v40 }
0x13ce   :  { %v3607_v47 = vmul.f32 1.442695, %v3603_v45 }
0x13cf   :  { %10576 = vpow2.f32 %v3609_v46  ;;  %v3599_v4 = vpop.xlane.xlu0 %3598  ;;  %v3602_v21 = vpop.xlane.xlu1 %3601 }
0x13d0   :  { %10578 = vpow2.f32 %v3607_v47  ;;  %v3605_v51 = vsub.f32 %v3583_v26, %v3599_v4  ;;  %v3606_v52 = vsub.f32 %v3588_v15, %v3602_v21 }
0x13d2   :  { %v3611_v53 = vmul.f32 1.442695, %v3605_v51  ;;  %v3613_v54 = vmul.f32 1.442695, %v3606_v52 }
0x13d4   :  { %10580 = vpow2.f32 %v3611_v53 }
0x13d5   :  { %10582 = vpow2.f32 %v3613_v54 }
0x13d9   :  { %v10577_v55 = vpop.eup %10576 }
0x13da   :  { %v10579_v56 = vpop.eup %10578  ;;  %v3618_v49 = vsel %vm954_vm6, %v10577_v55, 0.0 }
0x13db   :  { %3619 = vadd.xlane.f32.xlu1 %v3618_v49  ;;  %v3615_v48 = vsel %vm954_vm6, %v10579_v56, 0.0 }
0x13dc   :  { %3616 = vadd.xlane.f32.xlu0 %v3615_v48 }
0x13de   :  { %v10581_v58 = vpop.eup %10580 }
0x13df   :  { %v10583_v59 = vpop.eup %10582  ;;  %v3621_v60 = vsel %vm954_vm6, %v10581_v58, 0.0 }
0x13e0   :  { %3622 = vadd.xlane.f32.xlu0 %v3621_v60  ;;  %v3624_v61 = vsel %vm954_vm6, %v10583_v59, 0.0 }
0x13e1   :  { %3625 = vadd.xlane.f32.xlu1 %v3624_v61 }
0x13f2   :  { %10390 = vrot.lane.b32.xlu1 %v11110_v18, %s10826_s21 }
0x13f6   :  { %3840 = vrot.lane.b32.xlu1 %v11442_v29, %s10819_s19  ;;  %10385 = vrot.lane.b32.xlu0 %v11110_v18, %s10827_s22  ;;  %v3236_v29 = vsel %vm954_vm6, %v3220_v62, -inf }
0x13fa   :  { %3844 = vrot.lane.b32.xlu1 %v11450_v32, %s10819_s19  ;;  %3842 = vrot.lane.b32.xlu0 %v11446_v31, %s10819_s19  ;;  %v3239_v32 = vsel %vm954_vm6, %v3225_v0, -inf  ;;  %v3242_v31 = vsel %vm954_vm6, %v3230_v1, -inf }
0x13fe   :  { %3846 = vrot.lane.b32.xlu0 %v11454_v34, %s10819_s19 }
0x141d   :  { %3237 = vmax.xlane.f32.xlu0 %v3236_v29 }
0x141e   :  { %3234 = vmax.xlane.f32.xlu1 %v3233_v22 }
0x1421   :  { %3240 = vmax.xlane.f32.xlu0 %v3239_v32 }
0x1422   :  { %3243 = vmax.xlane.f32.xlu1 %v3242_v31 }
0x1468   :  { %v3620_v34 = vpop.xlane.xlu1 %3619 }
0x1469   :  { %v3617_v57 = vpop.xlane.xlu0 %3616 }
0x146a   :  { %10584 = vrcp.f32 %v3617_v57 }
0x146b   :  { %10586 = vrcp.f32 %v3620_v34 }
0x146d   :  { %v3623_v3 = vpop.xlane.xlu0 %3622 }
0x146e   :  { %10588 = vrcp.f32 %v3623_v3  ;;  %v3626_v6 = vpop.xlane.xlu1 %3625 }
0x146f   :  { %10590 = vrcp.f32 %v3626_v6 }
0x1471   :  { %v10386_v8 = vpop.permute.xlu0 %10385 }
0x1472   :  { %v10388_v7 = vunpack.i.h.bf16 %v10386_v8  ;;  %v10387_v9 = vunpack.i.l.bf16 %v10386_v8  ;;  %v10391_v10 = vpop.permute.xlu1 %10390 }
0x1473   :  { %v10393_v24 = vunpack.i.h.bf16 %v10391_v10  ;;  %v10392_v30 = vunpack.i.l.bf16 %v10391_v10 }
0x1474   :  { %v10585_v12 = vpop.eup %10584  ;;  %v10080_v13 = vpack.c.bf16 %v10388_v7, %v10387_v9 }
0x1475   :  { %v10587_v36 = vpop.eup %10586  ;;  %v3631_v15 = vmul.f32 %v10585_v12, %v10579_v56  ;;  %v10084_v17 = vpack.c.bf16 %v10393_v24, %v10392_v30  ;;  %v3843_v45 = vpop.permute.xlu0 %3842 }
0x1476   :  { %10081 = vmatprep.subr.bf16.mxu0 %v10080_v13  ;;  %v3632_v28 = vmul.f32 %v10587_v36, %v10577_v55  ;;  %v3841_v44 = vpop.permute.xlu1 %3840 }
0x1477   :  { %10083 = vmatpush3.bf16.msra.mxu0 %v10080_v13  ;;  %9541 = vmatprep.mubr.msk.f32.mxu0 %vm954_vm6, %v3631_v15 }
0x1478   :  { %v10589_v26 = vpop.eup %10588  ;;  %10086 = vmatprep.subr.msk.bf16.mxu0 %vm11106_vm5, %v10084_v17 }
0x1479   :  { %v10591_v37 = vpop.eup %10590  ;;  %v3633_v39 = vmul.f32 %v10589_v26, %v10581_v58  ;;  %v3847_v47 = vpop.permute.xlu0 %3846 }
0x147a   :  { %9542 = vmatmul.mubr.msk.f32.vlgmr.msra.gmra.mrb[44].mxu0 %vm954_vm6, %v3632_v28  ;;  %v3634_v40 = vmul.f32 %v10591_v37, %v10583_v59  ;;  %v3845_v46 = vpop.permute.xlu1 %3844 }
0x147b   :  { %9544 = vmatprep.mubr.msk.f32.mxu0 %vm954_vm6, %v3633_v39 }
0x147e   :  { %9545 = vmatmul.mubr.msk.f32.gmra.mrb[46].mxu0 %vm954_vm6, %v3634_v40 }
0x147f   :  { %9559 = vmatprep.mubr.msk.f32.mxu0 %vm850_vm4, %v3841_v44 }
0x1480   :  { %10089 = vmatpush3.bf16.xpose.msk.msra.mxu0 %vm11106_vm5, %v10084_v17 }
0x1487   :  { %9560 = vmatmul.mubr.msk.f32.vlgmr.msra.gmra.mrb[48].mxu0 %vm850_vm4, %v3843_v45 }
0x1488   :  { %9562 = vmatprep.mubr.msk.f32.mxu0 %vm850_vm4, %v3845_v46 }
0x148b   :  { %9563 = vmatmul.mubr.msk.f32.gmra.mrb[50].mxu0 %vm850_vm4, %v3847_v47 }
0x14aa   :  { %v3238_v4 = vpop.xlane.xlu0 %3237 }
0x14ab   :  { %v3246_v21 = vsub.f32 %v3220_v62, %v3238_v4  ;;  %v3235_v51 = vpop.xlane.xlu1 %3234 }
0x14ac   :  { %v3245_v52 = vsub.f32 %v3215_v63, %v3235_v51 }
0x14ad   :  { %v3251_v53 = vmul.f32 1.442695, %v3246_v21 }
0x14ae   :  { %v3249_v54 = vmul.f32 1.442695, %v3245_v52  ;;  %v3241_v55 = vpop.xlane.xlu0 %3240 }
0x14af   :  { %10592 = vpow2.f32 %v3251_v53  ;;  %v3247_v56 = vsub.f32 %v3225_v0, %v3241_v55  ;;  %v3244_v49 = vpop.xlane.xlu1 %3243 }
0x14b0   :  { %10594 = vpow2.f32 %v3249_v54  ;;  %v3248_v48 = vsub.f32 %v3230_v1, %v3244_v49 }
0x14b1   :  { %v3253_v58 = vmul.f32 1.442695, %v3247_v56 }
0x14b2   :  { %v3255_v59 = vmul.f32 1.442695, %v3248_v48 }
0x14b3   :  { %10596 = vpow2.f32 %v3253_v58 }
0x14b4   :  { %10598 = vpow2.f32 %v3255_v59 }
0x14b9   :  { %v10593_v60 = vpop.eup %10592 }
0x14ba   :  { %v10595_v61 = vpop.eup %10594  ;;  %v3260_v29 = vsel %vm954_vm6, %v10593_v60, 0.0 }
0x14bb   :  { %3261 = vadd.xlane.f32.xlu1 %v3260_v29  ;;  %v3257_v62 = vsel %vm954_vm6, %v10595_v61, 0.0 }
0x14bc   :  { %3258 = vadd.xlane.f32.xlu0 %v3257_v62 }
0x14bd   :  { %v10597_v63 = vpop.eup %10596 }
0x14be   :  { %v10599_v22 = vpop.eup %10598  ;;  %v3263_v32 = vsel %vm954_vm6, %v10597_v63, 0.0 }
0x14bf   :  { %v3266_v0 = vsel %vm954_vm6, %v10599_v22, 0.0 }
0x14c0   :  { %3264 = vadd.xlane.f32.xlu0 %v3263_v32  ;;  %3267 = vadd.xlane.f32.xlu1 %v3266_v0 }
0x14d6   :  { %10395 = vrot.lane.b32.xlu0 %v11110_v18, %s10828_s3 }
0x1548   :  { %v3262_v1 = vpop.xlane.xlu1 %3261 }
0x1549   :  { %v3259_v31 = vpop.xlane.xlu0 %3258 }
0x154a   :  { %10600 = vrcp.f32 %v3259_v31 }
0x154b   :  { %10602 = vrcp.f32 %v3262_v1 }
0x154d   :  { %v3265_v34 = vpop.xlane.xlu0 %3264  ;;  %v3268_v57 = vpop.xlane.xlu1 %3267 }
0x154e   :  { %10604 = vrcp.f32 %v3265_v34  ;;  %v11589_v3 = vpop.f32.mrb[44].mxu0 }
0x154f   :  { %10606 = vrcp.f32 %v3268_v57  ;;  %v11591_v6 = vpop.f32.mrb[45].mxu0 }
0x1551   :  { %v10396_v8 = vpop.permute.xlu0 %10395  ;;  %v11593_v7 = vpop.f32.mrb[46].mxu0 }
0x1552   :  { %v10398_v9 = vunpack.i.h.bf16 %v10396_v8  ;;  %v10397_v10 = vunpack.i.l.bf16 %v10396_v8  ;;  %v11595_v24 = vpop.f32.mrb[47].mxu0 }
0x1554   :  { %v10601_v30 = vpop.eup %10600  ;;  %v10070_v12 = vpack.c.bf16 %v10398_v9, %v10397_v10 }
0x1555   :  { %v10603_v13 = vpop.eup %10602  ;;  %v3273_v36 = vmul.f32 %v10601_v30, %v10595_v61 }
0x1556   :  { %10071 = vmatprep.subr.bf16.mxu1 %v10070_v12  ;;  %v3274_v17 = vmul.f32 %v10603_v13, %v10593_v60 }
0x1557   :  { %10073 = vmatpush3.bf16.msra.mxu1 %v10070_v12  ;;  %9513 = vmatprep.mubr.msk.f32.mxu1 %vm954_vm6, %v3273_v36 }
0x1558   :  { %v10605_v15 = vpop.eup %10604 }
0x1559   :  { %v10607_v26 = vpop.eup %10606  ;;  %v3275_v28 = vmul.f32 %v10605_v15, %v10597_v63 }
0x155a   :  { %9514 = vmatmul.mubr.msk.f32.vlgmr.msra.gmra.mrb[48].mxu1 %vm954_vm6, %v3274_v17  ;;  %v9561_v37 = vpop.f32.mrb[48].mxu0  ;;  %v3276_v44 = vmul.f32 %v10607_v26, %v10599_v22 }
0x155b   :  { %9516 = vmatprep.mubr.msk.f32.mxu1 %vm954_vm6, %v3275_v28  ;;  %v3936_v39 = vadd.f32 %v11461_v38, %v9561_v37  ;;  %v3930_v40 = vpop.f32.mrb[49].mxu0 }
0x155c   :  { %v3931_v45 = vadd.f32 %v11467_v42, %v3930_v40  ;;  %v3277_v42 = vld [vmem:[%s12378_s6 + $0xa8] sm:$0xff] }
0x155d   :  { %v3952_v46 = vsel %vm954_vm6, %v3936_v39, -inf  ;;  %9519 = vmatprep.subr.mxu1 %v3277_v42 }
0x155e   :  { %9517 = vmatmul.mubr.msk.f32.gmra.mrb[50].mxu1 %vm954_vm6, %v3276_v44  ;;  %v9564_v47 = vpop.f32.mrb[50].mxu0  ;;  %3953 = vmax.xlane.f32.xlu1 %v3952_v46  ;;  %v3949_v51 = vsel %vm954_vm6, %v3931_v45, -inf }
0x155f   :  { %v3940_v4 = vpop.f32.mrb[51].mxu0  ;;  %v3946_v52 = vadd.f32 %v11475_v50, %v9564_v47  ;;  %9520 = vmatpush3.msra.mxu1 %v3277_v42 }
0x1560   :  { %v3941_v21 = vadd.f32 %v11482_v23, %v3940_v4  ;;  %v3635_v23 = vld [vmem:[%s12378_s6 + $0xb0] sm:$0xff] }
0x1561   :  { %v3958_v53 = vsel %vm954_vm6, %v3946_v52, -inf  ;;  %9547 = vmatprep.subr.mxu1 %v3635_v23 }
0x1562   :  { %3950 = vmax.xlane.f32.xlu1 %v3949_v51  ;;  %v3955_v38 = vsel %vm954_vm6, %v3941_v21, -inf  ;;  %v8606_v51 = vld [vmem:[%s12377_s9 + $0x11] ss:$0 sm:$0xff] }
0x1566   :  { %3956 = vmax.xlane.f32.xlu1 %v3955_v38 }
0x156a   :  { %3959 = vmax.xlane.f32.xlu1 %v3958_v53 }
0x15eb   :  { %v3954_v54 = vpop.xlane.xlu1 %3953 }
0x15ec   :  { %v3962_v55 = vsub.f32 %v3936_v39, %v3954_v54 }
0x15ee   :  { %v3967_v50 = vmul.f32 1.442695, %v3962_v55 }
0x15ef   :  { %v3951_v56 = vpop.xlane.xlu1 %3950 }
0x15f0   :  { %10608 = vpow2.f32 %v3967_v50  ;;  %v3961_v49 = vsub.f32 %v3931_v45, %v3951_v56 }
0x15f2   :  { %v3965_v48 = vmul.f32 1.442695, %v3961_v49 }
0x15f3   :  { %v3957_v58 = vpop.xlane.xlu1 %3956 }
0x15f4   :  { %10610 = vpow2.f32 %v3965_v48  ;;  %v3963_v59 = vsub.f32 %v3941_v21, %v3957_v58 }
0x15f6   :  { %v3969_v60 = vmul.f32 1.442695, %v3963_v59 }
0x15f7   :  { %v3960_v61 = vpop.xlane.xlu1 %3959 }
0x15f8   :  { %10612 = vpow2.f32 %v3969_v60  ;;  %v3964_v29 = vsub.f32 %v3946_v52, %v3960_v61 }
0x15fa   :  { %v10609_v62 = vpop.eup %10608  ;;  %v3971_v63 = vmul.f32 1.442695, %v3964_v29 }
0x15fb   :  { %v3976_v22 = vsel %vm954_vm6, %v10609_v62, 0.0 }
0x15fc   :  { %10614 = vpow2.f32 %v3971_v63  ;;  %3977 = vadd.xlane.f32.xlu1 %v3976_v22 }
0x15fe   :  { %v10611_v32 = vpop.eup %10610 }
0x15ff   :  { %v3973_v0 = vsel %vm954_vm6, %v10611_v32, 0.0 }
0x1600   :  { %3974 = vadd.xlane.f32.xlu1 %v3973_v0 }
0x1602   :  { %v10613_v1 = vpop.eup %10612 }
0x1603   :  { %v3979_v31 = vsel %vm954_vm6, %v10613_v1, 0.0 }
0x1604   :  { %3980 = vadd.xlane.f32.xlu0 %v3979_v31 }
0x1606   :  { %v10615_v34 = vpop.eup %10614 }
0x1607   :  { %v3982_v57 = vsel %vm954_vm6, %v10615_v34, 0.0 }
0x1608   :  { %3983 = vadd.xlane.f32.xlu1 %v3982_v57 }
0x1619   :  { %10400 = vrot.lane.b32.xlu1 %v11110_v18, %s10829_s28 }
0x162d   :  { %v9515_v8 = vpop.f32.mrb[48].mxu1 }
0x162e   :  { %v3362_v9 = vpop.f32.mrb[49].mxu1 }
0x162f   :  { %9521 = vmatprep.mubr.msk.f32.mxu1 %vm850_vm4, %v3362_v9 }
0x1630   :  { %9522 = vmatmul.mubr.msk.f32.vlgmr.msra.gmra.mrb[44].mxu1 %vm850_vm4, %v9515_v8 }
0x1631   :  { %v9518_v10 = vpop.f32.mrb[50].mxu1  ;;  %9548 = vmatpush3.msra.mxu1 %v3635_v23 }
0x1632   :  { %v3372_v30 = vpop.f32.mrb[51].mxu1 }
0x1633   :  { %9524 = vmatprep.mubr.msk.f32.mxu1 %vm850_vm4, %v3372_v30 }
0x1634   :  { %9525 = vmatmul.mubr.msk.f32.gmra.mrb[46].mxu1 %vm850_vm4, %v9518_v10 }
0x1635   :  { %9549 = vmatprep.mubr.msk.f32.mxu1 %vm850_vm4, %v11591_v6 }
0x1638   :  { %9550 = vmatmul.mubr.msk.f32.vlgmr.msra.gmra.mrb[44].mxu1 %vm850_vm4, %v11589_v3 }
0x1639   :  { %9552 = vmatprep.mubr.msk.f32.mxu1 %vm850_vm4, %v11595_v24 }
0x163c   :  { %9553 = vmatmul.mubr.msk.f32.gmra.mrb[46].mxu1 %vm850_vm4, %v11593_v7  ;;  %v3993_v7 = vld [vmem:[%s12378_s6 + $0xb8] sm:$0xff] }
0x1689   :  { %v3978_v18 = vpop.xlane.xlu1 %3977 }
0x168d   :  { %v3975_v12 = vpop.xlane.xlu1 %3974 }
0x168e   :  { %10616 = vrcp.f32 %v3975_v12 }
0x168f   :  { %10618 = vrcp.f32 %v3978_v18 }
0x1691   :  { %v3981_v13 = vpop.xlane.xlu0 %3980 }
0x1692   :  { %10620 = vrcp.f32 %v3981_v13 }
0x1695   :  { %v3984_v36 = vpop.xlane.xlu1 %3983 }
0x1696   :  { %10622 = vrcp.f32 %v3984_v36  ;;  %v4272_v36 = vld [vmem:[%s12378_s6 + $0xc0] sm:$0xff] }
0x1698   :  { %v10617_v15 = vpop.eup %10616 }
0x1699   :  { %v10401_v17 = vpop.permute.xlu1 %10400  ;;  %v3989_v6 = vmul.f32 %v10617_v15, %v10611_v32  ;;  %v10619_v24 = vpop.eup %10618  ;;  %v4273_v15 = vld [vmem:[%s12378_s6 + $0xc8] sm:$0xff] }
0x169a   :  { %v10403_v26 = vunpack.i.h.bf16 %v10401_v17  ;;  %v10402_v28 = vunpack.i.l.bf16 %v10401_v17  ;;  %v3990_v39 = vmul.f32 %v10619_v24, %v10609_v62  ;;  %v4274_v17 = vld [vmem:[%s12378_s6 + $0xd0] sm:$0xff]  ;;  %v4383_v24 = vld [vmem:[%s12378_s6 + $0xe8] sm:$0xff] }
0x169b   :  { %9569 = vmatprep.mubr.msk.f32.mxu1 %vm954_vm6, %v3989_v6  ;;  %v10094_v6 = vpack.c.bf16 %v4273_v15, %v4272_v36  ;;  %v8656_v36 = vld [vmem:[%s12377_s9 + $0x13] ss:$0 sm:$0xff] }
0x169c   :  { %v10090_v3 = vpack.c.bf16 %v10403_v26, %v10402_v28  ;;  %v10621_v37 = vpop.eup %10620  ;;  %v4275_v26 = vld [vmem:[%s12378_s6 + $0xd8] sm:$0xff] }
0x169d   :  { %v3991_v44 = vmul.f32 %v10621_v37, %v10613_v1  ;;  %v10098_v28 = vpack.c.bf16 %v4275_v26, %v4274_v17  ;;  %10095 = vmatprep.subr.bf16.mxu0 %v10094_v6 }
0x169e   :  { %10091 = vmatprep.subr.bf16.mxu1 %v10090_v3  ;;  %10097 = vmatpush3.bf16.msra.mxu0 %v10094_v6 }
0x169f   :  { %10093 = vmatpush3.bf16.msra.mxu1 %v10090_v3  ;;  %10099 = vmatprep.subr.bf16.mxu0 %v10098_v28  ;;  %v4382_v3 = vld [vmem:[%s12378_s6 + $0xe0] sm:$0xff] }
0x16a0   :  { %9575 = vmatprep.subr.mxu1 %v3993_v7  ;;  %v10623_v40 = vpop.eup %10622 }
0x16a1   :  { %v3992_v45 = vmul.f32 %v10623_v40, %v10615_v34 }
0x16a2   :  { %9570 = vmatmul.mubr.msk.f32.vlgmr.msra.gmra.mrb[52].mxu1 %vm954_vm6, %v3990_v39  ;;  %10101 = vmatpush3.bf16.msra.mxu0 %v10098_v28 }
0x16a3   :  { %9572 = vmatprep.mubr.msk.f32.mxu1 %vm954_vm6, %v3991_v44  ;;  %9576 = vmatpush3.msra.mxu1 %v3993_v7  ;;  %v10102_v7 = vpack.c.bf16 %v4383_v24, %v4382_v3 }
0x16a5   :  { %10103 = vmatprep.subr.bf16.mxu0 %v10102_v7 }
0x16a6   :  { %9573 = vmatmul.mubr.msk.f32.gmra.mrb[54].mxu1 %vm954_vm6, %v3992_v45 }
0x1775   :  { %v9571_v46 = vpop.f32.mrb[52].mxu1 }
0x1776   :  { %v4078_v47 = vpop.f32.mrb[53].mxu1 }
0x1777   :  { %9577 = vmatprep.mubr.msk.f32.mxu1 %vm850_vm4, %v4078_v47 }
0x1778   :  { %9578 = vmatmul.mubr.msk.f32.vlgmr.msra.gmra.mrb[44].mxu1 %vm850_vm4, %v9571_v46 }
0x1779   :  { %v9574_v4 = vpop.f32.mrb[54].mxu1 }
0x177a   :  { %v4088_v21 = vpop.f32.mrb[55].mxu1 }
0x177b   :  { %9580 = vmatprep.mubr.msk.f32.mxu1 %vm850_vm4, %v4088_v21 }
0x177c   :  { %9581 = vmatmul.mubr.msk.f32.gmra.mrb[46].mxu1 %vm850_vm4, %v9574_v4 }
0x184b   :  { %v9579_v52 = vpop.f32.mrb[44].mxu1 }
0x184c   :  { %v10250_v38 = vadd.f32 %v9579_v52, %v8606_v51  ;;  %v4175_v53 = vpop.f32.mrb[45].mxu1 }
0x184d   :  { %v10251_v42 = vadd.f32 %v8606_v51, %v4175_v53 }
0x184e   :  { %v4199_v23 = vadd.f32 %v10250_v38, %v11421_v5 }
0x184f   :  { %v4198_v54 = vadd.f32 %v10251_v42, %v11419_v2  ;;  %v9582_v55 = vpop.f32.mrb[46].mxu1 }
0x1850   :  { %v4185_v50 = vpop.f32.mrb[47].mxu1  ;;  %v4205_v56 = vsel %vm52_vm0, %v4199_v23, 0.0  ;;  %v10252_v49 = vadd.f32 %v9582_v55, %v8606_v51 }
0x1851   :  { %v10253_v48 = vadd.f32 %v8606_v51, %v4185_v50  ;;  %4206 = vadd.xlane.f32.xlu0 %v4205_v56  ;;  %v4202_v58 = vsel %vm52_vm0, %v4198_v54, 0.0 }
0x1852   :  { %4203 = vadd.xlane.f32.xlu1 %v4202_v58  ;;  %v4201_v60 = vadd.f32 %v10252_v49, %v11429_v27  ;;  %v8650_v49 = vld [vmem:[%s12377_s9 + $0x15] ss:$0 sm:$0xff]  ;;  %v4385_v58 = vld [vmem:[%s12378_s6 + $0xf8] sm:$0xff] }
0x1853   :  { %v4200_v59 = vadd.f32 %v10253_v48, %v11427_v11  ;;  %v4384_v48 = vld [vmem:[%s12378_s6 + $0xf0] sm:$0xff] }
0x1854   :  { %v4211_v5 = vsel %vm52_vm0, %v4201_v60, 0.0 }
0x1855   :  { %v4208_v61 = vsel %vm52_vm0, %v4200_v59, 0.0 }
0x1856   :  { %4209 = vadd.xlane.f32.xlu0 %v4208_v61 }
0x185a   :  { %4212 = vadd.xlane.f32.xlu0 %v4211_v5 }
0x18de   :  { %v4207_v2 = vpop.xlane.xlu0 %4206 }
0x18df   :  { %v4215_v29 = vmul.f32 0.03125, %v4207_v2  ;;  %v4204_v62 = vpop.xlane.xlu1 %4203  ;;  %v10106_v2 = vpack.c.bf16 %v4385_v58, %v4384_v48 }
0x18e0   :  { %v4214_v63 = vmul.f32 0.03125, %v4204_v62 }
0x18e1   :  { %v4219_v22 = vsub.f32 %v4199_v23, %v4215_v29  ;;  %v8649_v23 = vld [vmem:[%s12377_s9 + $0x14] ss:$0 sm:$0xff] }
0x18e2   :  { %v4218_v32 = vsub.f32 %v4198_v54, %v4214_v63 }
0x18e3   :  { %v4210_v0 = vpop.xlane.xlu0 %4209  ;;  %v4223_v1 = vmul.f32 %v4219_v22, %v4219_v22 }
0x18e4   :  { %v4216_v31 = vmul.f32 0.03125, %v4210_v0  ;;  %v4222_v11 = vmul.f32 %v4218_v32, %v4218_v32 }
0x18e5   :  { %v4229_v34 = vsel %vm52_vm0, %v4223_v1, 0.0  ;;  %v8651_v1 = vld [vmem:[%s12377_s9 + $0x12] ss:$0 sm:$0xff] }
0x18e6   :  { %v4220_v57 = vsub.f32 %v4200_v59, %v4216_v31  ;;  %4230 = vadd.xlane.f32.xlu0 %v4229_v34  ;;  %v4226_v9 = vsel %vm52_vm0, %v4222_v11, 0.0 }
0x18e7   :  { %v4213_v27 = vpop.xlane.xlu0 %4212 }
0x18e8   :  { %v4217_v8 = vmul.f32 0.03125, %v4213_v27  ;;  %v4224_v10 = vmul.f32 %v4220_v57, %v4220_v57 }
0x18ea   :  { %v4221_v30 = vsub.f32 %v4201_v60, %v4217_v8  ;;  %4227 = vadd.xlane.f32.xlu0 %v4226_v9  ;;  %v4232_v18 = vsel %vm52_vm0, %v4224_v10, 0.0 }
0x18ec   :  { %v4225_v12 = vmul.f32 %v4221_v30, %v4221_v30 }
0x18ee   :  { %4233 = vadd.xlane.f32.xlu0 %v4232_v18  ;;  %v4235_v13 = vsel %vm52_vm0, %v4225_v12, 0.0 }
0x18f2   :  { %4236 = vadd.xlane.f32.xlu0 %v4235_v13 }
0x1973   :  { %v4231_v37 = vpop.xlane.xlu0 %4230 }
0x1974   :  { %v4239_v39 = vmul.f32 0.03125, %v4231_v37 }
0x1976   :  { %v4243_v40 = vadd.f32 1e-05, %v4239_v39 }
0x1977   :  { %v4228_v44 = vpop.xlane.xlu0 %4227 }
0x1978   :  { %10624 = vrsqrt.f32 %v4243_v40  ;;  %v4238_v45 = vmul.f32 0.03125, %v4228_v44 }
0x197a   :  { %v4242_v46 = vadd.f32 1e-05, %v4238_v45 }
0x197b   :  { %v4234_v47 = vpop.xlane.xlu0 %4233 }
0x197c   :  { %10626 = vrsqrt.f32 %v4242_v46  ;;  %v4240_v4 = vmul.f32 0.03125, %v4234_v47 }
0x197e   :  { %v4244_v21 = vadd.f32 1e-05, %v4240_v4 }
0x197f   :  { %v4237_v51 = vpop.xlane.xlu0 %4236 }
0x1980   :  { %10628 = vrsqrt.f32 %v4244_v21  ;;  %v4241_v52 = vmul.f32 0.03125, %v4237_v51 }
0x1982   :  { %v10625_v38 = vpop.eup %10624  ;;  %v4245_v53 = vadd.f32 1e-05, %v4241_v52 }
0x1983   :  { %v4251_v42 = vmul.f32 %v10625_v38, %v4219_v22 }
0x1984   :  { %10630 = vrsqrt.f32 %v4245_v53 }
0x1985   :  { %v4260_v50 = vmul.f32 %v8649_v23, %v4251_v42 }
0x1986   :  { %v10627_v54 = vpop.eup %10626 }
0x1987   :  { %v4250_v55 = vmul.f32 %v10627_v54, %v4218_v32  ;;  %v4269_v5 = vadd.f32 %v8650_v49, %v4260_v50 }
0x1989   :  { %v4259_v56 = vmul.f32 %v8649_v23, %v4250_v55 }
0x198a   :  { %v10629_v59 = vpop.eup %10628 }
0x198b   :  { %v4268_v60 = vadd.f32 %v8650_v49, %v4259_v56  ;;  %v4252_v61 = vmul.f32 %v10629_v59, %v4220_v57 }
0x198d   :  { %9591 = vmatprep.mubr.msk.f32.mxu0 %vm52_vm0, %v4268_v60  ;;  %v4261_v29 = vmul.f32 %v8649_v23, %v4252_v61 }
0x198e   :  { %v10631_v62 = vpop.eup %10630  ;;  %9592 = vmatmul.mubr.msk.f32.vlgmr.msra.gmra.mrb[52].mxu0 %vm52_vm0, %v4269_v5 }
0x198f   :  { %10105 = vmatpush3.bf16.msra.mxu0 %v10102_v7  ;;  %v4270_v63 = vadd.f32 %v8650_v49, %v4261_v29  ;;  %v4253_v22 = vmul.f32 %v10631_v62, %v4221_v30  ;;  %v4562_v29 = vld [vmem:[%s12378_s6 + $0x100] sm:$0xff]  ;;  %v4563_v62 = vld [vmem:[%s12378_s6 + $0x108] sm:$0xff] }
0x1990   :  { %10107 = vmatprep.subr.bf16.mxu0 %v10106_v2 }
0x1991   :  { %9594 = vmatprep.mubr.msk.f32.mxu0 %vm52_vm0, %v4270_v63  ;;  %v4262_v32 = vmul.f32 %v8649_v23, %v4253_v22  ;;  %v4564_v22 = vld [vmem:[%s12378_s6 + $0x110] sm:$0xff] }
0x1993   :  { %10109 = vmatpush3.bf16.msra.mxu0 %v10106_v2  ;;  %v4271_v0 = vadd.f32 %v8650_v49, %v4262_v32  ;;  %v4565_v32 = vld [vmem:[%s12378_s6 + $0x118] sm:$0xff] }
0x1994   :  { %10120 = vmatprep.subr.msk.bf16.mxu0 %vm11106_vm5, %v11116_v19 }
0x1995   :  { %9595 = vmatmul.mubr.msk.f32.gmra.mrb[54].mxu0 %vm52_vm0, %v4271_v0 }
0x1a61   :  { %v9593_v31 = vpop.f32.mrb[52].mxu0 }
0x1a62   :  { %v4365_v34 = vadd.f32 %v9593_v31, %v8651_v1  ;;  %v4359_v11 = vpop.f32.mrb[53].mxu0 }
0x1a63   :  { %v4360_v57 = vadd.f32 %v8651_v1, %v4359_v11 }
0x1a64   :  { %v4379_v8 = vmax.f32 %v4365_v34, 0.0 }
0x1a65   :  { %v4378_v27 = vmax.f32 %v4360_v57, 0.0 }
0x1a67   :  { %9605 = vmatprep.mubr.msk.f32.mxu0 %vm52_vm0, %v4378_v27 }
0x1a68   :  { %v9596_v9 = vpop.f32.mrb[54].mxu0  ;;  %9606 = vmatmul.mubr.msk.f32.vlgmr.msra.gmra.mrb[56].mxu0 %vm52_vm0, %v4379_v8 }
0x1a69   :  { %v4375_v10 = vadd.f32 %v9596_v9, %v8651_v1  ;;  %10123 = vmatpush3.bf16.xpose.msk.msra.mxu0 %vm11106_vm5, %v11116_v19  ;;  %v4369_v30 = vpop.f32.mrb[55].mxu0 }
0x1a6a   :  { %v4370_v18 = vadd.f32 %v8651_v1, %v4369_v30 }
0x1a6b   :  { %v4381_v13 = vmax.f32 %v4375_v10, 0.0 }
0x1a6c   :  { %v4380_v12 = vmax.f32 %v4370_v18, 0.0 }
0x1a6e   :  { %9608 = vmatprep.mubr.msk.f32.mxu0 %vm52_vm0, %v4380_v12 }
0x1a6f   :  { %9609 = vmatmul.mubr.msk.f32.gmra.mrb[58].mxu0 %vm52_vm0, %v4381_v13 }
0x1b3b   :  { %v9607_v15 = vpop.f32.mrb[56].mxu0 }
0x1b3c   :  { %v4475_v17 = vadd.f32 %v9607_v15, %v8656_v36  ;;  %v4469_v6 = vpop.f32.mrb[57].mxu0 }
0x1b3d   :  { %v4470_v26 = vadd.f32 %v8656_v36, %v4469_v6 }
0x1b3e   :  { %v4489_v28 = vadd.f32 %v4475_v17, %v4269_v5 }
0x1b3f   :  { %v4488_v3 = vadd.f32 %v4470_v26, %v4268_v60 }
0x1b40   :  { %v4495_v19 = vsel %vm52_vm0, %v4489_v28, 0.0 }
0x1b41   :  { %4496 = vadd.xlane.f32.xlu1 %v4495_v19  ;;  %v4492_v24 = vsel %vm52_vm0, %v4488_v3, 0.0 }
0x1b42   :  { %4493 = vadd.xlane.f32.xlu0 %v4492_v24  ;;  %v9610_v7 = vpop.f32.mrb[58].mxu0 }
0x1b43   :  { %v4485_v37 = vadd.f32 %v9610_v7, %v8656_v36  ;;  %v4479_v39 = vpop.f32.mrb[59].mxu0 }
0x1b44   :  { %v4480_v40 = vadd.f32 %v8656_v36, %v4479_v39  ;;  %v8661_v36 = vld [vmem:[%s12377_s9 + $0x16] ss:$0 sm:$0xff] }
0x1b45   :  { %v4491_v44 = vadd.f32 %v4485_v37, %v4271_v0  ;;  %v10114_v0 = vpack.c.bf16 %v4565_v32, %v4564_v22 }
0x1b46   :  { %v4490_v45 = vadd.f32 %v4480_v40, %v4270_v63  ;;  %v10110_v63 = vpack.c.bf16 %v4563_v62, %v4562_v29 }
0x1b47   :  { %v4501_v46 = vsel %vm52_vm0, %v4491_v44, 0.0 }
0x1b48   :  { %4502 = vadd.xlane.f32.xlu1 %v4501_v46  ;;  %v4498_v47 = vsel %vm52_vm0, %v4490_v45, 0.0  ;;  %10111 = vmatprep.subr.bf16.mxu1 %v10110_v63 }
0x1b49   :  { %4499 = vadd.xlane.f32.xlu0 %v4498_v47  ;;  %10113 = vmatpush3.bf16.msra.mxu1 %v10110_v63  ;;  %v11791_v63 = vld [vmem:[%s12382_s4 + $0x18] sm:$0xff] }
0x1b4a   :  { %10115 = vmatprep.subr.bf16.mxu1 %v10114_v0 }
0x1b4d   :  { %10117 = vmatpush3.bf16.msra.mxu1 %v10114_v0  ;;  %v11797_v0 = vld [vmem:[%s12382_s4 + $0x10] sm:$0xff] }
0x1bce   :  { %v4497_v4 = vpop.xlane.xlu1 %4496 }
0x1bcf   :  { %v4505_v21 = vmul.f32 0.03125, %v4497_v4  ;;  %v4494_v51 = vpop.xlane.xlu0 %4493  ;;  %v8663_v4 = vld [vmem:[%s12377_s9 + $0x18] ss:$0 sm:$0xff] }
0x1bd0   :  { %v4504_v52 = vmul.f32 0.03125, %v4494_v51 }
0x1bd1   :  { %v4509_v38 = vsub.f32 %v4489_v28, %v4505_v21  ;;  %v8662_v28 = vld [vmem:[%s12377_s9 + $0x17] ss:$0 sm:$0xff] }
0x1bd2   :  { %v4508_v53 = vsub.f32 %v4488_v3, %v4504_v52 }
0x1bd3   :  { %v4513_v42 = vmul.f32 %v4509_v38, %v4509_v38 }
0x1bd4   :  { %v4512_v23 = vmul.f32 %v4508_v53, %v4508_v53 }
0x1bd5   :  { %v4503_v54 = vpop.xlane.xlu1 %4502  ;;  %v4519_v55 = vsel %vm52_vm0, %v4513_v42, 0.0 }
0x1bd6   :  { %v4507_v50 = vmul.f32 0.03125, %v4503_v54  ;;  %4520 = vadd.xlane.f32.xlu1 %v4519_v55  ;;  %v4500_v56 = vpop.xlane.xlu0 %4499  ;;  %v4516_v49 = vsel %vm52_vm0, %v4512_v23, 0.0 }
0x1bd7   :  { %v4506_v48 = vmul.f32 0.03125, %v4500_v56  ;;  %4517 = vadd.xlane.f32.xlu0 %v4516_v49 }
0x1bd8   :  { %v4511_v58 = vsub.f32 %v4491_v44, %v4507_v50 }
0x1bd9   :  { %v4510_v59 = vsub.f32 %v4490_v45, %v4506_v48 }
0x1bda   :  { %v4515_v60 = vmul.f32 %v4511_v58, %v4511_v58 }
0x1bdb   :  { %v4514_v61 = vmul.f32 %v4510_v59, %v4510_v59 }
0x1bdc   :  { %v4525_v5 = vsel %vm52_vm0, %v4515_v60, 0.0 }
0x1bdd   :  { %4526 = vadd.xlane.f32.xlu1 %v4525_v5  ;;  %v4522_v2 = vsel %vm52_vm0, %v4514_v61, 0.0  ;;  %v11783_v61 = vld [vmem:[%s12382_s4] sm:$0xff] }
0x1bde   :  { %4523 = vadd.xlane.f32.xlu0 %v4522_v2 }
0x1c63   :  { %v4521_v1 = vpop.xlane.xlu1 %4520 }
0x1c64   :  { %v4529_v31 = vmul.f32 0.03125, %v4521_v1  ;;  %v4518_v34 = vpop.xlane.xlu0 %4517 }
0x1c65   :  { %v4528_v11 = vmul.f32 0.03125, %v4518_v34 }
0x1c66   :  { %v4533_v57 = vadd.f32 1e-05, %v4529_v31 }
0x1c67   :  { %v4532_v27 = vadd.f32 1e-05, %v4528_v11 }
0x1c68   :  { %10632 = vrsqrt.f32 %v4533_v57 }
0x1c69   :  { %10634 = vrsqrt.f32 %v4532_v27 }
0x1c6a   :  { %v4527_v8 = vpop.xlane.xlu1 %4526 }
0x1c6b   :  { %v4531_v9 = vmul.f32 0.03125, %v4527_v8  ;;  %v4524_v10 = vpop.xlane.xlu0 %4523 }
0x1c6c   :  { %v4530_v30 = vmul.f32 0.03125, %v4524_v10 }
0x1c6d   :  { %v4535_v18 = vadd.f32 1e-05, %v4531_v9 }
0x1c6e   :  { %v4534_v12 = vadd.f32 1e-05, %v4530_v30 }
0x1c6f   :  { %10636 = vrsqrt.f32 %v4535_v18 }
0x1c70   :  { %10638 = vrsqrt.f32 %v4534_v12 }
0x1c72   :  { %v10633_v13 = vpop.eup %10632 }
0x1c73   :  { %v10635_v15 = vpop.eup %10634  ;;  %v4541_v17 = vmul.f32 %v10633_v13, %v4509_v38 }
0x1c74   :  { %v4540_v6 = vmul.f32 %v10635_v15, %v4508_v53 }
0x1c75   :  { %v4550_v26 = vmul.f32 %v8661_v36, %v4541_v17 }
0x1c76   :  { %v4549_v3 = vmul.f32 %v8661_v36, %v4540_v6 }
0x1c77   :  { %v11737_v7 = vadd.f32 %v8662_v28, %v4550_v26 }
0x1c78   :  { %v11735_v19 = vadd.f32 %v8662_v28, %v4549_v3 }
0x1c79   :  { %v10637_v24 = vpop.eup %10636 }
0x1c7a   :  { %v10639_v37 = vpop.eup %10638  ;;  %9619 = vmatprep.mubr.msk.f32.mxu1 %vm52_vm0, %v11735_v19  ;;  %v4543_v39 = vmul.f32 %v10637_v24, %v4511_v58  ;;  %v11777_v58 = vld [vmem:[%s12382_s4 + $0x8] sm:$0xff] }
0x1c7b   :  { %9620 = vmatmul.mubr.msk.f32.vlgmr.msra.gmra.mrb[56].mxu1 %vm52_vm0, %v11737_v7  ;;  %v4542_v40 = vmul.f32 %v10639_v37, %v4510_v59 }
0x1c7c   :  { %v4552_v44 = vmul.f32 %v8661_v36, %v4543_v39 }
0x1c7d   :  { %v4551_v45 = vmul.f32 %v8661_v36, %v4542_v40 }
0x1c7e   :  { %v11745_v47 = vadd.f32 %v8662_v28, %v4552_v44 }
0x1c7f   :  { %v11743_v46 = vadd.f32 %v8662_v28, %v4551_v45 }
0x1c81   :  { %9622 = vmatprep.mubr.msk.f32.mxu1 %vm52_vm0, %v11743_v46 }
0x1c82   :  { %9623 = vmatmul.mubr.msk.f32.gmra.mrb[58].mxu1 %vm52_vm0, %v11745_v47 }
0x1d4e   :  { %v9621_v21 = vpop.f32.mrb[56].mxu1 }
0x1d4f   :  { %v4655_v51 = vadd.f32 %v9621_v21, %v8663_v4  ;;  %v4649_v52 = vpop.f32.mrb[57].mxu1 }
0x1d50   :  { %v4650_v38 = vadd.f32 %v8663_v4, %v4649_v52 }
0x1d51   :  { %4669 = vst.msk [vmem:[#allocation4 + $0x8] sm:$0xff] %vm52_vm0, %v4655_v51 }
0x1d52   :  { %4668 = vst.msk [vmem:[#allocation4] sm:$0xff] %vm52_vm0, %v4650_v38 }
0x1d55   :  { %v9624_v53 = vpop.f32.mrb[58].mxu1 }
0x1d56   :  { %v4665_v42 = vadd.f32 %v9624_v53, %v8663_v4  ;;  %v4659_v23 = vpop.f32.mrb[59].mxu1 }
0x1d57   :  { %v4660_v54 = vadd.f32 %v8663_v4, %v4659_v23 }
0x1d58   :  { %4671 = vst.msk [vmem:[#allocation4 + $0x18] sm:$0xff] %vm52_vm0, %v4665_v42  ;;  %v11762_v50 = vld [vmem:[#allocation4 + $0x8] sm:$0xff] }
0x1d59   :  { %4670 = vst.msk [vmem:[#allocation4 + $0x10] sm:$0xff] %vm52_vm0, %v4660_v54  ;;  %v11758_v55 = vld [vmem:[#allocation4] sm:$0xff] }
0x1d5a   :  { %9629 = vmatprep.mubr.msk.f32.mxu0 %vm850_vm4, %v11758_v55 }
0x1d5b   :  { %9630 = vmatmul.mubr.msk.f32.vlgmr.msra.gmra.mrb[60].mxu0 %vm850_vm4, %v11762_v50 }
0x1d5f   :  { %v11770_v49 = vld [vmem:[#allocation4 + $0x18] sm:$0xff] }
0x1d60   :  { %v11766_v56 = vld [vmem:[#allocation4 + $0x10] sm:$0xff] }
0x1d61   :  { %9632 = vmatprep.mubr.msk.f32.mxu0 %vm850_vm4, %v11766_v56 }
0x1d62   :  { %9633 = vmatmul.mubr.msk.f32.gmra.mrb[62].mxu0 %vm850_vm4, %v11770_v49 }
0x1e2e   :  { %v9631_v48 = vpop.f32.mrb[60].mxu0 }
0x1e2f   :  { %v4769_v59 = vadd.f32 %v11777_v58, %v9631_v48  ;;  %v4763_v60 = vpop.f32.mrb[61].mxu0 }
0x1e30   :  { %v4764_v5 = vadd.f32 %v11783_v61, %v4763_v60 }
0x1e31   :  { %v4785_v2 = vsel %vm954_vm6, %v4769_v59, -inf }
0x1e32   :  { %4786 = vmax.xlane.f32.xlu1 %v4785_v2  ;;  %v4782_v29 = vsel %vm954_vm6, %v4764_v5, -inf }
0x1e33   :  { %4783 = vmax.xlane.f32.xlu0 %v4782_v29 }
0x1e35   :  { %v9634_v62 = vpop.f32.mrb[62].mxu0 }
0x1e36   :  { %v4779_v22 = vadd.f32 %v11791_v63, %v9634_v62  ;;  %v4773_v32 = vpop.f32.mrb[63].mxu0 }
0x1e37   :  { %v4774_v1 = vadd.f32 %v11797_v0, %v4773_v32 }
0x1e38   :  { %v4791_v31 = vsel %vm954_vm6, %v4779_v22, -inf }
0x1e39   :  { %4792 = vmax.xlane.f32.xlu1 %v4791_v31  ;;  %v4788_v34 = vsel %vm954_vm6, %v4774_v1, -inf }
0x1e3a   :  { %4789 = vmax.xlane.f32.xlu0 %v4788_v34 }
0x1e4a   :  { %10410 = vrot.lane.b32.xlu1 %v11118_v20, %s10815_s15 }
0x1e4e   :  { %10415 = vrot.lane.b32.xlu1 %v11118_v20, %s10817_s17 }
0x1e50   :  { %10405 = vrot.lane.b32.xlu0 %v11118_v20, %s10816_s16 }
0x1ebf   :  { %v4787_v11 = vpop.xlane.xlu1 %4786 }
0x1ec0   :  { %v4795_v57 = vsub.f32 %v4769_v59, %v4787_v11  ;;  %v4784_v27 = vpop.xlane.xlu0 %4783 }
0x1ec1   :  { %v4794_v8 = vsub.f32 %v4764_v5, %v4784_v27 }
0x1ec2   :  { %v4800_v9 = vmul.f32 1.442695, %v4795_v57 }
0x1ec3   :  { %v4798_v10 = vmul.f32 1.442695, %v4794_v8 }
0x1ec4   :  { %10640 = vpow2.f32 %v4800_v9 }
0x1ec5   :  { %10642 = vpow2.f32 %v4798_v10 }
0x1ec6   :  { %v4793_v30 = vpop.xlane.xlu1 %4792 }
0x1ec7   :  { %v4797_v18 = vsub.f32 %v4779_v22, %v4793_v30  ;;  %v4790_v12 = vpop.xlane.xlu0 %4789 }
0x1ec8   :  { %v4796_v13 = vsub.f32 %v4774_v1, %v4790_v12  ;;  %v4826_v12 = vld [vmem:[%s12378_s6 + $0x120] sm:$0xff] }
0x1ec9   :  { %v4804_v36 = vmul.f32 1.442695, %v4797_v18  ;;  %9645 = vmatprep.subr.mxu0 %v4826_v12 }
0x1eca   :  { %v4802_v15 = vmul.f32 1.442695, %v4796_v13  ;;  %v10411_v17 = vpop.permute.xlu1 %10410  ;;  %9646 = vmatpush3.msra.mxu0 %v4826_v12 }
0x1ecb   :  { %10644 = vpow2.f32 %v4804_v36  ;;  %v10413_v6 = vunpack.i.h.bf16 %v10411_v17  ;;  %v10406_v26 = vpop.permute.xlu0 %10405  ;;  %v10412_v28 = vunpack.i.l.bf16 %v10411_v17 }
0x1ecc   :  { %10646 = vpow2.f32 %v4802_v15  ;;  %v10408_v3 = vunpack.i.h.bf16 %v10406_v26  ;;  %v10407_v24 = vunpack.i.l.bf16 %v10406_v26 }
0x1ecd   :  { %v10128_v45 = vpack.c.bf16 %v10413_v6, %v10412_v28 }
0x1ece   :  { %v10641_v37 = vpop.eup %10640  ;;  %v10124_v39 = vpack.c.bf16 %v10408_v3, %v10407_v24  ;;  %v10416_v53 = vpop.permute.xlu1 %10415 }
0x1ecf   :  { %v10643_v40 = vpop.eup %10642  ;;  %v4809_v44 = vsel %vm954_vm6, %v10641_v37, 0.0  ;;  %v10418_v5 = vunpack.i.h.bf16 %v10416_v53  ;;  %v10417_v2 = vunpack.i.l.bf16 %v10416_v53 }
0x1ed0   :  { %4810 = vadd.xlane.f32.xlu1 %v4809_v44  ;;  %10125 = vmatprep.subr.bf16.mxu1 %v10124_v39  ;;  %v4806_v4 = vsel %vm954_vm6, %v10643_v40, 0.0 }
0x1ed1   :  { %4807 = vadd.xlane.f32.xlu0 %v4806_v4  ;;  %10127 = vmatpush3.bf16.msra.mxu1 %v10124_v39  ;;  %v10138_v22 = vpack.c.bf16 %v10418_v5, %v10417_v2 }
0x1ed2   :  { %10130 = vmatprep.subr.msk.bf16.mxu1 %vm11106_vm5, %v10128_v45 }
0x1ed5   :  { %v10645_v21 = vpop.eup %10644 }
0x1ed6   :  { %v10647_v51 = vpop.eup %10646  ;;  %v4815_v52 = vsel %vm954_vm6, %v10645_v21, 0.0 }
0x1ed7   :  { %4816 = vadd.xlane.f32.xlu1 %v4815_v52  ;;  %v4812_v38 = vsel %vm954_vm6, %v10647_v51, 0.0 }
0x1ed8   :  { %4813 = vadd.xlane.f32.xlu0 %v4812_v38 }
0x1ee8   :  { %5037 = vrot.lane.b32.xlu1 %v11762_v50, %s10815_s15 }
0x1eec   :  { %5041 = vrot.lane.b32.xlu1 %v11770_v49, %s10815_s15 }
0x1eee   :  { %5035 = vrot.lane.b32.xlu0 %v11758_v55, %s10815_s15 }
0x1ef0   :  { %5395 = vrot.lane.b32.xlu1 %v11762_v50, %s10817_s17 }
0x1ef2   :  { %5039 = vrot.lane.b32.xlu0 %v11766_v56, %s10815_s15 }
0x1ef4   :  { %5399 = vrot.lane.b32.xlu1 %v11770_v49, %s10817_s17 }
0x1ef6   :  { %5393 = vrot.lane.b32.xlu0 %v11758_v55, %s10817_s17 }
0x1efa   :  { %5397 = vrot.lane.b32.xlu0 %v11766_v56, %s10817_s17 }
0x1f5d   :  { %v4811_v42 = vpop.xlane.xlu1 %4810 }
0x1f5e   :  { %10648 = vrcp.f32 %v4811_v42  ;;  %v4808_v23 = vpop.xlane.xlu0 %4807 }
0x1f5f   :  { %10650 = vrcp.f32 %v4808_v23 }
0x1f64   :  { %v4817_v54 = vpop.xlane.xlu1 %4816 }
0x1f65   :  { %10652 = vrcp.f32 %v4817_v54  ;;  %v4814_v48 = vpop.xlane.xlu0 %4813 }
0x1f66   :  { %10654 = vrcp.f32 %v4814_v48 }
0x1f68   :  { %v10649_v59 = vpop.eup %10648  ;;  %v5038_v34 = vpop.permute.xlu1 %5037 }
0x1f69   :  { %v10651_v60 = vpop.eup %10650  ;;  %v4823_v62 = vmul.f32 %v10649_v59, %v10641_v37  ;;  %v5036_v32 = vpop.permute.xlu0 %5035 }
0x1f6a   :  { %v4822_v29 = vmul.f32 %v10651_v60, %v10643_v40 }
0x1f6c   :  { %9639 = vmatprep.mubr.msk.f32.mxu1 %vm954_vm6, %v4822_v29  ;;  %v5042_v8 = vpop.permute.xlu1 %5041 }
0x1f6d   :  { %9640 = vmatmul.mubr.msk.f32.vlgmr.msra.gmra.mrb[60].mxu1 %vm954_vm6, %v4823_v62  ;;  %v5040_v27 = vpop.permute.xlu0 %5039 }
0x1f6e   :  { %10133 = vmatpush3.bf16.xpose.msk.msra.mxu1 %vm11106_vm5, %v10128_v45 }
0x1f6f   :  { %v10653_v1 = vpop.eup %10652  ;;  %10140 = vmatprep.subr.msk.bf16.mxu1 %vm11106_vm5, %v10138_v22 }
0x1f70   :  { %v10655_v31 = vpop.eup %10654  ;;  %v4825_v57 = vmul.f32 %v10653_v1, %v10645_v21  ;;  %v5396_v10 = vpop.permute.xlu1 %5395 }
0x1f71   :  { %v4824_v11 = vmul.f32 %v10655_v31, %v10647_v51  ;;  %v5394_v9 = vpop.permute.xlu0 %5393 }
0x1f73   :  { %9642 = vmatprep.mubr.msk.f32.mxu1 %vm954_vm6, %v4824_v11 }
0x1f74   :  { %9643 = vmatmul.mubr.msk.f32.gmra.mrb[62].mxu1 %vm954_vm6, %v4825_v57  ;;  %v5400_v18 = vpop.permute.xlu1 %5399 }
0x1f75   :  { %9657 = vmatprep.mubr.msk.f32.mxu1 %vm850_vm4, %v5036_v32  ;;  %v5398_v30 = vpop.permute.xlu0 %5397 }
0x1f78   :  { %9658 = vmatmul.mubr.msk.f32.vlgmr.msra.gmra.mrb[64].mxu1 %vm850_vm4, %v5038_v34 }
0x1f79   :  { %10143 = vmatpush3.bf16.xpose.msk.msra.mxu1 %vm11106_vm5, %v10138_v22  ;;  %9660 = vmatprep.mubr.msk.f32.mxu1 %vm850_vm4, %v5040_v27 }
0x1f7c   :  { %9661 = vmatmul.mubr.msk.f32.gmra.mrb[66].mxu1 %vm850_vm4, %v5042_v8 }
0x1f7d   :  { %9685 = vmatprep.mubr.msk.f32.mxu1 %vm850_vm4, %v5394_v9 }
0x1f80   :  { %9686 = vmatmul.mubr.msk.f32.vlgmr.msra.gmra.mrb[68].mxu1 %vm850_vm4, %v5396_v10 }
0x1f81   :  { %9688 = vmatprep.mubr.msk.f32.mxu1 %vm850_vm4, %v5398_v30 }
0x1f84   :  { %9689 = vmatmul.mubr.msk.f32.gmra.mrb[70].mxu1 %vm850_vm4, %v5400_v18 }
0x2040   :  { %v9641_v13 = vpop.f32.mrb[60].mxu1 }
0x2041   :  { %v4911_v36 = vpop.f32.mrb[61].mxu1 }
0x2042   :  { %9647 = vmatprep.mubr.msk.f32.mxu0 %vm850_vm4, %v4911_v36 }
0x2043   :  { %9648 = vmatmul.mubr.msk.f32.vlgmr.msra.gmra.mrb[64].mxu0 %vm850_vm4, %v9641_v13 }
0x2047   :  { %v9644_v15 = vpop.f32.mrb[62].mxu1 }
0x2048   :  { %v4921_v17 = vpop.f32.mrb[63].mxu1 }
0x2049   :  { %9650 = vmatprep.mubr.msk.f32.mxu0 %vm850_vm4, %v4921_v17 }
0x204a   :  { %9651 = vmatmul.mubr.msk.f32.gmra.mrb[66].mxu0 %vm850_vm4, %v9644_v15 }
0x204b   :  { %v11855_v6 = vpop.f32.mrb[64].mxu1 }
0x204c   :  { %v5125_v26 = vpop.f32.mrb[65].mxu1  ;;  %v5131_v17 = vadd.f32 %v11777_v58, %v11855_v6 }
0x204d   :  { %v5126_v13 = vadd.f32 %v11783_v61, %v5125_v26 }
0x204e   :  { %v5147_v26 = vsel %vm954_vm6, %v5131_v17, -inf }
0x204f   :  { %v9662_v28 = vpop.f32.mrb[66].mxu1  ;;  %v5144_v36 = vsel %vm954_vm6, %v5126_v13, -inf }
0x2050   :  { %v5135_v3 = vpop.f32.mrb[67].mxu1 }
0x2053   :  { %v9687_v24 = vpop.f32.mrb[68].mxu1 }
0x2054   :  { %v5489_v37 = vadd.f32 %v11777_v58, %v9687_v24  ;;  %v5483_v39 = vpop.f32.mrb[69].mxu1 }
0x2055   :  { %v5484_v40 = vadd.f32 %v11783_v61, %v5483_v39 }
0x2056   :  { %v5505_v44 = vsel %vm954_vm6, %v5489_v37, -inf }
0x2057   :  { %5506 = vmax.xlane.f32.xlu1 %v5505_v44  ;;  %v9690_v45 = vpop.f32.mrb[70].mxu1  ;;  %v5502_v4 = vsel %vm954_vm6, %v5484_v40, -inf }
0x2058   :  { %v5493_v21 = vpop.f32.mrb[71].mxu1  ;;  %5503 = vmax.xlane.f32.xlu0 %v5502_v4  ;;  %v5499_v52 = vadd.f32 %v11791_v63, %v9690_v45 }
0x2059   :  { %v5494_v51 = vadd.f32 %v11797_v0, %v5493_v21 }
0x205a   :  { %v5511_v53 = vsel %vm954_vm6, %v5499_v52, -inf }
0x205b   :  { %v5508_v38 = vsel %vm954_vm6, %v5494_v51, -inf }
0x205c   :  { %5509 = vmax.xlane.f32.xlu0 %v5508_v38 }
0x2060   :  { %5512 = vmax.xlane.f32.xlu0 %v5511_v53 }
0x2068   :  { %10420 = vrot.lane.b32.xlu1 %v11118_v20, %s10818_s5 }
0x20e4   :  { %v5507_v42 = vpop.xlane.xlu1 %5506 }
0x20e5   :  { %v5515_v23 = vsub.f32 %v5489_v37, %v5507_v42  ;;  %v5504_v54 = vpop.xlane.xlu0 %5503 }
0x20e6   :  { %v5514_v48 = vsub.f32 %v5484_v40, %v5504_v54 }
0x20e7   :  { %v5520_v59 = vmul.f32 1.442695, %v5515_v23 }
0x20e8   :  { %v5518_v60 = vmul.f32 1.442695, %v5514_v48  ;;  %v10421_v5 = vpop.permute.xlu1 %10420 }
0x20e9   :  { %10656 = vpow2.f32 %v5520_v59  ;;  %v10423_v2 = vunpack.i.h.bf16 %v10421_v5  ;;  %v10422_v29 = vunpack.i.l.bf16 %v10421_v5  ;;  %v5510_v62 = vpop.xlane.xlu0 %5509 }
0x20ea   :  { %10658 = vpow2.f32 %v5518_v60  ;;  %v5516_v10 = vsub.f32 %v5494_v51, %v5510_v62 }
0x20eb   :  { %v10144_v22 = vpack.c.bf16 %v10423_v2, %v10422_v29 }
0x20ec   :  { %v5522_v30 = vmul.f32 1.442695, %v5516_v10 }
0x20ed   :  { %10145 = vmatprep.subr.bf16.mxu1 %v10144_v22  ;;  %v5513_v32 = vpop.xlane.xlu0 %5512 }
0x20ee   :  { %v5517_v1 = vsub.f32 %v5499_v52, %v5513_v32  ;;  %10147 = vmatpush3.bf16.msra.mxu1 %v10144_v22 }
0x20f0   :  { %v5524_v31 = vmul.f32 1.442695, %v5517_v1 }
0x20f2   :  { %10660 = vpow2.f32 %v5524_v31 }
0x20f3   :  { %v10657_v34 = vpop.eup %10656  ;;  %10662 = vpow2.f32 %v5522_v30 }
0x20f4   :  { %v10659_v11 = vpop.eup %10658  ;;  %v5529_v57 = vsel %vm954_vm6, %v10657_v34, 0.0 }
0x20f5   :  { %5530 = vadd.xlane.f32.xlu0 %v5529_v57  ;;  %v5526_v27 = vsel %vm954_vm6, %v10659_v11, 0.0 }
0x20f6   :  { %5527 = vadd.xlane.f32.xlu1 %v5526_v27 }
0x20fc   :  { %v10661_v8 = vpop.eup %10660 }
0x20fd   :  { %v5535_v9 = vsel %vm954_vm6, %v10661_v8, 0.0  ;;  %v10663_v18 = vpop.eup %10662 }
0x20fe   :  { %5536 = vadd.xlane.f32.xlu0 %v5535_v9  ;;  %v5532_v12 = vsel %vm954_vm6, %v10663_v18, 0.0 }
0x2107   :  { %5751 = vrot.lane.b32.xlu1 %v11758_v55, %s10819_s19  ;;  %v5136_v55 = vadd.f32 %v11797_v0, %v5135_v3 }
0x2109   :  { %v5150_v15 = vsel %vm954_vm6, %v5136_v55, -inf }
0x210b   :  { %5753 = vrot.lane.b32.xlu1 %v11762_v50, %s10819_s19  ;;  %v5141_v50 = vadd.f32 %v11791_v63, %v9662_v28 }
0x2114   :  { %10425 = vrot.lane.b32.xlu0 %v11118_v20, %s10819_s19 }
0x2118   :  { %5755 = vrot.lane.b32.xlu0 %v11766_v56, %s10819_s19  ;;  %v5153_v56 = vsel %vm954_vm6, %v5141_v50, -inf }
0x212f   :  { %5533 = vadd.xlane.f32.xlu1 %v5532_v12 }
0x2137   :  { %5145 = vmax.xlane.f32.xlu0 %v5144_v36 }
0x213b   :  { %5151 = vmax.xlane.f32.xlu0 %v5150_v15 }
0x213f   :  { %5154 = vmax.xlane.f32.xlu0 %v5153_v56 }
0x2140   :  { %5757 = vrot.lane.b32.xlu1 %v11770_v49, %s10819_s19 }
0x2164   :  { %5148 = vmax.xlane.f32.xlu1 %v5147_v26 }
0x2182   :  { %v5531_v3 = vpop.xlane.xlu0 %5530 }
0x2183   :  { %10664 = vrcp.f32 %v5531_v3  ;;  %v5528_v24 = vpop.xlane.xlu1 %5527 }
0x2184   :  { %10666 = vrcp.f32 %v5528_v24 }
0x2187   :  { %v5752_v6 = vpop.permute.xlu1 %5751 }
0x218b   :  { %v5537_v28 = vpop.xlane.xlu0 %5536  ;;  %v5754_v51 = vpop.permute.xlu1 %5753 }
0x218c   :  { %10668 = vrcp.f32 %v5537_v28 }
0x218d   :  { %v10665_v37 = vpop.eup %10664 }
0x218e   :  { %v10667_v39 = vpop.eup %10666  ;;  %v5543_v45 = vmul.f32 %v10665_v37, %v10657_v34 }
0x218f   :  { %v10426_v40 = vpop.permute.xlu0 %10425  ;;  %v5542_v44 = vmul.f32 %v10667_v39, %v10659_v11 }
0x2190   :  { %v10428_v4 = vunpack.i.h.bf16 %v10426_v40  ;;  %v10427_v21 = vunpack.i.l.bf16 %v10426_v40 }
0x2191   :  { %9695 = vmatprep.mubr.msk.f32.mxu1 %vm954_vm6, %v5542_v44 }
0x2192   :  { %v10148_v49 = vpack.c.bf16 %v10428_v4, %v10427_v21  ;;  %9696 = vmatmul.mubr.msk.f32.vlgmr.msra.gmra.mrb[72].mxu1 %vm954_vm6, %v5543_v45 }
0x2193   :  { %v5756_v38 = vpop.permute.xlu0 %5755 }
0x2194   :  { %10150 = vmatprep.subr.msk.bf16.mxu1 %vm11106_vm5, %v10148_v49 }
0x2195   :  { %10153 = vmatpush3.bf16.xpose.msk.msra.mxu1 %vm11106_vm5, %v10148_v49 }
0x2196   :  { %v10669_v23 = vpop.eup %10668 }
0x2197   :  { %v5545_v2 = vmul.f32 %v10669_v23, %v10661_v8 }
0x21bc   :  { %v5534_v52 = vpop.xlane.xlu1 %5533 }
0x21bd   :  { %10670 = vrcp.f32 %v5534_v52 }
0x21c0   :  { %v5758_v62 = vpop.permute.xlu1 %5757 }
0x21c4   :  { %v5146_v53 = vpop.xlane.xlu0 %5145 }
0x21c5   :  { %v5156_v42 = vsub.f32 %v5126_v13, %v5146_v53 }
0x21c7   :  { %v10671_v54 = vpop.eup %10670  ;;  %v5160_v48 = vmul.f32 1.442695, %v5156_v42 }
0x21c8   :  { %v5152_v59 = vpop.xlane.xlu0 %5151  ;;  %v5544_v60 = vmul.f32 %v10671_v54, %v10663_v18 }
0x21c9   :  { %10672 = vpow2.f32 %v5160_v48  ;;  %v5158_v5 = vsub.f32 %v5136_v55, %v5152_v59 }
0x21ca   :  { %9698 = vmatprep.mubr.msk.f32.mxu1 %vm954_vm6, %v5544_v60 }
0x21cb   :  { %v5164_v29 = vmul.f32 1.442695, %v5158_v5  ;;  %9699 = vmatmul.mubr.msk.f32.gmra.mrb[74].mxu1 %vm954_vm6, %v5545_v2 }
0x21cc   :  { %9713 = vmatprep.mubr.msk.f32.mxu1 %vm850_vm4, %v5752_v6  ;;  %v5155_v34 = vpop.xlane.xlu0 %5154 }
0x21cd   :  { %10674 = vpow2.f32 %v5164_v29  ;;  %v5159_v11 = vsub.f32 %v5141_v50, %v5155_v34 }
0x21cf   :  { %9714 = vmatmul.mubr.msk.f32.vlgmr.msra.gmra.mrb[76].mxu1 %vm850_vm4, %v5754_v51  ;;  %v5166_v8 = vmul.f32 1.442695, %v5159_v11 }
0x21d0   :  { %9716 = vmatprep.mubr.msk.f32.mxu1 %vm850_vm4, %v5756_v38 }
0x21d3   :  { %v10673_v22 = vpop.eup %10672  ;;  %9717 = vmatmul.mubr.msk.f32.gmra.mrb[78].mxu1 %vm850_vm4, %v5758_v62 }
0x21d4   :  { %v5168_v32 = vsel %vm954_vm6, %v10673_v22, 0.0 }
0x21d5   :  { %5169 = vadd.xlane.f32.xlu1 %v5168_v32 }
0x21d7   :  { %v10675_v1 = vpop.eup %10674 }
0x21d8   :  { %v5174_v31 = vsel %vm954_vm6, %v10675_v1, 0.0 }
0x21d9   :  { %5175 = vadd.xlane.f32.xlu1 %v5174_v31 }
0x21ea   :  { %10430 = vrot.lane.b32.xlu1 %v11118_v20, %s10820_s7 }
0x21f1   :  { %v5149_v57 = vpop.xlane.xlu1 %5148 }
0x21f2   :  { %v5157_v27 = vsub.f32 %v5131_v17, %v5149_v57 }
0x21f4   :  { %v5162_v9 = vmul.f32 1.442695, %v5157_v27 }
0x21f6   :  { %10676 = vpow2.f32 %v5162_v9 }
0x21f7   :  { %10678 = vpow2.f32 %v5166_v8 }
0x2200   :  { %v10677_v10 = vpop.eup %10676 }
0x2201   :  { %v5171_v30 = vsel %vm954_vm6, %v10677_v10, 0.0  ;;  %v10679_v18 = vpop.eup %10678 }
0x2202   :  { %5172 = vadd.xlane.f32.xlu0 %v5171_v30  ;;  %v5177_v12 = vsel %vm954_vm6, %v10679_v18, 0.0 }
0x2206   :  { %5178 = vadd.xlane.f32.xlu0 %v5177_v12 }
0x2262   :  { %v5170_v13 = vpop.xlane.xlu1 %5169 }
0x2263   :  { %10680 = vrcp.f32 %v5170_v13 }
0x2265   :  { %v11908_v55 = vpop.f32.mrb[72].mxu1 }
0x2266   :  { %v11910_v36 = vpop.f32.mrb[73].mxu1  ;;  %v5176_v50 = vpop.xlane.xlu1 %5175 }
0x2267   :  { %10682 = vrcp.f32 %v5176_v50 }
0x226a   :  { %v10431_v15 = vpop.permute.xlu1 %10430 }
0x226b   :  { %v10433_v56 = vunpack.i.h.bf16 %v10431_v15  ;;  %v10432_v17 = vunpack.i.l.bf16 %v10431_v15 }
0x226d   :  { %v10681_v26 = vpop.eup %10680  ;;  %v10134_v3 = vpack.c.bf16 %v10433_v56, %v10432_v17 }
0x226e   :  { %v5184_v24 = vmul.f32 %v10681_v26, %v10673_v22 }
0x226f   :  { %10135 = vmatprep.subr.bf16.mxu0 %v10134_v3 }
0x2270   :  { %10137 = vmatpush3.bf16.msra.mxu0 %v10134_v3  ;;  %9667 = vmatprep.mubr.msk.f32.mxu0 %vm954_vm6, %v5184_v24 }
0x2271   :  { %v10683_v39 = vpop.eup %10682 }
0x2272   :  { %v5186_v45 = vmul.f32 %v10683_v39, %v10675_v1 }
0x228f   :  { %v5173_v28 = vpop.xlane.xlu0 %5172 }
0x2290   :  { %10684 = vrcp.f32 %v5173_v28 }
0x2293   :  { %v5179_v37 = vpop.xlane.xlu0 %5178 }
0x2294   :  { %10686 = vrcp.f32 %v5179_v37 }
0x229a   :  { %v10685_v40 = vpop.eup %10684 }
0x229b   :  { %v5185_v44 = vmul.f32 %v10685_v40, %v10677_v10 }
0x229d   :  { %9668 = vmatmul.mubr.msk.f32.vlgmr.msra.gmra.mrb[68].mxu0 %vm954_vm6, %v5185_v44 }
0x229e   :  { %v10687_v4 = vpop.eup %10686  ;;  %9670 = vmatprep.mubr.msk.f32.mxu0 %vm954_vm6, %v5186_v45  ;;  %v11915_v21 = vpop.f32.mrb[74].mxu1 }
0x229f   :  { %v11917_v49 = vpop.f32.mrb[75].mxu1  ;;  %v5187_v6 = vmul.f32 %v10687_v4, %v10679_v18 }
0x22a1   :  { %9671 = vmatmul.mubr.msk.f32.gmra.mrb[70].mxu0 %vm954_vm6, %v5187_v6 }
0x22a2   :  { %v9715_v51 = vpop.f32.mrb[76].mxu1 }
0x22a3   :  { %v5847_v52 = vadd.f32 %v11777_v58, %v9715_v51  ;;  %v5841_v38 = vpop.f32.mrb[77].mxu1 }
0x22a4   :  { %v5842_v53 = vadd.f32 %v11783_v61, %v5841_v38  ;;  %v5188_v61 = vld [vmem:[%s12378_s6 + $0x128] sm:$0xff] }
0x22a5   :  { %v5863_v42 = vsel %vm954_vm6, %v5847_v52, -inf  ;;  %9673 = vmatprep.subr.mxu0 %v5188_v61 }
0x22a6   :  { %v9718_v23 = vpop.f32.mrb[78].mxu1  ;;  %5864 = vmax.xlane.f32.xlu0 %v5863_v42  ;;  %v5860_v59 = vsel %vm954_vm6, %v5842_v53, -inf  ;;  %9674 = vmatpush3.msra.mxu0 %v5188_v61 }
0x22a7   :  { %v5851_v54 = vpop.f32.mrb[79].mxu1  ;;  %v5857_v60 = vadd.f32 %v11791_v63, %v9718_v23 }
0x22a8   :  { %v5852_v48 = vadd.f32 %v11797_v0, %v5851_v54  ;;  %v5546_v0 = vld [vmem:[%s12378_s6 + $0x130] sm:$0xff] }
0x22a9   :  { %v5869_v58 = vsel %vm954_vm6, %v5857_v60, -inf  ;;  %9701 = vmatprep.subr.mxu0 %v5546_v0 }
0x22aa   :  { %5861 = vmax.xlane.f32.xlu0 %v5860_v59  ;;  %v5866_v5 = vsel %vm954_vm6, %v5852_v48, -inf }
0x22ae   :  { %5867 = vmax.xlane.f32.xlu0 %v5866_v5 }
0x22b2   :  { %5870 = vmax.xlane.f32.xlu0 %v5869_v58 }
0x2333   :  { %v5865_v2 = vpop.xlane.xlu0 %5864 }
0x2334   :  { %v5873_v29 = vsub.f32 %v5847_v52, %v5865_v2 }
0x2336   :  { %v5878_v63 = vmul.f32 1.442695, %v5873_v29 }
0x2337   :  { %v5862_v62 = vpop.xlane.xlu0 %5861 }
0x2338   :  { %10688 = vpow2.f32 %v5878_v63  ;;  %v5872_v22 = vsub.f32 %v5842_v53, %v5862_v62 }
0x233a   :  { %v5876_v32 = vmul.f32 1.442695, %v5872_v22 }
0x233b   :  { %v5868_v1 = vpop.xlane.xlu0 %5867 }
0x233c   :  { %10690 = vpow2.f32 %v5876_v32  ;;  %v5874_v31 = vsub.f32 %v5852_v48, %v5868_v1  ;;  %v8682_v48 = vld [vmem:[%s12377_s9 + $0x19] ss:$0 sm:$0xff] }
0x233e   :  { %v5880_v27 = vmul.f32 1.442695, %v5874_v31 }
0x233f   :  { %v5871_v34 = vpop.xlane.xlu0 %5870 }
0x2340   :  { %v5875_v11 = vsub.f32 %v5857_v60, %v5871_v34 }
0x2342   :  { %v10689_v57 = vpop.eup %10688  ;;  %v5882_v8 = vmul.f32 1.442695, %v5875_v11 }
0x2343   :  { %v5887_v9 = vsel %vm954_vm6, %v10689_v57, 0.0 }
0x2344   :  { %10692 = vpow2.f32 %v5882_v8  ;;  %5888 = vadd.xlane.f32.xlu0 %v5887_v9 }
0x2345   :  { %10694 = vpow2.f32 %v5880_v27 }
0x2346   :  { %v10691_v10 = vpop.eup %10690 }
0x2347   :  { %v5884_v30 = vsel %vm954_vm6, %v10691_v10, 0.0 }
0x2348   :  { %5885 = vadd.xlane.f32.xlu1 %v5884_v30 }
0x234e   :  { %v10693_v18 = vpop.eup %10692 }
0x234f   :  { %v5893_v12 = vsel %vm954_vm6, %v10693_v18, 0.0  ;;  %v10695_v13 = vpop.eup %10694 }
0x2350   :  { %5894 = vadd.xlane.f32.xlu0 %v5893_v12  ;;  %v5890_v50 = vsel %vm954_vm6, %v10695_v13, 0.0 }
0x2354   :  { %5891 = vadd.xlane.f32.xlu0 %v5890_v50 }
0x236a   :  { %10435 = vrot.lane.b32.xlu0 %v11118_v20, %s10821_s23 }
0x2370   :  { %v9669_v15 = vpop.f32.mrb[68].mxu0 }
0x2371   :  { %v5273_v56 = vpop.f32.mrb[69].mxu0 }
0x2372   :  { %9675 = vmatprep.mubr.msk.f32.mxu0 %vm850_vm4, %v5273_v56 }
0x2373   :  { %9676 = vmatmul.mubr.msk.f32.vlgmr.msra.gmra.mrb[64].mxu0 %vm850_vm4, %v9669_v15 }
0x2374   :  { %v9672_v17 = vpop.f32.mrb[70].mxu0  ;;  %9702 = vmatpush3.msra.mxu0 %v5546_v0 }
0x2375   :  { %v5283_v26 = vpop.f32.mrb[71].mxu0 }
0x2376   :  { %9678 = vmatprep.mubr.msk.f32.mxu0 %vm850_vm4, %v5283_v26 }
0x2377   :  { %9679 = vmatmul.mubr.msk.f32.gmra.mrb[66].mxu0 %vm850_vm4, %v9672_v17 }
0x2378   :  { %9703 = vmatprep.mubr.msk.f32.mxu0 %vm850_vm4, %v11910_v36 }
0x237b   :  { %9704 = vmatmul.mubr.msk.f32.vlgmr.msra.gmra.mrb[64].mxu0 %vm850_vm4, %v11908_v55 }
0x237c   :  { %9706 = vmatprep.mubr.msk.f32.mxu0 %vm850_vm4, %v11917_v49 }
0x237f   :  { %9707 = vmatmul.mubr.msk.f32.gmra.mrb[66].mxu0 %vm850_vm4, %v11915_v21  ;;  %v5904_v21 = vld [vmem:[%s12378_s6 + $0x138] sm:$0xff] }
0x23d1   :  { %v5889_v24 = vpop.xlane.xlu0 %5888 }
0x23d5   :  { %v5886_v3 = vpop.xlane.xlu1 %5885 }
0x23d6   :  { %10696 = vrcp.f32 %v5886_v3 }
0x23d7   :  { %10698 = vrcp.f32 %v5889_v24 }
0x23dd   :  { %v5895_v28 = vpop.xlane.xlu0 %5894 }
0x23e0   :  { %v10697_v37 = vpop.eup %10696 }
0x23e1   :  { %v5892_v39 = vpop.xlane.xlu0 %5891  ;;  %v5900_v40 = vmul.f32 %v10697_v37, %v10691_v10  ;;  %v10699_v4 = vpop.eup %10698  ;;  %v6184_v37 = vld [vmem:[%s12378_s6 + $0x148] sm:$0xff] }
0x23e2   :  { %10700 = vrcp.f32 %v5892_v39  ;;  %v5901_v6 = vmul.f32 %v10699_v4, %v10689_v57  ;;  %v6185_v39 = vld [vmem:[%s12378_s6 + $0x150] sm:$0xff] }
0x23e3   :  { %10702 = vrcp.f32 %v5895_v28  ;;  %9723 = vmatprep.mubr.msk.f32.mxu0 %vm954_vm6, %v5900_v40  ;;  %v6183_v28 = vld [vmem:[%s12378_s6 + $0x140] sm:$0xff] }
0x23e4   :  { %v10158_v40 = vpack.c.bf16 %v6184_v37, %v6183_v28 }
0x23e5   :  { %v10436_v36 = vpop.permute.xlu0 %10435 }
0x23e6   :  { %v10438_v55 = vunpack.i.h.bf16 %v10436_v36  ;;  %v10437_v44 = vunpack.i.l.bf16 %v10436_v36  ;;  %v6186_v36 = vld [vmem:[%s12378_s6 + $0x158] sm:$0xff]  ;;  %10159 = vmatprep.subr.bf16.mxu1 %v10158_v40 }
0x23e7   :  { %10161 = vmatpush3.bf16.msra.mxu1 %v10158_v40 }
0x23e8   :  { %v10154_v45 = vpack.c.bf16 %v10438_v55, %v10437_v44  ;;  %v10162_v55 = vpack.c.bf16 %v6186_v36, %v6185_v39  ;;  %v6293_v44 = vld [vmem:[%s12378_s6 + $0x160] sm:$0xff] }
0x23ea   :  { %10155 = vmatprep.subr.bf16.mxu0 %v10154_v45  ;;  %10163 = vmatprep.subr.bf16.mxu1 %v10162_v55 }
0x23eb   :  { %10157 = vmatpush3.bf16.msra.mxu0 %v10154_v45  ;;  %10165 = vmatpush3.bf16.msra.mxu1 %v10162_v55  ;;  %v6294_v45 = vld [vmem:[%s12378_s6 + $0x168] sm:$0xff] }
0x23ec   :  { %v10701_v49 = vpop.eup %10700  ;;  %9729 = vmatprep.subr.mxu0 %v5904_v21  ;;  %v10166_v4 = vpack.c.bf16 %v6294_v45, %v6293_v44 }
0x23ed   :  { %v10703_v51 = vpop.eup %10702  ;;  %v5902_v52 = vmul.f32 %v10701_v49, %v10695_v13 }
0x23ee   :  { %9724 = vmatmul.mubr.msk.f32.vlgmr.msra.gmra.mrb[72].mxu0 %vm954_vm6, %v5901_v6  ;;  %v5903_v38 = vmul.f32 %v10703_v51, %v10693_v18  ;;  %10167 = vmatprep.subr.bf16.mxu1 %v10166_v4 }
0x23ef   :  { %9726 = vmatprep.mubr.msk.f32.mxu0 %vm954_vm6, %v5902_v52  ;;  %9730 = vmatpush3.msra.mxu0 %v5904_v21 }
0x23f2   :  { %9727 = vmatmul.mubr.msk.f32.gmra.mrb[74].mxu0 %vm954_vm6, %v5903_v38 }
0x24c1   :  { %v9725_v53 = vpop.f32.mrb[72].mxu0 }
0x24c2   :  { %v5989_v42 = vpop.f32.mrb[73].mxu0 }
0x24c3   :  { %9731 = vmatprep.mubr.msk.f32.mxu0 %vm850_vm4, %v5989_v42 }
0x24c4   :  { %9732 = vmatmul.mubr.msk.f32.vlgmr.msra.gmra.mrb[64].mxu0 %vm850_vm4, %v9725_v53 }
0x24c5   :  { %v9728_v23 = vpop.f32.mrb[74].mxu0 }
0x24c6   :  { %v5999_v54 = vpop.f32.mrb[75].mxu0 }
0x24c7   :  { %9734 = vmatprep.mubr.msk.f32.mxu0 %vm850_vm4, %v5999_v54 }
0x24c8   :  { %9735 = vmatmul.mubr.msk.f32.gmra.mrb[66].mxu0 %vm850_vm4, %v9728_v23 }
0x2597   :  { %v9733_v59 = vpop.f32.mrb[64].mxu0 }
0x2598   :  { %v10254_v60 = vadd.f32 %v9733_v59, %v8682_v48  ;;  %v6086_v5 = vpop.f32.mrb[65].mxu0 }
0x2599   :  { %v10255_v58 = vadd.f32 %v8682_v48, %v6086_v5 }
0x259a   :  { %v6110_v61 = vadd.f32 %v10254_v60, %v11737_v7 }
0x259b   :  { %v6109_v0 = vadd.f32 %v10255_v58, %v11735_v19  ;;  %v9736_v2 = vpop.f32.mrb[66].mxu0  ;;  %v8725_v58 = vld [vmem:[%s12377_s9 + $0x1c] ss:$0 sm:$0xff] }
0x259c   :  { %v6096_v29 = vpop.f32.mrb[67].mxu0  ;;  %v6116_v63 = vsel %vm52_vm0, %v6110_v61, 0.0  ;;  %v10256_v62 = vadd.f32 %v9736_v2, %v8682_v48 }
0x259d   :  { %v10257_v22 = vadd.f32 %v8682_v48, %v6096_v29  ;;  %6117 = vadd.xlane.f32.xlu1 %v6116_v63  ;;  %v6113_v32 = vsel %vm52_vm0, %v6109_v0, 0.0  ;;  %v8726_v63 = vld [vmem:[%s12377_s9 + $0x1d] ss:$0 sm:$0xff] }
0x259e   :  { %6114 = vadd.xlane.f32.xlu0 %v6113_v32  ;;  %v6112_v31 = vadd.f32 %v10256_v62, %v11745_v47 }
0x259f   :  { %v6111_v1 = vadd.f32 %v10257_v22, %v11743_v46 }
0x25a0   :  { %v6122_v7 = vsel %vm52_vm0, %v6112_v31, 0.0 }
0x25a1   :  { %v6119_v34 = vsel %vm52_vm0, %v6111_v1, 0.0 }
0x25a2   :  { %6120 = vadd.xlane.f32.xlu1 %v6119_v34 }
0x25a6   :  { %6123 = vadd.xlane.f32.xlu1 %v6122_v7 }
0x262a   :  { %v6118_v19 = vpop.xlane.xlu1 %6117 }
0x262b   :  { %v6126_v11 = vmul.f32 0.03125, %v6118_v19  ;;  %v6115_v57 = vpop.xlane.xlu0 %6114 }
0x262c   :  { %v6125_v27 = vmul.f32 0.03125, %v6115_v57 }
0x262d   :  { %v6130_v8 = vsub.f32 %v6110_v61, %v6126_v11 }
0x262e   :  { %v6129_v9 = vsub.f32 %v6109_v0, %v6125_v27  ;;  %v6295_v27 = vld [vmem:[%s12378_s6 + $0x170] sm:$0xff] }
0x262f   :  { %v6121_v10 = vpop.xlane.xlu1 %6120  ;;  %v6134_v30 = vmul.f32 %v6130_v8, %v6130_v8 }
0x2630   :  { %v6127_v18 = vmul.f32 0.03125, %v6121_v10  ;;  %v6133_v46 = vmul.f32 %v6129_v9, %v6129_v9  ;;  %v8727_v10 = vld [vmem:[%s12377_s9 + $0x1a] ss:$0 sm:$0xff] }
0x2631   :  { %v6140_v12 = vsel %vm52_vm0, %v6134_v30, 0.0 }
0x2632   :  { %v6131_v13 = vsub.f32 %v6111_v1, %v6127_v18  ;;  %6141 = vadd.xlane.f32.xlu1 %v6140_v12  ;;  %v6137_v15 = vsel %vm52_vm0, %v6133_v46, 0.0 }
0x2633   :  { %v6124_v47 = vpop.xlane.xlu1 %6123 }
0x2634   :  { %v6128_v50 = vmul.f32 0.03125, %v6124_v47  ;;  %v6135_v56 = vmul.f32 %v6131_v13, %v6131_v13 }
0x2636   :  { %v6132_v17 = vsub.f32 %v6112_v31, %v6128_v50  ;;  %6138 = vadd.xlane.f32.xlu1 %v6137_v15  ;;  %v6143_v26 = vsel %vm52_vm0, %v6135_v56, 0.0 }
0x2638   :  { %v6136_v3 = vmul.f32 %v6132_v17, %v6132_v17 }
0x263a   :  { %6144 = vadd.xlane.f32.xlu1 %v6143_v26  ;;  %v6146_v24 = vsel %vm52_vm0, %v6136_v3, 0.0 }
0x263e   :  { %6147 = vadd.xlane.f32.xlu1 %v6146_v24  ;;  %v8732_v24 = vld [vmem:[%s12377_s9 + $0x1b] ss:$0 sm:$0xff] }
0x26bf   :  { %v6142_v21 = vpop.xlane.xlu1 %6141 }
0x26c0   :  { %v6150_v49 = vmul.f32 0.03125, %v6142_v21 }
0x26c2   :  { %v6154_v6 = vadd.f32 1e-05, %v6150_v49 }
0x26c3   :  { %v6139_v51 = vpop.xlane.xlu1 %6138 }
0x26c4   :  { %10704 = vrsqrt.f32 %v6154_v6  ;;  %v6149_v52 = vmul.f32 0.03125, %v6139_v51 }
0x26c6   :  { %v6153_v38 = vadd.f32 1e-05, %v6149_v52 }
0x26c7   :  { %v6145_v53 = vpop.xlane.xlu1 %6144 }
0x26c8   :  { %10706 = vrsqrt.f32 %v6153_v38  ;;  %v6151_v42 = vmul.f32 0.03125, %v6145_v53 }
0x26ca   :  { %v6155_v23 = vadd.f32 1e-05, %v6151_v42 }
0x26cb   :  { %v6148_v54 = vpop.xlane.xlu1 %6147 }
0x26cc   :  { %10708 = vrsqrt.f32 %v6155_v23  ;;  %v6152_v48 = vmul.f32 0.03125, %v6148_v54 }
0x26ce   :  { %v10705_v59 = vpop.eup %10704  ;;  %v6156_v60 = vadd.f32 1e-05, %v6152_v48 }
0x26cf   :  { %v6162_v5 = vmul.f32 %v10705_v59, %v6130_v8  ;;  %v6296_v8 = vld [vmem:[%s12378_s6 + $0x178] sm:$0xff] }
0x26d0   :  { %10710 = vrsqrt.f32 %v6156_v60 }
0x26d1   :  { %v6171_v2 = vmul.f32 %v8725_v58, %v6162_v5 }
0x26d2   :  { %v10707_v61 = vpop.eup %10706 }
0x26d3   :  { %v6161_v0 = vmul.f32 %v10707_v61, %v6129_v9  ;;  %v6180_v1 = vadd.f32 %v8726_v63, %v6171_v2  ;;  %v10170_v9 = vpack.c.bf16 %v6296_v8, %v6295_v27  ;;  %v6475_v27 = vld [vmem:[%s12378_s6 + $0x190] sm:$0xff]  ;;  %v6476_v8 = vld [vmem:[%s12378_s6 + $0x198] sm:$0xff] }
0x26d5   :  { %v6170_v29 = vmul.f32 %v8725_v58, %v6161_v0 }
0x26d6   :  { %v10709_v62 = vpop.eup %10708 }
0x26d7   :  { %v6179_v22 = vadd.f32 %v8726_v63, %v6170_v29  ;;  %v6163_v32 = vmul.f32 %v10709_v62, %v6131_v13 }
0x26d9   :  { %9745 = vmatprep.mubr.msk.f32.mxu1 %vm52_vm0, %v6179_v22  ;;  %v6172_v31 = vmul.f32 %v8725_v58, %v6163_v32 }
0x26da   :  { %v10711_v34 = vpop.eup %10710  ;;  %9746 = vmatmul.mubr.msk.f32.vlgmr.msra.gmra.mrb[80].mxu1 %vm52_vm0, %v6180_v1 }
0x26db   :  { %v6181_v7 = vadd.f32 %v8726_v63, %v6172_v31  ;;  %v6164_v19 = vmul.f32 %v10711_v34, %v6132_v17  ;;  %10169 = vmatpush3.bf16.msra.mxu1 %v10166_v4 }
0x26dc   :  { %10171 = vmatprep.subr.bf16.mxu1 %v10170_v9 }
0x26dd   :  { %9748 = vmatprep.mubr.msk.f32.mxu1 %vm52_vm0, %v6181_v7  ;;  %v6173_v11 = vmul.f32 %v8725_v58, %v6164_v19  ;;  %v6473_v19 = vld [vmem:[%s12378_s6 + $0x180] sm:$0xff] }
0x26df   :  { %v6182_v57 = vadd.f32 %v8726_v63, %v6173_v11  ;;  %10173 = vmatpush3.bf16.msra.mxu1 %v10170_v9  ;;  %v6474_v11 = vld [vmem:[%s12378_s6 + $0x188] sm:$0xff]  ;;  %v10178_v9 = vpack.c.bf16 %v6476_v8, %v6475_v27 }
0x26e1   :  { %9749 = vmatmul.mubr.msk.f32.gmra.mrb[82].mxu1 %vm52_vm0, %v6182_v57 }
0x27ad   :  { %v9747_v30 = vpop.f32.mrb[80].mxu1 }
0x27ae   :  { %v6276_v18 = vadd.f32 %v9747_v30, %v8727_v10  ;;  %v6270_v12 = vpop.f32.mrb[81].mxu1 }
0x27af   :  { %v6271_v46 = vadd.f32 %v8727_v10, %v6270_v12 }
0x27b0   :  { %v6290_v47 = vmax.f32 %v6276_v18, 0.0 }
0x27b1   :  { %v6289_v13 = vmax.f32 %v6271_v46, 0.0 }
0x27b3   :  { %9759 = vmatprep.mubr.msk.f32.mxu1 %vm52_vm0, %v6289_v13 }
0x27b4   :  { %v9750_v50 = vpop.f32.mrb[82].mxu1  ;;  %9760 = vmatmul.mubr.msk.f32.vlgmr.msra.gmra.mrb[84].mxu1 %vm52_vm0, %v6290_v47 }
0x27b5   :  { %v6286_v15 = vadd.f32 %v9750_v50, %v8727_v10  ;;  %v6280_v56 = vpop.f32.mrb[83].mxu1 }
0x27b6   :  { %v6281_v17 = vadd.f32 %v8727_v10, %v6280_v56 }
0x27b7   :  { %v6292_v3 = vmax.f32 %v6286_v15, 0.0 }
0x27b8   :  { %v6291_v26 = vmax.f32 %v6281_v17, 0.0 }
0x27ba   :  { %9762 = vmatprep.mubr.msk.f32.mxu1 %vm52_vm0, %v6291_v26 }
0x27bb   :  { %9763 = vmatmul.mubr.msk.f32.gmra.mrb[86].mxu1 %vm52_vm0, %v6292_v3 }
0x2887   :  { %v9761_v28 = vpop.f32.mrb[84].mxu1 }
0x2888   :  { %v6386_v37 = vadd.f32 %v9761_v28, %v8732_v24  ;;  %v6380_v39 = vpop.f32.mrb[85].mxu1 }
0x2889   :  { %v6381_v40 = vadd.f32 %v8732_v24, %v6380_v39 }
0x288a   :  { %v6400_v36 = vadd.f32 %v6386_v37, %v6180_v1 }
0x288b   :  { %v6399_v55 = vadd.f32 %v6381_v40, %v6179_v22 }
0x288c   :  { %v6406_v44 = vsel %vm52_vm0, %v6400_v36, 0.0 }
0x288d   :  { %6407 = vadd.xlane.f32.xlu0 %v6406_v44  ;;  %v6403_v45 = vsel %vm52_vm0, %v6399_v55, 0.0 }
0x288e   :  { %6404 = vadd.xlane.f32.xlu1 %v6403_v45  ;;  %v9764_v4 = vpop.f32.mrb[86].mxu1  ;;  %v8737_v45 = vld [vmem:[%s12377_s9 + $0x1e] ss:$0 sm:$0xff] }
0x288f   :  { %v6396_v21 = vadd.f32 %v9764_v4, %v8732_v24  ;;  %v6390_v49 = vpop.f32.mrb[87].mxu1 }
0x2890   :  { %v6391_v6 = vadd.f32 %v8732_v24, %v6390_v49 }
0x2891   :  { %v6402_v51 = vadd.f32 %v6396_v21, %v6182_v57  ;;  %v10174_v57 = vpack.c.bf16 %v6474_v11, %v6473_v19 }
0x2892   :  { %v6401_v52 = vadd.f32 %v6391_v6, %v6181_v7 }
0x2893   :  { %v6412_v38 = vsel %vm52_vm0, %v6402_v51, 0.0  ;;  %10175 = vmatprep.subr.bf16.mxu0 %v10174_v57 }
0x2894   :  { %6413 = vadd.xlane.f32.xlu0 %v6412_v38  ;;  %v6409_v53 = vsel %vm52_vm0, %v6401_v52, 0.0  ;;  %10177 = vmatpush3.bf16.msra.mxu0 %v10174_v57  ;;  %v12098_v57 = vld [vmem:[%s12382_s4 + $0x8] sm:$0xff] }
0x2895   :  { %6410 = vadd.xlane.f32.xlu1 %v6409_v53  ;;  %10179 = vmatprep.subr.bf16.mxu0 %v10178_v9 }
0x2898   :  { %10181 = vmatpush3.bf16.msra.mxu0 %v10178_v9  ;;  %v12104_v9 = vld [vmem:[%s12382_s4] sm:$0xff] }
0x291a   :  { %v6408_v42 = vpop.xlane.xlu0 %6407 }
0x291b   :  { %v6416_v23 = vmul.f32 0.03125, %v6408_v42  ;;  %v6405_v54 = vpop.xlane.xlu1 %6404 }
0x291c   :  { %v6415_v48 = vmul.f32 0.03125, %v6405_v54 }
0x291d   :  { %v6420_v59 = vsub.f32 %v6400_v36, %v6416_v23 }
0x291e   :  { %v6419_v60 = vsub.f32 %v6399_v55, %v6415_v48 }
0x291f   :  { %v6424_v5 = vmul.f32 %v6420_v59, %v6420_v59 }
0x2920   :  { %v6423_v58 = vmul.f32 %v6419_v60, %v6419_v60 }
0x2921   :  { %v6414_v61 = vpop.xlane.xlu0 %6413  ;;  %v6430_v0 = vsel %vm52_vm0, %v6424_v5, 0.0 }
0x2922   :  { %v6418_v2 = vmul.f32 0.03125, %v6414_v61  ;;  %6431 = vadd.xlane.f32.xlu0 %v6430_v0  ;;  %v6411_v29 = vpop.xlane.xlu1 %6410  ;;  %v6427_v63 = vsel %vm52_vm0, %v6423_v58, 0.0  ;;  %v8739_v61 = vld [vmem:[%s12377_s9 + $0x20] ss:$0 sm:$0xff] }
0x2923   :  { %v6417_v62 = vmul.f32 0.03125, %v6411_v29  ;;  %6428 = vadd.xlane.f32.xlu1 %v6427_v63 }
0x2924   :  { %v6422_v22 = vsub.f32 %v6402_v51, %v6418_v2  ;;  %v8738_v51 = vld [vmem:[%s12377_s9 + $0x1f] ss:$0 sm:$0xff] }
0x2925   :  { %v6421_v32 = vsub.f32 %v6401_v52, %v6417_v62 }
0x2926   :  { %v6426_v1 = vmul.f32 %v6422_v22, %v6422_v22 }
0x2927   :  { %v6425_v31 = vmul.f32 %v6421_v32, %v6421_v32 }
0x2928   :  { %v6436_v34 = vsel %vm52_vm0, %v6426_v1, 0.0 }
0x2929   :  { %6437 = vadd.xlane.f32.xlu0 %v6436_v34  ;;  %v6433_v7 = vsel %vm52_vm0, %v6425_v31, 0.0 }
0x292a   :  { %6434 = vadd.xlane.f32.xlu1 %v6433_v7 }
0x293b   :  { %10440 = vrot.lane.b32.xlu1 %v11118_v20, %s10822_s30 }
0x293f   :  { %10445 = vrot.lane.b32.xlu0 %v11118_v20, %s10823_s1 }
0x29af   :  { %v6432_v10 = vpop.xlane.xlu0 %6431 }
0x29b0   :  { %v6440_v30 = vmul.f32 0.03125, %v6432_v10  ;;  %v6429_v18 = vpop.xlane.xlu1 %6428 }
0x29b1   :  { %v6439_v12 = vmul.f32 0.03125, %v6429_v18 }
0x29b2   :  { %v6444_v46 = vadd.f32 1e-05, %v6440_v30 }
0x29b3   :  { %v6443_v13 = vadd.f32 1e-05, %v6439_v12 }
0x29b4   :  { %10712 = vrsqrt.f32 %v6444_v46  ;;  %v12112_v46 = vld [vmem:[%s12382_s4 + $0x18] sm:$0xff] }
0x29b5   :  { %10714 = vrsqrt.f32 %v6443_v13 }
0x29b6   :  { %v6438_v47 = vpop.xlane.xlu0 %6437 }
0x29b7   :  { %v6442_v50 = vmul.f32 0.03125, %v6438_v47  ;;  %v6435_v15 = vpop.xlane.xlu1 %6434 }
0x29b8   :  { %v6441_v56 = vmul.f32 0.03125, %v6435_v15  ;;  %v12119_v15 = vld [vmem:[%s12382_s4 + $0x10] sm:$0xff] }
0x29b9   :  { %v6446_v17 = vadd.f32 1e-05, %v6442_v50 }
0x29ba   :  { %v6445_v26 = vadd.f32 1e-05, %v6441_v56  ;;  %v10446_v3 = vpop.permute.xlu0 %10445 }
0x29bb   :  { %10716 = vrsqrt.f32 %v6446_v17  ;;  %v10448_v24 = vunpack.i.h.bf16 %v10446_v3  ;;  %v10447_v28 = vunpack.i.l.bf16 %v10446_v3  ;;  %v10441_v37 = vpop.permute.xlu1 %10440 }
0x29bc   :  { %10718 = vrsqrt.f32 %v6445_v26  ;;  %v10443_v39 = vunpack.i.h.bf16 %v10441_v37  ;;  %v10442_v40 = vunpack.i.l.bf16 %v10441_v37 }
0x29bd   :  { %v10188_v36 = vpack.c.bf16 %v10448_v24, %v10447_v28 }
0x29be   :  { %v10713_v55 = vpop.eup %10712  ;;  %v10182_v44 = vpack.c.bf16 %v10443_v39, %v10442_v40 }
0x29bf   :  { %v10715_v4 = vpop.eup %10714  ;;  %v6452_v21 = vmul.f32 %v10713_v55, %v6420_v59  ;;  %10189 = vmatprep.subr.bf16.mxu0 %v10188_v36 }
0x29c0   :  { %10184 = vmatprep.subr.msk.bf16.mxu1 %vm11106_vm5, %v10182_v44  ;;  %v6451_v49 = vmul.f32 %v10715_v4, %v6419_v60 }
0x29c1   :  { %10187 = vmatpush3.bf16.xpose.msk.msra.mxu1 %vm11106_vm5, %v10182_v44  ;;  %v6461_v6 = vmul.f32 %v8737_v45, %v6452_v21 }
0x29c2   :  { %v6460_v52 = vmul.f32 %v8737_v45, %v6451_v49 }
0x29c3   :  { %v12058_v42 = vadd.f32 %v8738_v51, %v6461_v6 }
0x29c4   :  { %v12056_v38 = vadd.f32 %v8738_v51, %v6460_v52 }
0x29c5   :  { %v10717_v53 = vpop.eup %10716 }
0x29c6   :  { %v10719_v23 = vpop.eup %10718  ;;  %9773 = vmatprep.mubr.msk.f32.mxu0 %vm52_vm0, %v12056_v38  ;;  %v6454_v54 = vmul.f32 %v10717_v53, %v6422_v22 }
0x29c7   :  { %9774 = vmatmul.mubr.msk.f32.vlgmr.msra.gmra.mrb[76].mxu0 %vm52_vm0, %v12058_v42  ;;  %v6453_v48 = vmul.f32 %v10719_v23, %v6421_v32 }
0x29c8   :  { %10191 = vmatpush3.bf16.msra.mxu0 %v10188_v36  ;;  %v6463_v59 = vmul.f32 %v8737_v45, %v6454_v54 }
0x29c9   :  { %v6462_v60 = vmul.f32 %v8737_v45, %v6453_v48 }
0x29ca   :  { %v12066_v58 = vadd.f32 %v8738_v51, %v6463_v59 }
0x29cb   :  { %v12064_v5 = vadd.f32 %v8738_v51, %v6462_v60 }
0x29cd   :  { %9776 = vmatprep.mubr.msk.f32.mxu0 %vm52_vm0, %v12064_v5 }
0x29ce   :  { %9777 = vmatmul.mubr.msk.f32.gmra.mrb[78].mxu0 %vm52_vm0, %v12066_v58 }
0x2a9a   :  { %v9775_v0 = vpop.f32.mrb[76].mxu0 }
0x2a9b   :  { %v6566_v2 = vadd.f32 %v9775_v0, %v8739_v61  ;;  %v6560_v29 = vpop.f32.mrb[77].mxu0 }
0x2a9c   :  { %v6561_v63 = vadd.f32 %v8739_v61, %v6560_v29 }
0x2a9d   :  { %6580 = vst.msk [vmem:[#allocation4 + $0x8] sm:$0xff] %vm52_vm0, %v6566_v2 }
0x2a9e   :  { %6579 = vst.msk [vmem:[#allocation4] sm:$0xff] %vm52_vm0, %v6561_v63 }
0x2aa1   :  { %v9778_v62 = vpop.f32.mrb[78].mxu0 }
0x2aa2   :  { %v6576_v22 = vadd.f32 %v9778_v62, %v8739_v61  ;;  %v6570_v32 = vpop.f32.mrb[79].mxu0 }
0x2aa3   :  { %v6571_v1 = vadd.f32 %v8739_v61, %v6570_v32 }
0x2aa4   :  { %6582 = vst.msk [vmem:[#allocation4 + $0x18] sm:$0xff] %vm52_vm0, %v6576_v22  ;;  %v12083_v34 = vld [vmem:[#allocation4 + $0x8] sm:$0xff] }
0x2aa5   :  { %6581 = vst.msk [vmem:[#allocation4 + $0x10] sm:$0xff] %vm52_vm0, %v6571_v1  ;;  %v12079_v31 = vld [vmem:[#allocation4] sm:$0xff] }
0x2aa6   :  { %9783 = vmatprep.mubr.msk.f32.mxu1 %vm850_vm4, %v12079_v31 }
0x2aa7   :  { %9784 = vmatmul.mubr.msk.f32.vlgmr.msra.gmra.mrb[88].mxu1 %vm850_vm4, %v12083_v34 }
0x2aab   :  { %v12091_v19 = vld [vmem:[#allocation4 + $0x18] sm:$0xff] }
0x2aac   :  { %v12087_v7 = vld [vmem:[#allocation4 + $0x10] sm:$0xff] }
0x2aad   :  { %9786 = vmatprep.mubr.msk.f32.mxu1 %vm850_vm4, %v12087_v7 }
0x2aae   :  { %9787 = vmatmul.mubr.msk.f32.gmra.mrb[90].mxu1 %vm850_vm4, %v12091_v19 }
0x2b7a   :  { %v9785_v11 = vpop.f32.mrb[88].mxu1 }
0x2b7b   :  { %v6684_v27 = vadd.f32 %v12098_v57, %v9785_v11  ;;  %v6678_v8 = vpop.f32.mrb[89].mxu1 }
0x2b7c   :  { %v6679_v10 = vadd.f32 %v12104_v9, %v6678_v8 }
0x2b7d   :  { %v6700_v30 = vsel %vm954_vm6, %v6684_v27, -inf }
0x2b7e   :  { %6701 = vmax.xlane.f32.xlu0 %v6700_v30  ;;  %v6697_v12 = vsel %vm954_vm6, %v6679_v10, -inf }
0x2b81   :  { %v9788_v18 = vpop.f32.mrb[90].mxu1 }
0x2b82   :  { %v6694_v13 = vadd.f32 %v12112_v46, %v9788_v18  ;;  %v6688_v47 = vpop.f32.mrb[91].mxu1  ;;  %6698 = vmax.xlane.f32.xlu0 %v6697_v12 }
0x2b83   :  { %v6689_v56 = vadd.f32 %v12119_v15, %v6688_v47 }
0x2b84   :  { %v6706_v50 = vsel %vm954_vm6, %v6694_v13, -inf }
0x2b85   :  { %v6703_v17 = vsel %vm954_vm6, %v6689_v56, -inf }
0x2b86   :  { %6707 = vmax.xlane.f32.xlu0 %v6706_v50 }
0x2b8a   :  { %6704 = vmax.xlane.f32.xlu0 %v6703_v17 }
0x2ba0   :  { %10450 = vrot.lane.b32.xlu0 %v11118_v20, %s10824_s14 }
0x2c0b   :  { %v6702_v26 = vpop.xlane.xlu0 %6701 }
0x2c0c   :  { %v6710_v3 = vsub.f32 %v6684_v27, %v6702_v26 }
0x2c0e   :  { %v6715_v24 = vmul.f32 1.442695, %v6710_v3 }
0x2c0f   :  { %v6699_v28 = vpop.xlane.xlu0 %6698 }
0x2c10   :  { %10720 = vpow2.f32 %v6715_v24  ;;  %v6709_v37 = vsub.f32 %v6679_v10, %v6699_v28 }
0x2c12   :  { %v6713_v39 = vmul.f32 1.442695, %v6709_v37  ;;  %v6741_v37 = vld [vmem:[%s12378_s6 + $0x1a0] sm:$0xff] }
0x2c13   :  { %v6708_v40 = vpop.xlane.xlu0 %6707  ;;  %9799 = vmatprep.subr.mxu1 %v6741_v37 }
0x2c14   :  { %10722 = vpow2.f32 %v6713_v39  ;;  %v6712_v52 = vsub.f32 %v6694_v13, %v6708_v40  ;;  %9800 = vmatpush3.msra.mxu1 %v6741_v37 }
0x2c16   :  { %v6719_v53 = vmul.f32 1.442695, %v6712_v52 }
0x2c17   :  { %v6705_v36 = vpop.xlane.xlu0 %6704 }
0x2c18   :  { %v6711_v23 = vsub.f32 %v6689_v56, %v6705_v36  ;;  %10724 = vpow2.f32 %v6719_v53 }
0x2c1a   :  { %v10721_v55 = vpop.eup %10720  ;;  %v6717_v54 = vmul.f32 1.442695, %v6711_v23 }
0x2c1b   :  { %v10451_v44 = vpop.permute.xlu0 %10450  ;;  %v6724_v45 = vsel %vm954_vm6, %v10721_v55, 0.0 }
0x2c1c   :  { %v10453_v4 = vunpack.i.h.bf16 %v10451_v44  ;;  %v10452_v21 = vunpack.i.l.bf16 %v10451_v44  ;;  %6725 = vadd.xlane.f32.xlu0 %v6724_v45  ;;  %10726 = vpow2.f32 %v6717_v54 }
0x2c1e   :  { %v10723_v49 = vpop.eup %10722  ;;  %v10192_v6 = vpack.c.bf16 %v10453_v4, %v10452_v21 }
0x2c1f   :  { %v6721_v51 = vsel %vm954_vm6, %v10723_v49, 0.0 }
0x2c20   :  { %6722 = vadd.xlane.f32.xlu1 %v6721_v51  ;;  %10194 = vmatprep.subr.msk.bf16.mxu0 %vm11106_vm5, %v10192_v6 }
0x2c22   :  { %v10725_v48 = vpop.eup %10724 }
0x2c23   :  { %v6730_v59 = vsel %vm954_vm6, %v10725_v48, 0.0 }
0x2c26   :  { %v10727_v60 = vpop.eup %10726 }
0x2c27   :  { %v6727_v61 = vsel %vm954_vm6, %v10727_v60, 0.0 }
0x2c31   :  { %10455 = vrot.lane.b32.xlu1 %v11118_v20, %s10825_s18 }
0x2c32   :  { %6950 = vrot.lane.b32.xlu0 %v12079_v31, %s10815_s15 }
0x2c35   :  { %7308 = vrot.lane.b32.xlu1 %v12079_v31, %s10817_s17 }
0x2c39   :  { %7312 = vrot.lane.b32.xlu1 %v12087_v7, %s10817_s17 }
0x2c51   :  { %6731 = vadd.xlane.f32.xlu0 %v6730_v59 }
0x2c55   :  { %6728 = vadd.xlane.f32.xlu0 %v6727_v61 }
0x2c6b   :  { %6952 = vrot.lane.b32.xlu0 %v12083_v34, %s10815_s15 }
0x2c6f   :  { %6954 = vrot.lane.b32.xlu0 %v12087_v7, %s10815_s15 }
0x2c73   :  { %6956 = vrot.lane.b32.xlu0 %v12091_v19, %s10815_s15 }
0x2c77   :  { %7310 = vrot.lane.b32.xlu0 %v12083_v34, %s10817_s17 }
0x2c7b   :  { %7314 = vrot.lane.b32.xlu0 %v12091_v19, %s10817_s17 }
0x2ca9   :  { %v6726_v0 = vpop.xlane.xlu0 %6725 }
0x2caa   :  { %10728 = vrcp.f32 %v6726_v0 }
0x2cad   :  { %v6723_v2 = vpop.xlane.xlu1 %6722  ;;  %v6951_v8 = vpop.permute.xlu0 %6950 }
0x2cae   :  { %10730 = vrcp.f32 %v6723_v2 }
0x2cb1   :  { %v10456_v29 = vpop.permute.xlu1 %10455 }
0x2cb2   :  { %v10458_v22 = vunpack.i.h.bf16 %v10456_v29  ;;  %v10457_v32 = vunpack.i.l.bf16 %v10456_v29 }
0x2cb4   :  { %v10729_v63 = vpop.eup %10728  ;;  %v10202_v27 = vpack.c.bf16 %v10458_v22, %v10457_v32 }
0x2cb5   :  { %v6738_v11 = vmul.f32 %v10729_v63, %v10721_v55  ;;  %v7309_v26 = vpop.permute.xlu1 %7308 }
0x2cb8   :  { %v10731_v62 = vpop.eup %10730 }
0x2cb9   :  { %v6737_v1 = vmul.f32 %v10731_v62, %v10723_v49  ;;  %v7313_v24 = vpop.permute.xlu1 %7312 }
0x2cbb   :  { %9793 = vmatprep.mubr.msk.f32.mxu0 %vm954_vm6, %v6737_v1 }
0x2cbc   :  { %9794 = vmatmul.mubr.msk.f32.vlgmr.msra.gmra.mrb[80].mxu0 %vm954_vm6, %v6738_v11 }
0x2cbd   :  { %10197 = vmatpush3.bf16.xpose.msk.msra.mxu0 %vm11106_vm5, %v10192_v6 }
0x2cbe   :  { %10204 = vmatprep.subr.msk.bf16.mxu0 %vm11106_vm5, %v10202_v27 }
0x2cde   :  { %v6732_v10 = vpop.xlane.xlu0 %6731 }
0x2cdf   :  { %10732 = vrcp.f32 %v6732_v10 }
0x2ce2   :  { %v6729_v30 = vpop.xlane.xlu0 %6728 }
0x2ce3   :  { %10734 = vrcp.f32 %v6729_v30 }
0x2ce6   :  { %v6953_v18 = vpop.permute.xlu0 %6952 }
0x2ce9   :  { %v10733_v12 = vpop.eup %10732 }
0x2cea   :  { %v6955_v47 = vpop.permute.xlu0 %6954  ;;  %v6740_v56 = vmul.f32 %v10733_v12, %v10725_v48 }
0x2ced   :  { %v10735_v13 = vpop.eup %10734 }
0x2cee   :  { %v6739_v50 = vmul.f32 %v10735_v13, %v10727_v60  ;;  %v6957_v17 = vpop.permute.xlu0 %6956 }
0x2cf0   :  { %9796 = vmatprep.mubr.msk.f32.mxu0 %vm954_vm6, %v6739_v50 }
0x2cf1   :  { %9797 = vmatmul.mubr.msk.f32.gmra.mrb[82].mxu0 %vm954_vm6, %v6740_v56 }
0x2cf2   :  { %9811 = vmatprep.mubr.msk.f32.mxu0 %vm850_vm4, %v6951_v8  ;;  %v7311_v3 = vpop.permute.xlu0 %7310 }
0x2cf5   :  { %9812 = vmatmul.mubr.msk.f32.vlgmr.msra.gmra.mrb[84].mxu0 %vm850_vm4, %v6953_v18 }
0x2cf6   :  { %10207 = vmatpush3.bf16.xpose.msk.msra.mxu0 %vm11106_vm5, %v10202_v27  ;;  %9814 = vmatprep.mubr.msk.f32.mxu0 %vm850_vm4, %v6955_v47  ;;  %v7315_v28 = vpop.permute.xlu0 %7314 }
0x2cf9   :  { %9815 = vmatmul.mubr.msk.f32.gmra.mrb[86].mxu0 %vm850_vm4, %v6957_v17 }
0x2cfa   :  { %9839 = vmatprep.mubr.msk.f32.mxu0 %vm850_vm4, %v7309_v26 }
0x2cfd   :  { %9840 = vmatmul.mubr.msk.f32.vlgmr.msra.gmra.mrb[88].mxu0 %vm850_vm4, %v7311_v3 }
0x2cfe   :  { %9842 = vmatprep.mubr.msk.f32.mxu0 %vm850_vm4, %v7313_v24 }
0x2d01   :  { %9843 = vmatmul.mubr.msk.f32.gmra.mrb[90].mxu0 %vm850_vm4, %v7315_v28 }
0x2d8f   :  { %v9795_v39 = vpop.f32.mrb[80].mxu0 }
0x2d90   :  { %v6826_v40 = vpop.f32.mrb[81].mxu0 }
0x2d91   :  { %9801 = vmatprep.mubr.msk.f32.mxu1 %vm850_vm4, %v6826_v40 }
0x2d92   :  { %9802 = vmatmul.mubr.msk.f32.vlgmr.msra.gmra.mrb[92].mxu1 %vm850_vm4, %v9795_v39 }
0x2dc4   :  { %v9798_v36 = vpop.f32.mrb[82].mxu0 }
0x2dc5   :  { %v6836_v55 = vpop.f32.mrb[83].mxu0 }
0x2dc6   :  { %9804 = vmatprep.mubr.msk.f32.mxu1 %vm850_vm4, %v6836_v55 }
0x2dc7   :  { %9805 = vmatmul.mubr.msk.f32.gmra.mrb[94].mxu1 %vm850_vm4, %v9798_v36 }
0x2dc8   :  { %v9813_v44 = vpop.f32.mrb[84].mxu0 }
0x2dc9   :  { %v7040_v45 = vpop.f32.mrb[85].mxu0  ;;  %v7046_v3 = vadd.f32 %v12098_v57, %v9813_v44 }
0x2dca   :  { %v7041_v24 = vadd.f32 %v12104_v9, %v7040_v45 }
0x2dcc   :  { %v9816_v4 = vpop.f32.mrb[86].mxu0  ;;  %v7059_v39 = vsel %vm954_vm6, %v7041_v24, -inf }
0x2dcd   :  { %v7050_v21 = vpop.f32.mrb[87].mxu0  ;;  %v7056_v37 = vadd.f32 %v12112_v46, %v9816_v4 }
0x2dce   :  { %v7051_v28 = vadd.f32 %v12119_v15, %v7050_v21 }
0x2dd0   :  { %v9841_v49 = vpop.f32.mrb[88].mxu0 }
0x2dd1   :  { %v7404_v6 = vadd.f32 %v12098_v57, %v9841_v49  ;;  %v7398_v51 = vpop.f32.mrb[89].mxu0 }
0x2dd2   :  { %v7399_v52 = vadd.f32 %v12104_v9, %v7398_v51 }
0x2dd3   :  { %v7420_v53 = vsel %vm954_vm6, %v7404_v6, -inf }
0x2dd4   :  { %7421 = vmax.xlane.f32.xlu0 %v7420_v53  ;;  %v9844_v23 = vpop.f32.mrb[90].mxu0  ;;  %v7417_v54 = vsel %vm954_vm6, %v7399_v52, -inf }
0x2dd5   :  { %v7414_v48 = vadd.f32 %v12112_v46, %v9844_v23  ;;  %v7408_v59 = vpop.f32.mrb[91].mxu0  ;;  %7418 = vmax.xlane.f32.xlu1 %v7417_v54 }
0x2dd6   :  { %v7409_v60 = vadd.f32 %v12119_v15, %v7408_v59 }
0x2dd7   :  { %v7426_v61 = vsel %vm954_vm6, %v7414_v48, -inf }
0x2dd8   :  { %v7423_v0 = vsel %vm954_vm6, %v7409_v60, -inf }
0x2dd9   :  { %7424 = vmax.xlane.f32.xlu0 %v7423_v0  ;;  %7427 = vmax.xlane.f32.xlu1 %v7426_v61 }
0x2e61   :  { %v7422_v2 = vpop.xlane.xlu0 %7421 }
0x2e62   :  { %v7430_v29 = vsub.f32 %v7404_v6, %v7422_v2  ;;  %v7419_v63 = vpop.xlane.xlu1 %7418 }
0x2e63   :  { %v7429_v62 = vsub.f32 %v7399_v52, %v7419_v63 }
0x2e64   :  { %v7435_v22 = vmul.f32 1.442695, %v7430_v29 }
0x2e65   :  { %v7433_v32 = vmul.f32 1.442695, %v7429_v62 }
0x2e66   :  { %10736 = vpow2.f32 %v7435_v22  ;;  %v7425_v1 = vpop.xlane.xlu0 %7424  ;;  %v7428_v11 = vpop.xlane.xlu1 %7427 }
0x2e67   :  { %10738 = vpow2.f32 %v7433_v32  ;;  %v7431_v27 = vsub.f32 %v7409_v60, %v7425_v1  ;;  %v7432_v8 = vsub.f32 %v7414_v48, %v7428_v11 }
0x2e69   :  { %v7437_v10 = vmul.f32 1.442695, %v7431_v27  ;;  %v7439_v30 = vmul.f32 1.442695, %v7432_v8 }
0x2e6b   :  { %10740 = vpow2.f32 %v7437_v10 }
0x2e6c   :  { %10742 = vpow2.f32 %v7439_v30 }
0x2e70   :  { %v10737_v18 = vpop.eup %10736 }
0x2e71   :  { %v10739_v12 = vpop.eup %10738  ;;  %v7444_v13 = vsel %vm954_vm6, %v10737_v18, 0.0 }
0x2e72   :  { %7445 = vadd.xlane.f32.xlu1 %v7444_v13  ;;  %v7441_v47 = vsel %vm954_vm6, %v10739_v12, 0.0 }
0x2e73   :  { %7442 = vadd.xlane.f32.xlu0 %v7441_v47 }
0x2e75   :  { %v10741_v50 = vpop.eup %10740 }
0x2e76   :  { %v10743_v56 = vpop.eup %10742  ;;  %v7447_v17 = vsel %vm954_vm6, %v10741_v50, 0.0 }
0x2e77   :  { %7448 = vadd.xlane.f32.xlu0 %v7447_v17  ;;  %v7450_v26 = vsel %vm954_vm6, %v10743_v56, 0.0 }
0x2e78   :  { %7451 = vadd.xlane.f32.xlu1 %v7450_v26 }
0x2e89   :  { %10465 = vrot.lane.b32.xlu1 %v11118_v20, %s10826_s21 }
0x2e8d   :  { %7666 = vrot.lane.b32.xlu1 %v12079_v31, %s10819_s19  ;;  %10460 = vrot.lane.b32.xlu0 %v11118_v20, %s10827_s22  ;;  %v7062_v31 = vsel %vm954_vm6, %v7046_v3, -inf }
0x2e91   :  { %7670 = vrot.lane.b32.xlu1 %v12087_v7, %s10819_s19  ;;  %7668 = vrot.lane.b32.xlu0 %v12083_v34, %s10819_s19  ;;  %v7065_v7 = vsel %vm954_vm6, %v7051_v28, -inf  ;;  %v7068_v34 = vsel %vm954_vm6, %v7056_v37, -inf }
0x2e95   :  { %7672 = vrot.lane.b32.xlu0 %v12091_v19, %s10819_s19 }
0x2eb4   :  { %7063 = vmax.xlane.f32.xlu0 %v7062_v31 }
0x2eb5   :  { %7060 = vmax.xlane.f32.xlu1 %v7059_v39 }
0x2eb8   :  { %7066 = vmax.xlane.f32.xlu0 %v7065_v7 }
0x2eb9   :  { %7069 = vmax.xlane.f32.xlu1 %v7068_v34 }
0x2eff   :  { %v7446_v19 = vpop.xlane.xlu1 %7445 }
0x2f00   :  { %v7443_v40 = vpop.xlane.xlu0 %7442 }
0x2f01   :  { %10744 = vrcp.f32 %v7443_v40 }
0x2f02   :  { %10746 = vrcp.f32 %v7446_v19 }
0x2f04   :  { %v7449_v36 = vpop.xlane.xlu0 %7448 }
0x2f05   :  { %10748 = vrcp.f32 %v7449_v36  ;;  %v7452_v55 = vpop.xlane.xlu1 %7451 }
0x2f06   :  { %10750 = vrcp.f32 %v7452_v55 }
0x2f08   :  { %v10461_v44 = vpop.permute.xlu0 %10460 }
0x2f09   :  { %v10463_v45 = vunpack.i.h.bf16 %v10461_v44  ;;  %v10462_v4 = vunpack.i.l.bf16 %v10461_v44  ;;  %v10466_v21 = vpop.permute.xlu1 %10465 }
0x2f0a   :  { %v10468_v49 = vunpack.i.h.bf16 %v10466_v21  ;;  %v10467_v6 = vunpack.i.l.bf16 %v10466_v21 }
0x2f0b   :  { %v10745_v51 = vpop.eup %10744  ;;  %v10208_v52 = vpack.c.bf16 %v10463_v45, %v10462_v4 }
0x2f0c   :  { %v10747_v53 = vpop.eup %10746  ;;  %v7457_v23 = vmul.f32 %v10745_v51, %v10739_v12  ;;  %v10212_v54 = vpack.c.bf16 %v10468_v49, %v10467_v6  ;;  %v7669_v29 = vpop.permute.xlu0 %7668 }
0x2f0d   :  { %10209 = vmatprep.subr.bf16.mxu0 %v10208_v52  ;;  %v7458_v59 = vmul.f32 %v10747_v53, %v10737_v18  ;;  %v7667_v2 = vpop.permute.xlu1 %7666 }
0x2f0e   :  { %10211 = vmatpush3.bf16.msra.mxu0 %v10208_v52  ;;  %9849 = vmatprep.mubr.msk.f32.mxu0 %vm954_vm6, %v7457_v23 }
0x2f0f   :  { %v10749_v48 = vpop.eup %10748  ;;  %10214 = vmatprep.subr.msk.bf16.mxu0 %vm11106_vm5, %v10212_v54 }
0x2f10   :  { %v10751_v60 = vpop.eup %10750  ;;  %v7459_v61 = vmul.f32 %v10749_v48, %v10741_v50  ;;  %v7673_v62 = vpop.permute.xlu0 %7672 }
0x2f11   :  { %9850 = vmatmul.mubr.msk.f32.vlgmr.msra.gmra.mrb[92].mxu0 %vm954_vm6, %v7458_v59  ;;  %v7460_v0 = vmul.f32 %v10751_v60, %v10743_v56  ;;  %v7671_v63 = vpop.permute.xlu1 %7670 }
0x2f12   :  { %9852 = vmatprep.mubr.msk.f32.mxu0 %vm954_vm6, %v7459_v61 }
0x2f15   :  { %9853 = vmatmul.mubr.msk.f32.gmra.mrb[94].mxu0 %vm954_vm6, %v7460_v0 }
0x2f16   :  { %9867 = vmatprep.mubr.msk.f32.mxu0 %vm850_vm4, %v7667_v2 }
0x2f17   :  { %10217 = vmatpush3.bf16.xpose.msk.msra.mxu0 %vm11106_vm5, %v10212_v54 }
0x2f1e   :  { %9868 = vmatmul.mubr.msk.f32.vlgmr.msra.gmra.mrb[96].mxu0 %vm850_vm4, %v7669_v29 }
0x2f1f   :  { %9870 = vmatprep.mubr.msk.f32.mxu0 %vm850_vm4, %v7671_v63 }
0x2f22   :  { %9871 = vmatmul.mubr.msk.f32.gmra.mrb[98].mxu0 %vm850_vm4, %v7673_v62 }
0x2f41   :  { %v7064_v22 = vpop.xlane.xlu0 %7063 }
0x2f42   :  { %v7072_v32 = vsub.f32 %v7046_v3, %v7064_v22  ;;  %v7061_v1 = vpop.xlane.xlu1 %7060 }
0x2f43   :  { %v7071_v11 = vsub.f32 %v7041_v24, %v7061_v1 }
0x2f44   :  { %v7077_v27 = vmul.f32 1.442695, %v7072_v32 }
0x2f45   :  { %v7075_v8 = vmul.f32 1.442695, %v7071_v11  ;;  %v7067_v10 = vpop.xlane.xlu0 %7066 }
0x2f46   :  { %10752 = vpow2.f32 %v7077_v27  ;;  %v7073_v30 = vsub.f32 %v7051_v28, %v7067_v10  ;;  %v7070_v16 = vpop.xlane.xlu1 %7069 }
0x2f47   :  { %10754 = vpow2.f32 %v7075_v8  ;;  %v7074_v18 = vsub.f32 %v7056_v37, %v7070_v16 }
0x2f48   :  { %v7079_v12 = vmul.f32 1.442695, %v7073_v30 }
0x2f49   :  { %v7081_v13 = vmul.f32 1.442695, %v7074_v18 }
0x2f4a   :  { %10756 = vpow2.f32 %v7079_v12 }
0x2f4b   :  { %10758 = vpow2.f32 %v7081_v13 }
0x2f50   :  { %v10753_v47 = vpop.eup %10752 }
0x2f51   :  { %v10755_v50 = vpop.eup %10754  ;;  %v7086_v56 = vsel %vm954_vm6, %v10753_v47, 0.0 }
0x2f52   :  { %7087 = vadd.xlane.f32.xlu1 %v7086_v56  ;;  %v7083_v17 = vsel %vm954_vm6, %v10755_v50, 0.0 }
0x2f53   :  { %7084 = vadd.xlane.f32.xlu0 %v7083_v17 }
0x2f54   :  { %v10757_v26 = vpop.eup %10756 }
0x2f55   :  { %v10759_v3 = vpop.eup %10758  ;;  %v7089_v24 = vsel %vm954_vm6, %v10757_v26, 0.0 }
0x2f56   :  { %v7092_v28 = vsel %vm954_vm6, %v10759_v3, 0.0 }
0x2f57   :  { %7090 = vadd.xlane.f32.xlu0 %v7089_v24  ;;  %7093 = vadd.xlane.f32.xlu1 %v7092_v28 }
0x2f6d   :  { %10470 = vrot.lane.b32.xlu0 %v11118_v20, %s10828_s3 }
0x2fdf   :  { %v7088_v31 = vpop.xlane.xlu1 %7087 }
0x2fe0   :  { %v7085_v37 = vpop.xlane.xlu0 %7084 }
0x2fe1   :  { %10760 = vrcp.f32 %v7085_v37 }
0x2fe2   :  { %10762 = vrcp.f32 %v7088_v31 }
0x2fe4   :  { %v7091_v39 = vpop.xlane.xlu0 %7090  ;;  %v7094_v7 = vpop.xlane.xlu1 %7093 }
0x2fe5   :  { %10764 = vrcp.f32 %v7091_v39  ;;  %v12224_v34 = vpop.f32.mrb[92].mxu0 }
0x2fe6   :  { %10766 = vrcp.f32 %v7094_v7  ;;  %v12226_v19 = vpop.f32.mrb[93].mxu0 }
0x2fe8   :  { %v10471_v40 = vpop.permute.xlu0 %10470  ;;  %v12228_v36 = vpop.f32.mrb[94].mxu0 }
0x2fe9   :  { %v10473_v55 = vunpack.i.h.bf16 %v10471_v40  ;;  %v10472_v44 = vunpack.i.l.bf16 %v10471_v40  ;;  %v12230_v45 = vpop.f32.mrb[95].mxu0 }
0x2feb   :  { %v10761_v4 = vpop.eup %10760  ;;  %v10198_v21 = vpack.c.bf16 %v10473_v55, %v10472_v44 }
0x2fec   :  { %v10763_v49 = vpop.eup %10762  ;;  %v7099_v6 = vmul.f32 %v10761_v4, %v10755_v50 }
0x2fed   :  { %10199 = vmatprep.subr.bf16.mxu1 %v10198_v21  ;;  %v7100_v52 = vmul.f32 %v10763_v49, %v10753_v47 }
0x2fee   :  { %10201 = vmatpush3.bf16.msra.mxu1 %v10198_v21  ;;  %9821 = vmatprep.mubr.msk.f32.mxu1 %vm954_vm6, %v7099_v6 }
0x2fef   :  { %v10765_v51 = vpop.eup %10764 }
0x2ff0   :  { %v10767_v53 = vpop.eup %10766  ;;  %v7101_v23 = vmul.f32 %v10765_v51, %v10757_v26 }
0x2ff1   :  { %9822 = vmatmul.mubr.msk.f32.vlgmr.msra.gmra.mrb[96].mxu1 %vm954_vm6, %v7100_v52  ;;  %v9869_v54 = vpop.f32.mrb[96].mxu0  ;;  %v7102_v60 = vmul.f32 %v10767_v53, %v10759_v3 }
0x2ff2   :  { %9824 = vmatprep.mubr.msk.f32.mxu1 %vm954_vm6, %v7101_v23  ;;  %v7756_v48 = vpop.f32.mrb[97].mxu0  ;;  %v7762_v61 = vadd.f32 %v12098_v57, %v9869_v54  ;;  %v7103_v57 = vld [vmem:[%s12378_s6 + $0x1a8] sm:$0xff] }
0x2ff3   :  { %v7757_v59 = vadd.f32 %v12104_v9, %v7756_v48  ;;  %9827 = vmatprep.subr.mxu1 %v7103_v57 }
0x2ff4   :  { %v7778_v62 = vsel %vm954_vm6, %v7762_v61, -inf  ;;  %9828 = vmatpush3.msra.mxu1 %v7103_v57 }
0x2ff5   :  { %9825 = vmatmul.mubr.msk.f32.gmra.mrb[98].mxu1 %vm954_vm6, %v7102_v60  ;;  %v9872_v0 = vpop.f32.mrb[98].mxu0  ;;  %v7775_v2 = vsel %vm954_vm6, %v7757_v59, -inf }
0x2ff6   :  { %v7766_v29 = vpop.f32.mrb[99].mxu0  ;;  %7776 = vmax.xlane.f32.xlu1 %v7775_v2  ;;  %v7772_v22 = vadd.f32 %v12112_v46, %v9872_v0  ;;  %v8758_v2 = vld [vmem:[%s12377_s9 + $0x21] ss:$0 sm:$0xff] }
0x2ff7   :  { %v7767_v63 = vadd.f32 %v12119_v15, %v7766_v29  ;;  %v7461_v15 = vld [vmem:[%s12378_s6 + $0x1b0] sm:$0xff] }
0x2ff8   :  { %v7784_v9 = vsel %vm954_vm6, %v7772_v22, -inf  ;;  %9855 = vmatprep.subr.mxu1 %v7461_v15 }
0x2ff9   :  { %v7781_v32 = vsel %vm954_vm6, %v7767_v63, -inf }
0x2ffa   :  { %7779 = vmax.xlane.f32.xlu1 %v7778_v62 }
0x2ffe   :  { %7782 = vmax.xlane.f32.xlu1 %v7781_v32 }
0x3002   :  { %7785 = vmax.xlane.f32.xlu1 %v7784_v9 }
0x3083   :  { %v7777_v1 = vpop.xlane.xlu1 %7776 }
0x3084   :  { %v7787_v11 = vsub.f32 %v7757_v59, %v7777_v1 }
0x3086   :  { %v7791_v46 = vmul.f32 1.442695, %v7787_v11 }
0x3087   :  { %v7780_v27 = vpop.xlane.xlu1 %7779 }
0x3088   :  { %10768 = vpow2.f32 %v7791_v46  ;;  %v7788_v8 = vsub.f32 %v7762_v61, %v7780_v27 }
0x308a   :  { %v7793_v10 = vmul.f32 1.442695, %v7788_v8 }
0x308b   :  { %v7783_v30 = vpop.xlane.xlu1 %7782 }
0x308c   :  { %10770 = vpow2.f32 %v7793_v10  ;;  %v7789_v16 = vsub.f32 %v7767_v63, %v7783_v30 }
0x308e   :  { %v7795_v47 = vmul.f32 1.442695, %v7789_v16 }
0x308f   :  { %v7786_v18 = vpop.xlane.xlu1 %7785 }
0x3090   :  { %v7790_v12 = vsub.f32 %v7772_v22, %v7786_v18 }
0x3092   :  { %v10769_v13 = vpop.eup %10768  ;;  %v7797_v50 = vmul.f32 1.442695, %v7790_v12 }
0x3093   :  { %v7799_v56 = vsel %vm954_vm6, %v10769_v13, 0.0 }
0x3094   :  { %10772 = vpow2.f32 %v7797_v50  ;;  %7800 = vadd.xlane.f32.xlu1 %v7799_v56 }
0x3095   :  { %10774 = vpow2.f32 %v7795_v47 }
0x3096   :  { %v10771_v17 = vpop.eup %10770 }
0x3097   :  { %v7802_v26 = vsel %vm954_vm6, %v10771_v17, 0.0 }
0x3098   :  { %7803 = vadd.xlane.f32.xlu0 %v7802_v26 }
0x309e   :  { %v10773_v3 = vpop.eup %10772 }
0x309f   :  { %v7808_v24 = vsel %vm954_vm6, %v10773_v3, 0.0  ;;  %v10775_v28 = vpop.eup %10774 }
0x30a0   :  { %7809 = vadd.xlane.f32.xlu1 %v7808_v24  ;;  %v7805_v31 = vsel %vm954_vm6, %v10775_v28, 0.0 }
0x30a4   :  { %7806 = vadd.xlane.f32.xlu1 %v7805_v31 }
0x30b5   :  { %10475 = vrot.lane.b32.xlu1 %v11118_v20, %s10829_s28 }
0x30c4   :  { %v9823_v37 = vpop.f32.mrb[96].mxu1 }
0x30c5   :  { %v7188_v39 = vpop.f32.mrb[97].mxu1 }
0x30c6   :  { %9829 = vmatprep.mubr.msk.f32.mxu1 %vm850_vm4, %v7188_v39 }
0x30c7   :  { %9830 = vmatmul.mubr.msk.f32.vlgmr.msra.gmra.mrb[92].mxu1 %vm850_vm4, %v9823_v37 }
0x30c8   :  { %v9826_v7 = vpop.f32.mrb[98].mxu1  ;;  %9856 = vmatpush3.msra.mxu1 %v7461_v15 }
0x30c9   :  { %v7198_v40 = vpop.f32.mrb[99].mxu1 }
0x30ca   :  { %9832 = vmatprep.mubr.msk.f32.mxu1 %vm850_vm4, %v7198_v40  ;;  %v8098_v40 = vld [vmem:[%s12378_s6 + $0x1c0] sm:$0xff] }
0x30cb   :  { %9833 = vmatmul.mubr.msk.f32.gmra.mrb[94].mxu1 %vm850_vm4, %v9826_v7 }
0x30cc   :  { %9857 = vmatprep.mubr.msk.f32.mxu1 %vm850_vm4, %v12226_v19 }
0x30cf   :  { %9858 = vmatmul.mubr.msk.f32.vlgmr.msra.gmra.mrb[92].mxu1 %vm850_vm4, %v12224_v34 }
0x30d0   :  { %9860 = vmatprep.mubr.msk.f32.mxu1 %vm850_vm4, %v12230_v45 }
0x30d3   :  { %9861 = vmatmul.mubr.msk.f32.gmra.mrb[94].mxu1 %vm850_vm4, %v12228_v36  ;;  %v7819_v36 = vld [vmem:[%s12378_s6 + $0x1b8] sm:$0xff] }
0x3121   :  { %v7801_v20 = vpop.xlane.xlu1 %7800 }
0x3122   :  { %10776 = vrcp.f32 %v7801_v20  ;;  %v8099_v20 = vld [vmem:[%s12378_s6 + $0x1c8] sm:$0xff] }
0x3125   :  { %v7804_v44 = vpop.xlane.xlu0 %7803 }
0x3126   :  { %10778 = vrcp.f32 %v7804_v44  ;;  %v10222_v44 = vpack.c.bf16 %v8099_v20, %v8098_v40 }
0x3128   :  { %10223 = vmatprep.subr.bf16.mxu0 %v10222_v44 }
0x3129   :  { %10225 = vmatpush3.bf16.msra.mxu0 %v10222_v44 }
0x312c   :  { %v10777_v55 = vpop.eup %10776 }
0x312d   :  { %v7810_v4 = vpop.xlane.xlu1 %7809  ;;  %v7815_v21 = vmul.f32 %v10777_v55, %v10769_v13  ;;  %v8100_v55 = vld [vmem:[%s12378_s6 + $0x1d0] sm:$0xff] }
0x312f   :  { %9877 = vmatprep.mubr.msk.f32.mxu1 %vm954_vm6, %v7815_v21 }
0x3130   :  { %v10779_v45 = vpop.eup %10778 }
0x3131   :  { %v7807_v49 = vpop.xlane.xlu1 %7806  ;;  %v7816_v53 = vmul.f32 %v10779_v45, %v10771_v17 }
0x3132   :  { %10780 = vrcp.f32 %v7807_v49  ;;  %v8208_v49 = vld [vmem:[%s12378_s6 + $0x1e0] sm:$0xff] }
0x3133   :  { %10782 = vrcp.f32 %v7810_v4  ;;  %v8101_v4 = vld [vmem:[%s12378_s6 + $0x1d8] sm:$0xff] }
0x3134   :  { %v10226_v21 = vpack.c.bf16 %v8101_v4, %v8100_v55 }
0x3135   :  { %v10476_v19 = vpop.permute.xlu1 %10475 }
0x3136   :  { %v10478_v34 = vunpack.i.h.bf16 %v10476_v19  ;;  %v10477_v6 = vunpack.i.l.bf16 %v10476_v19  ;;  %10227 = vmatprep.subr.bf16.mxu0 %v10226_v21  ;;  %v8209_v19 = vld [vmem:[%s12378_s6 + $0x1e8] sm:$0xff] }
0x3137   :  { %10229 = vmatpush3.bf16.msra.mxu0 %v10226_v21 }
0x3138   :  { %v10218_v51 = vpack.c.bf16 %v10478_v34, %v10477_v6  ;;  %v10230_v34 = vpack.c.bf16 %v8209_v19, %v8208_v49 }
0x313a   :  { %10219 = vmatprep.subr.bf16.mxu1 %v10218_v51  ;;  %10231 = vmatprep.subr.bf16.mxu0 %v10230_v34 }
0x313b   :  { %10221 = vmatpush3.bf16.msra.mxu1 %v10218_v51 }
0x313c   :  { %v10781_v52 = vpop.eup %10780  ;;  %9883 = vmatprep.subr.mxu1 %v7819_v36 }
0x313d   :  { %v10783_v23 = vpop.eup %10782  ;;  %v7817_v54 = vmul.f32 %v10781_v52, %v10775_v28 }
0x313e   :  { %9878 = vmatmul.mubr.msk.f32.vlgmr.msra.gmra.mrb[100].mxu1 %vm954_vm6, %v7816_v53  ;;  %v7818_v48 = vmul.f32 %v10783_v23, %v10773_v3 }
0x313f   :  { %9880 = vmatprep.mubr.msk.f32.mxu1 %vm954_vm6, %v7817_v54  ;;  %9884 = vmatpush3.msra.mxu1 %v7819_v36 }
0x3140   :  { %10238 = vmatprep.subr.bf16.mxu1 %v10812_v14 }
0x3142   :  { %9881 = vmatmul.mubr.msk.f32.gmra.mrb[102].mxu1 %vm954_vm6, %v7818_v48 }
0x3211   :  { %v9879_v59 = vpop.f32.mrb[100].mxu1 }
0x3212   :  { %v7904_v60 = vpop.f32.mrb[101].mxu1 }
0x3213   :  { %9885 = vmatprep.mubr.msk.f32.mxu1 %vm850_vm4, %v7904_v60 }
0x3214   :  { %9886 = vmatmul.mubr.msk.f32.vlgmr.msra.gmra.mrb[92].mxu1 %vm850_vm4, %v9879_v59 }
0x3215   :  { %v9882_v61 = vpop.f32.mrb[102].mxu1 }
0x3216   :  { %v7914_v0 = vpop.f32.mrb[103].mxu1 }
0x3217   :  { %9888 = vmatprep.mubr.msk.f32.mxu1 %vm850_vm4, %v7914_v0 }
0x3218   :  { %9889 = vmatmul.mubr.msk.f32.gmra.mrb[94].mxu1 %vm850_vm4, %v9882_v61 }
0x3219   :  { %9927 = vmatprep.mubr.msk.f32.mxu1 %vm10813_vm1, %v10814_v25 }
0x32e7   :  { %v9887_v29 = vpop.f32.mrb[92].mxu1 }
0x32e8   :  { %v10258_v63 = vadd.f32 %v9887_v29, %v8758_v2  ;;  %v8001_v62 = vpop.f32.mrb[93].mxu1 }
0x32e9   :  { %v10259_v22 = vadd.f32 %v8758_v2, %v8001_v62 }
0x32ea   :  { %v8025_v32 = vadd.f32 %v10258_v63, %v12058_v42  ;;  %v8802_v63 = vld [vmem:[%s12377_s9 + $0x25] ss:$0 sm:$0xff] }
0x32eb   :  { %v8024_v9 = vadd.f32 %v10259_v22, %v12056_v38  ;;  %v9890_v57 = vpop.f32.mrb[94].mxu1 }
0x32ec   :  { %v8011_v15 = vpop.f32.mrb[95].mxu1  ;;  %v8031_v1 = vsel %vm52_vm0, %v8025_v32, 0.0  ;;  %v10260_v11 = vadd.f32 %v9890_v57, %v8758_v2 }
0x32ed   :  { %v10261_v46 = vadd.f32 %v8758_v2, %v8011_v15  ;;  %8032 = vadd.xlane.f32.xlu0 %v8031_v1  ;;  %v8028_v25 = vsel %vm52_vm0, %v8024_v9, 0.0  ;;  %v8801_v2 = vld [vmem:[%s12377_s9 + $0x24] ss:$0 sm:$0xff] }
0x32ee   :  { %8029 = vadd.xlane.f32.xlu1 %v8028_v25  ;;  %v8027_v8 = vadd.f32 %v10260_v11, %v12066_v58 }
0x32ef   :  { %v8026_v27 = vadd.f32 %v10261_v46, %v12064_v5 }
0x32f0   :  { %v8037_v42 = vsel %vm52_vm0, %v8027_v8, 0.0 }
0x32f1   :  { %v8034_v10 = vsel %vm52_vm0, %v8026_v27, 0.0 }
0x32f2   :  { %8035 = vadd.xlane.f32.xlu0 %v8034_v10 }
0x32f6   :  { %8038 = vadd.xlane.f32.xlu0 %v8037_v42 }
0x337a   :  { %v8033_v38 = vpop.xlane.xlu0 %8032 }
0x337b   :  { %v8041_v30 = vmul.f32 0.03125, %v8033_v38  ;;  %v8030_v16 = vpop.xlane.xlu1 %8029  ;;  %v8210_v38 = vld [vmem:[%s12378_s6 + $0x1f0] sm:$0xff] }
0x337c   :  { %v8040_v18 = vmul.f32 0.03125, %v8030_v16 }
0x337d   :  { %v8045_v12 = vsub.f32 %v8025_v32, %v8041_v30  ;;  %v8211_v30 = vld [vmem:[%s12378_s6 + $0x1f8] sm:$0xff] }
0x337e   :  { %v8044_v13 = vsub.f32 %v8024_v9, %v8040_v18  ;;  %v10234_v16 = vpack.c.bf16 %v8211_v30, %v8210_v38  ;;  %v8803_v18 = vld [vmem:[%s12377_s9 + $0x22] ss:$0 sm:$0xff] }
0x337f   :  { %v8036_v47 = vpop.xlane.xlu0 %8035  ;;  %v8049_v26 = vmul.f32 %v8045_v12, %v8045_v12 }
0x3380   :  { %v8042_v50 = vmul.f32 0.03125, %v8036_v47  ;;  %v8048_v56 = vmul.f32 %v8044_v13, %v8044_v13 }
0x3381   :  { %v8055_v28 = vsel %vm52_vm0, %v8049_v26, 0.0 }
0x3382   :  { %v8046_v17 = vsub.f32 %v8026_v27, %v8042_v50  ;;  %v8052_v5 = vsel %vm52_vm0, %v8048_v56, 0.0 }
0x3383   :  { %8053 = vadd.xlane.f32.xlu0 %v8052_v5  ;;  %v8039_v58 = vpop.xlane.xlu0 %8038 }
0x3384   :  { %v8043_v3 = vmul.f32 0.03125, %v8039_v58  ;;  %v8050_v31 = vmul.f32 %v8046_v17, %v8046_v17 }
0x3386   :  { %v8047_v24 = vsub.f32 %v8027_v8, %v8043_v3  ;;  %v8058_v37 = vsel %vm52_vm0, %v8050_v31, 0.0  ;;  %v8808_v31 = vld [vmem:[%s12377_s9 + $0x23] ss:$0 sm:$0xff] }
0x3387   :  { %8056 = vadd.xlane.f32.xlu0 %v8055_v28 }
0x3388   :  { %v8051_v39 = vmul.f32 %v8047_v24, %v8047_v24 }
0x338a   :  { %v8061_v7 = vsel %vm52_vm0, %v8051_v39, 0.0 }
0x338b   :  { %8059 = vadd.xlane.f32.xlu0 %v8058_v37 }
0x338f   :  { %8062 = vadd.xlane.f32.xlu0 %v8061_v7 }
0x3410   :  { %v8054_v6 = vpop.xlane.xlu0 %8053 }
0x3411   :  { %v8064_v51 = vmul.f32 0.03125, %v8054_v6 }
0x3413   :  { %v8068_v45 = vadd.f32 1e-05, %v8064_v51 }
0x3414   :  { %v8057_v36 = vpop.xlane.xlu0 %8056 }
0x3415   :  { %10784 = vrsqrt.f32 %v8068_v45  ;;  %v8065_v52 = vmul.f32 0.03125, %v8057_v36 }
0x3417   :  { %v8069_v53 = vadd.f32 1e-05, %v8065_v52 }
0x3418   :  { %v8060_v23 = vpop.xlane.xlu0 %8059 }
0x3419   :  { %10786 = vrsqrt.f32 %v8069_v53  ;;  %v8066_v54 = vmul.f32 0.03125, %v8060_v23 }
0x341b   :  { %v8070_v48 = vadd.f32 1e-05, %v8066_v54 }
0x341c   :  { %v8063_v59 = vpop.xlane.xlu0 %8062 }
0x341d   :  { %10788 = vrsqrt.f32 %v8070_v48  ;;  %v8067_v60 = vmul.f32 0.03125, %v8063_v59 }
0x341f   :  { %v10785_v61 = vpop.eup %10784  ;;  %v8071_v0 = vadd.f32 1e-05, %v8067_v60 }
0x3420   :  { %v8076_v29 = vmul.f32 %v10785_v61, %v8044_v13 }
0x3421   :  { %10790 = vrsqrt.f32 %v8071_v0 }
0x3422   :  { %v8085_v62 = vmul.f32 %v8801_v2, %v8076_v29 }
0x3423   :  { %v10787_v22 = vpop.eup %10786 }
0x3424   :  { %v8077_v32 = vmul.f32 %v10787_v22, %v8045_v12  ;;  %v8094_v9 = vadd.f32 %v8802_v63, %v8085_v62 }
0x3426   :  { %v8086_v57 = vmul.f32 %v8801_v2, %v8077_v32  ;;  %9899 = vmatprep.mubr.msk.f32.mxu0 %vm52_vm0, %v8094_v9 }
0x3427   :  { %v10789_v15 = vpop.eup %10788 }
0x3428   :  { %v8095_v1 = vadd.f32 %v8802_v63, %v8086_v57  ;;  %v8078_v11 = vmul.f32 %v10789_v15, %v8046_v17 }
0x342a   :  { %9900 = vmatmul.mubr.msk.f32.vlgmr.msra.gmra.mrb[100].mxu0 %vm52_vm0, %v8095_v1  ;;  %v8087_v46 = vmul.f32 %v8801_v2, %v8078_v11 }
0x342b   :  { %v10791_v25 = vpop.eup %10790  ;;  %10233 = vmatpush3.bf16.msra.mxu0 %v10230_v34 }
0x342c   :  { %v8096_v27 = vadd.f32 %v8802_v63, %v8087_v46  ;;  %v8079_v8 = vmul.f32 %v10791_v25, %v8047_v24  ;;  %10235 = vmatprep.subr.bf16.mxu0 %v10234_v16  ;;  %v8393_v46 = vld [vmem:[%s12377_s9 + $0x7] sm:$0x1]  ;;  %v10830_v25 = vmov 0  }
0x342d   :  { %10479 = vset.pattern.permute.xlu0 %v10830_v25 }
0x342e   :  { %9902 = vmatprep.mubr.msk.f32.mxu0 %vm52_vm0, %v8096_v27  ;;  %v8088_v10 = vmul.f32 %v8801_v2, %v8079_v8 }
0x342f   :  { %10237 = vmatpush3.bf16.msra.mxu0 %v10234_v16 }
0x3430   :  { %v8097_v42 = vadd.f32 %v8802_v63, %v8088_v10 }
0x3432   :  { %9903 = vmatmul.mubr.msk.f32.gmra.mrb[102].mxu0 %vm52_vm0, %v8097_v42 }
0x34fd   :  { %v9901_v12 = vpop.f32.mrb[100].mxu0 }
0x34fe   :  { %v8191_v13 = vadd.f32 %v9901_v12, %v8803_v18  ;;  %v8185_v47 = vpop.f32.mrb[101].mxu0 }
0x34ff   :  { %v8186_v50 = vadd.f32 %v8803_v18, %v8185_v47 }
0x3500   :  { %v8205_v17 = vmax.f32 %v8191_v13, 0.0 }
0x3501   :  { %v8204_v56 = vmax.f32 %v8186_v50, 0.0 }
0x3503   :  { %9913 = vmatprep.mubr.msk.f32.mxu0 %vm52_vm0, %v8204_v56 }
0x3504   :  { %9914 = vmatmul.mubr.msk.f32.vlgmr.msra.gmra.mrb[104].mxu0 %vm52_vm0, %v8205_v17  ;;  %v8813_v17 = vld [vmem:[%s12377_s9 + $0x26] ss:$0 sm:$0xff] }
0x3505   :  { %v9904_v5 = vpop.f32.mrb[102].mxu0 }
0x3506   :  { %v8201_v26 = vadd.f32 %v9904_v5, %v8803_v18  ;;  %v8195_v58 = vpop.f32.mrb[103].mxu0 }
0x3507   :  { %v8196_v3 = vadd.f32 %v8803_v18, %v8195_v58 }
0x3508   :  { %v8207_v28 = vmax.f32 %v8201_v26, 0.0 }
0x3509   :  { %v8206_v24 = vmax.f32 %v8196_v3, 0.0  ;;  %v8814_v3 = vld [vmem:[%s12377_s9 + $0x27] ss:$0 sm:$0xff] }
0x350b   :  { %9916 = vmatprep.mubr.msk.f32.mxu0 %vm52_vm0, %v8206_v24 }
0x350c   :  { %9917 = vmatmul.mubr.msk.f32.gmra.mrb[106].mxu0 %vm52_vm0, %v8207_v28 }
0x35d7   :  { %v9915_v37 = vpop.f32.mrb[104].mxu0 }
0x35d8   :  { %v8301_v39 = vadd.f32 %v9915_v37, %v8808_v31  ;;  %v8295_v7 = vpop.f32.mrb[105].mxu0 }
0x35d9   :  { %v8296_v40 = vadd.f32 %v8808_v31, %v8295_v7 }
0x35da   :  { %v8315_v20 = vadd.f32 %v8301_v39, %v8095_v1 }
0x35db   :  { %v8314_v55 = vadd.f32 %v8296_v40, %v8094_v9 }
0x35dc   :  { %v8321_v44 = vsel %vm52_vm0, %v8315_v20, 0.0 }
0x35dd   :  { %8322 = vadd.xlane.f32.xlu1 %v8321_v44  ;;  %v8318_v4 = vsel %vm52_vm0, %v8314_v55, 0.0 }
0x35de   :  { %8319 = vadd.xlane.f32.xlu0 %v8318_v4 }
0x35df   :  { %v9918_v21 = vpop.f32.mrb[106].mxu0 }
0x35e0   :  { %v8311_v49 = vadd.f32 %v9918_v21, %v8808_v31  ;;  %v8305_v19 = vpop.f32.mrb[107].mxu0 }
0x35e1   :  { %v8306_v34 = vadd.f32 %v8808_v31, %v8305_v19 }
0x35e2   :  { %v8317_v6 = vadd.f32 %v8311_v49, %v8097_v42 }
0x35e3   :  { %v8316_v51 = vadd.f32 %v8306_v34, %v8096_v27 }
0x35e4   :  { %v8327_v45 = vsel %vm52_vm0, %v8317_v6, 0.0 }
0x35e5   :  { %8328 = vadd.xlane.f32.xlu1 %v8327_v45  ;;  %v8324_v36 = vsel %vm52_vm0, %v8316_v51, 0.0 }
0x35e6   :  { %8325 = vadd.xlane.f32.xlu0 %v8324_v36 }
0x366a   :  { %v8323_v52 = vpop.xlane.xlu1 %8322 }
0x366b   :  { %v8331_v53 = vmul.f32 0.03125, %v8323_v52  ;;  %v8320_v23 = vpop.xlane.xlu0 %8319 }
0x366c   :  { %v8330_v54 = vmul.f32 0.03125, %v8320_v23 }
0x366d   :  { %v8335_v48 = vsub.f32 %v8315_v20, %v8331_v53 }
0x366e   :  { %v8334_v59 = vsub.f32 %v8314_v55, %v8330_v54 }
0x366f   :  { %v8339_v60 = vmul.f32 %v8335_v48, %v8335_v48 }
0x3670   :  { %v8338_v61 = vmul.f32 %v8334_v59, %v8334_v59 }
0x3671   :  { %v8345_v0 = vsel %vm52_vm0, %v8339_v60, 0.0 }
0x3672   :  { %8346 = vadd.xlane.f32.xlu1 %v8345_v0  ;;  %v8329_v2 = vpop.xlane.xlu1 %8328  ;;  %v8342_v29 = vsel %vm52_vm0, %v8338_v61, 0.0 }
0x3673   :  { %v8333_v63 = vmul.f32 0.03125, %v8329_v2  ;;  %8343 = vadd.xlane.f32.xlu0 %v8342_v29  ;;  %v8326_v62 = vpop.xlane.xlu0 %8325 }
0x3674   :  { %v8332_v22 = vmul.f32 0.03125, %v8326_v62 }
0x3675   :  { %v8337_v32 = vsub.f32 %v8317_v6, %v8333_v63 }
0x3676   :  { %v8336_v9 = vsub.f32 %v8316_v51, %v8332_v22 }
0x3677   :  { %v8341_v57 = vmul.f32 %v8337_v32, %v8337_v32 }
0x3678   :  { %v8340_v15 = vmul.f32 %v8336_v9, %v8336_v9 }
0x3679   :  { %v8351_v1 = vsel %vm52_vm0, %v8341_v57, 0.0 }
0x367a   :  { %8352 = vadd.xlane.f32.xlu1 %v8351_v1  ;;  %v8348_v11 = vsel %vm52_vm0, %v8340_v15, 0.0 }
0x367b   :  { %8349 = vadd.xlane.f32.xlu0 %v8348_v11 }
0x3691   :  { %8396 = vperm.xlu0 %10479, %v8393_v46  }
0x36ff   :  { %v8347_v27 = vpop.xlane.xlu1 %8346 }
0x3700   :  { %v8355_v8 = vmul.f32 0.03125, %v8347_v27  ;;  %v8344_v10 = vpop.xlane.xlu0 %8343 }
0x3701   :  { %v8354_v42 = vmul.f32 0.03125, %v8344_v10 }
0x3702   :  { %v8359_v38 = vadd.f32 1e-05, %v8355_v8 }
0x3703   :  { %v8358_v30 = vadd.f32 1e-05, %v8354_v42 }
0x3704   :  { %10792 = vrsqrt.f32 %v8359_v38 }
0x3705   :  { %10794 = vrsqrt.f32 %v8358_v30 }
0x3707   :  { %v8353_v16 = vpop.xlane.xlu1 %8352 }
0x3708   :  { %v8357_v18 = vmul.f32 0.03125, %v8353_v16  ;;  %v8350_v12 = vpop.xlane.xlu0 %8349 }
0x3709   :  { %v8356_v13 = vmul.f32 0.03125, %v8350_v12 }
0x370a   :  { %v8361_v47 = vadd.f32 1e-05, %v8357_v18 }
0x370b   :  { %v8360_v50 = vadd.f32 1e-05, %v8356_v13 }
0x370c   :  { %10796 = vrsqrt.f32 %v8361_v47 }
0x370d   :  { %10798 = vrsqrt.f32 %v8360_v50 }
0x370e   :  { %v10793_v56 = vpop.eup %10792 }
0x370f   :  { %v10795_v5 = vpop.eup %10794  ;;  %v8367_v26 = vmul.f32 %v10793_v56, %v8335_v48 }
0x3710   :  { %v8366_v58 = vmul.f32 %v10795_v5, %v8334_v59  ;;  %v8397_v45 = vpop.permute.xlu0 %8396 }
0x3711   :  { %v8376_v24 = vmul.f32 %v8813_v17, %v8367_v26 }
0x3712   :  { %v8375_v28 = vmul.f32 %v8813_v17, %v8366_v58 }
0x3713   :  { %v8385_v31 = vadd.f32 %v8814_v3, %v8376_v24 }
0x3714   :  { %v8384_v37 = vadd.f32 %v8814_v3, %v8375_v28 }
0x3715   :  { %v8389_v39 = vadd.f32 %v8385_v31, %v11058_v35 }
0x3716   :  { %v10797_v7 = vpop.eup %10796  ;;  %v8388_v40 = vadd.f32 %v8384_v37, %v11056_v33  ;;  %v8392_v33 = vld [vmem:[%s12377_s9 + $0x6] sm:$0x1] }
0x3717   :  { %v10799_v20 = vpop.eup %10798  ;;  %v8369_v55 = vmul.f32 %v10797_v7, %v8337_v32 }
0x3718   :  { %v8368_v44 = vmul.f32 %v10799_v20, %v8336_v9  ;;  %v10239_v4 = vpack.c.bf16 %v8389_v39, %v8388_v40 }
0x3719   :  { %v8378_v21 = vmul.f32 %v8813_v17, %v8369_v55 }
0x371a   :  { %v8377_v49 = vmul.f32 %v8813_v17, %v8368_v44  ;;  %10241 = vmatpush3.bf16.xpose.msk.msra.mxu1 %vm10240_vm7, %v10239_v4 }
0x371b   :  { %v8387_v19 = vadd.f32 %v8814_v3, %v8378_v21  ;;  %10242 = vmatprep.subr.bf16.mxu1 %v10812_v14 }
0x371c   :  { %v8386_v34 = vadd.f32 %v8814_v3, %v8377_v49 }
0x371d   :  { %v8391_v6 = vadd.f32 %v8387_v19, %v11072_v43 }
0x371e   :  { %v8390_v35 = vadd.f32 %v8386_v34, %v11070_v41 }
0x3720   :  { %v10243_v51 = vpack.c.bf16 %v8391_v6, %v8390_v35 }
0x3722   :  { %10245 = vmatpush3.bf16.xpose.msk.msra.mxu1 %vm10240_vm7, %v10243_v51 }
0x3729   :  { %9928 = vmatmul.mubr.msk.f32.vlgmr.msra.gmra.mrb[104].mxu1 %vm52_vm0, %v8392_v33 }
0x37fc   :  { %v8480_v36 = vpop.f32.mrb[104].mxu1 }
0x37fd   :  { %v9929_v52 = vpop.f32.mrb[105].mxu1  ;;  %v8481_v53 = vadd.f32 %v8480_v36, %v8397_v45 }
0x37ff   :  { %8484 = vst.msk [vmem:[%s12383_s10] sm:$0x1] %vm616_vm3, %v8481_v53 }

</bundles_post_ra>
